<compile_context>
chip_gen: v7x
topology: tpu7x:2x2x1
jax: 0.10.0
libtpu: 0.0.40
codegen_flags: <defaults>
</compile_context>

<pallas_src>
import functools

import jax
import jax.numpy as jnp
from jax.experimental import pallas as pl
from jax.experimental.pallas import tpu as pltpu


# ----------------------------- shared math helpers -------------------------------------


def _gelu_tanh(x):
    c = 0.7978845608028654  # sqrt(2/pi)
    return 0.5 * x * (1.0 + jnp.tanh(c * (x + 0.044715 * x * x * x)))


def _bn_rows(x, gamma, beta, eps):
    # BatchNorm1d over channels: rows = bs*q_len items, columns = d_model channels.
    mu = jnp.mean(x, axis=0, keepdims=True)
    var = jnp.mean(x * x, axis=0, keepdims=True) - mu * mu   # single-pass stats
    return (x - mu) * jax.lax.rsqrt(var + eps) * gamma + beta


# ------------------------- fused encoder kernel (one pallas_call) -----------------------


def _encoder_kernel(src_ref, wq_ref, bq_ref, wk_ref, bk_ref, wv_ref, bv_ref,
                    wo_ref, bo_ref, g1_ref, be1_ref, w1_ref, b1_ref, w2_ref, b2_ref,
                    g2_ref, be2_ref, out_ref, act_ref, *,
                    bs, q_len, n_heads, scale, eps, compute_dtype):
    """One TSTEncoderLayer per grid step; activation carried in a fp32 VMEM scratch."""
    layer = pl.program_id(0)

    @pl.when(layer == 0)
    def _():
        act_ref[...] = src_ref[...].astype(jnp.float32)

    x = act_ref[...]                                          # (N, d_model) fp32
    n, d_model = x.shape
    d_k = d_model // n_heads
    xc = x.astype(compute_dtype)

    # ---- multi-head self-attention: per-head K=d_model projections, bs-batched QK^T ----
    head_outs = []
    for h in range(n_heads):                                  # static unroll
        qh = jnp.dot(xc, wq_ref[h], preferred_element_type=jnp.float32) + bq_ref[h]
        kh = jnp.dot(xc, wk_ref[h], preferred_element_type=jnp.float32) + bk_ref[h]
        vh = jnp.dot(xc, wv_ref[h], preferred_element_type=jnp.float32) + bv_ref[h]
        qh3 = qh.reshape(bs, q_len, d_k).astype(compute_dtype)
        kh3 = kh.reshape(bs, q_len, d_k).astype(compute_dtype)
        vh3 = vh.reshape(bs, q_len, d_k).astype(compute_dtype)
        s = jnp.einsum("bqd,bkd->bqk", qh3, kh3,
                       preferred_element_type=jnp.float32) * scale
        s = s - jnp.max(s, axis=-1, keepdims=True)
        p = jnp.exp(s)
        p = p * pl.reciprocal(jnp.sum(p, axis=-1, keepdims=True), approx=True)
        oh = jnp.einsum("bqk,bkd->bqd", p.astype(compute_dtype), vh3,
                        preferred_element_type=jnp.float32)
        head_outs.append(oh.reshape(n, d_k))

    o = jnp.concatenate(head_outs, axis=-1)                   # (N, d_model), lane concat
    attn = jnp.dot(o.astype(compute_dtype), wo_ref[...],
                   preferred_element_type=jnp.float32) + bo_ref[...]

    # ---- residual + BatchNorm (norm_attn) ----
    a = _bn_rows(x + attn, g1_ref[...], be1_ref[...], eps)

    # ---- FFN: Linear -> GELU -> Linear, residual, BatchNorm (norm_ffn) ----
    h1 = jnp.dot(a.astype(compute_dtype), w1_ref[...],
                 preferred_element_type=jnp.float32) + b1_ref[...]
    h1 = _gelu_tanh(h1)
    f = jnp.dot(h1.astype(compute_dtype), w2_ref[...],
                preferred_element_type=jnp.float32) + b2_ref[...]
    y = _bn_rows(a + f, g2_ref[...], be2_ref[...], eps)

    act_ref[...] = y

    @pl.when(layer == pl.num_programs(0) - 1)
    def _():
        out_ref[...] = y.astype(out_ref.dtype)


def _layer_index_map(ndim):
    zeros = (0,) * (ndim - 1)

    def index_map(layer):
        return (layer,) + zeros

    return index_map


def _layer_spec(arr):
    # Per-layer block: leading layer dim selected by the grid index and squeezed away.
    return pl.BlockSpec((pl.Squeezed(),) + arr.shape[1:], _layer_index_map(arr.ndim))


def tst_encoder_forward(src, params, *, n_heads, eps=1e-5, compute_dtype=jnp.bfloat16):
    """src: (bs, q_len, d_model). params: list of per-layer dicts, weights in (in, out) layout."""
    bs, q_len, d_model = src.shape
    assert d_model % n_heads == 0
    d_k = d_model // n_heads
    n_layers = len(params)
    n = bs * q_len
    scale = float(d_k ** -0.5)
    cd = compute_dtype

    def stack(name):
        return jnp.stack([p[name] for p in params], axis=0)

    def per_head_w(name):   # (L, d_model, d_model) -> (L, n_heads, d_model, d_k)
        return (stack(name).reshape(n_layers, d_model, n_heads, d_k)
                .transpose(0, 2, 1, 3).astype(cd))

    def per_head_b(name):   # (L, 1, d_model) -> (L, n_heads, 1, d_k)
        return (stack(name).reshape(n_layers, 1, n_heads, d_k)
                .transpose(0, 2, 1, 3).astype(jnp.float32))

    ops = [
        src.reshape(n, d_model),
        per_head_w("wq"), per_head_b("bq"),
        per_head_w("wk"), per_head_b("bk"),
        per_head_w("wv"), per_head_b("bv"),
        stack("wo").astype(cd), stack("bo"),
        stack("g1"), stack("be1"),
        stack("w1").astype(cd), stack("b1"),
        stack("w2").astype(cd), stack("b2"),
        stack("g2"), stack("be2"),
    ]

    act_in_spec = pl.BlockSpec((n, d_model), lambda l: (0, 0))     # resident across layers
    act_out_spec = pl.BlockSpec((n, d_model), lambda l: (0, 0))

    kernel = functools.partial(_encoder_kernel, bs=bs, q_len=q_len, n_heads=n_heads,
                               scale=scale, eps=eps, compute_dtype=cd)

    out2d = pl.pallas_call(
        kernel,
        out_shape=jax.ShapeDtypeStruct((n, d_model), src.dtype),
        grid_spec=pltpu.PrefetchScalarGridSpec(
            num_scalar_prefetch=0,
            grid=(n_layers,),
            in_specs=[act_in_spec] + [_layer_spec(a) for a in ops[1:]],
            out_specs=act_out_spec,
            scratch_shapes=[pltpu.VMEM((n, d_model), jnp.float32)],
        ),
        compiler_params=pltpu.CompilerParams(dimension_semantics=("arbitrary",)),
    )(*ops)
    return out2d.reshape(bs, q_len, d_model)


# --------------------------------- pure-JAX reference -----------------------------------


def _reference_encoder(src, params, *, n_heads, eps=1e-5, compute_dtype=jnp.float32):
    hp = jax.lax.Precision.HIGHEST
    cd = compute_dtype
    bs, q_len, d_model = src.shape
    d_k = d_model // n_heads
    scale = d_k ** -0.5

    def ein(eq, a, b):
        return jnp.einsum(eq, a.astype(cd), b.astype(cd), precision=hp,
                          preferred_element_type=jnp.float32)

    def bn(x, g, b):
        mu = jnp.mean(x, axis=(0, 1), keepdims=True)
        var = jnp.mean(jnp.square(x - mu), axis=(0, 1), keepdims=True)
        return (x - mu) * jax.lax.rsqrt(var + eps) * g + b

    x = src
    for p in params:
        q = ein("bqd,de->bqe", x, p["wq"]) + p["bq"]
        k = ein("bqd,de->bqe", x, p["wk"]) + p["bk"]
        v = ein("bqd,de->bqe", x, p["wv"]) + p["bv"]
        q = q.reshape(bs, q_len, n_heads, d_k).transpose(0, 2, 1, 3)
        k = k.reshape(bs, q_len, n_heads, d_k).transpose(0, 2, 1, 3)
        v = v.reshape(bs, q_len, n_heads, d_k).transpose(0, 2, 1, 3)
        s = ein("bhqd,bhkd->bhqk", q, k) * scale
        a = jax.nn.softmax(s, axis=-1)
        o = ein("bhqk,bhkd->bhqd", a, v)
        o = o.transpose(0, 2, 1, 3).reshape(bs, q_len, d_model)
        o = ein("bqd,de->bqe", o, p["wo"]) + p["bo"]
        y = bn(x + o, p["g1"], p["be1"])
        h = _gelu_tanh(ein("bqd,df->bqf", y, p["w1"]) + p["b1"])
        f = ein("bqf,fd->bqd", h, p["w2"]) + p["b2"]
        x = bn(y + f, p["g2"], p["be2"])
    return x


# --------------------------------- parameter init ---------------------------------------


def init_params(key, n_layers, d_model, d_ff):
    params = []
    for layer in range(n_layers):
        ks = jax.random.split(jax.random.fold_in(key, layer), 12)

        def lin(kw, kb, d_in, d_out):
            w = jax.random.normal(kw, (d_in, d_out), jnp.float32) / jnp.sqrt(float(d_in))
            b = 0.02 * jax.random.normal(kb, (1, d_out), jnp.float32)
            return w, b

        wq, bq = lin(ks[0], ks[1], d_model, d_model)
        wk, bk = lin(ks[2], ks[3], d_model, d_model)
        wv, bv = lin(ks[4], ks[5], d_model, d_model)
        wo, bo = lin(ks[6], ks[7], d_model, d_model)
        w1, b1 = lin(ks[8], ks[9], d_model, d_ff)
        w2, b2 = lin(ks[10], ks[11], d_ff, d_model)
        params.append(dict(
            wq=wq, bq=bq, wk=wk, bk=bk, wv=wv, bv=bv, wo=wo, bo=bo,
            w1=w1, b1=b1, w2=w2, b2=b2,
            g1=jnp.ones((1, d_model), jnp.float32), be1=jnp.zeros((1, d_model), jnp.float32),
            g2=jnp.ones((1, d_model), jnp.float32), be2=jnp.zeros((1, d_model), jnp.float32),
        ))
    return params


# -------------------------------------- main ---------------------------------------------


if __name__ == "__main__":
    BS, Q_LEN, D_MODEL, N_HEADS, D_FF, N_LAYERS = 4, 16, 128, 4, 256, 2

    key = jax.random.PRNGKey(0)
    k_src, k_par = jax.random.split(key)
    src = jax.random.normal(k_src, (BS, Q_LEN, D_MODEL), dtype=jnp.float32)
    params = init_params(k_par, N_LAYERS, D_MODEL, D_FF)

    # 1) float32 matmul path: validates module semantics against a HIGHEST-precision reference.
    out_f32 = jax.block_until_ready(
        tst_encoder_forward(src, params, n_heads=N_HEADS, compute_dtype=jnp.float32))
    ref_f32 = _reference_encoder(src, params, n_heads=N_HEADS, compute_dtype=jnp.float32)
    err_f32 = float(jnp.max(jnp.abs(out_f32 - ref_f32)))
    assert out_f32.shape == src.shape
    assert jnp.allclose(out_f32, ref_f32, atol=1e-2, rtol=1e-2), f"fp32 mismatch: {err_f32}"

    # 2) bfloat16 matmul-operand path (v6e/v7x MXU feedback): compare against an
    #    equivalently-quantized reference (bf16 operands, fp32 accumulation).
    out_bf16 = jax.block_until_ready(
        tst_encoder_forward(src, params, n_heads=N_HEADS, compute_dtype=jnp.bfloat16))
    ref_bf16 = _reference_encoder(src, params, n_heads=N_HEADS, compute_dtype=jnp.bfloat16)
    err_bf16 = float(jnp.max(jnp.abs(out_bf16 - ref_bf16)))
    assert jnp.allclose(out_bf16, ref_bf16, atol=5e-2, rtol=5e-2), f"bf16 mismatch: {err_bf16}"

    print("KERNEL_OK")
</pallas_src>

<mosaic_0001>
module attributes {stable_mosaic.version = 11 : i64} {
  func.func @_encoder_kernel(%arg0: i32, %arg1: memref<64x128xf32, #tpu.memory_space<vmem>>, %arg2: memref<1x4x128x32xf32, #tpu.memory_space<vmem>>, %arg3: memref<1x4x1x32xf32, #tpu.memory_space<vmem>>, %arg4: memref<1x4x128x32xf32, #tpu.memory_space<vmem>>, %arg5: memref<1x4x1x32xf32, #tpu.memory_space<vmem>>, %arg6: memref<1x4x128x32xf32, #tpu.memory_space<vmem>>, %arg7: memref<1x4x1x32xf32, #tpu.memory_space<vmem>>, %arg8: memref<1x128x128xf32, #tpu.memory_space<vmem>>, %arg9: memref<1x1x128xf32, #tpu.memory_space<vmem>>, %arg10: memref<1x1x128xf32, #tpu.memory_space<vmem>>, %arg11: memref<1x1x128xf32, #tpu.memory_space<vmem>>, %arg12: memref<1x128x256xf32, #tpu.memory_space<vmem>>, %arg13: memref<1x1x256xf32, #tpu.memory_space<vmem>>, %arg14: memref<1x256x128xf32, #tpu.memory_space<vmem>>, %arg15: memref<1x1x128xf32, #tpu.memory_space<vmem>>, %arg16: memref<1x1x128xf32, #tpu.memory_space<vmem>>, %arg17: memref<1x1x128xf32, #tpu.memory_space<vmem>>, %arg18: memref<64x128xf32, #tpu.memory_space<vmem>>, %arg19: memref<64x128xf32, #tpu.memory_space<vmem>>) attributes {dimension_semantics = [#tpu.dimension_semantics<arbitrary>], iteration_bounds = array<i64: 2>, scalar_prefetch = 0 : i64, scratch_operands = 1 : i64, tpu.core_type = #tpu.core_type<tc>, window_params = [{pipeline_mode = #tpu.pipeline_mode<synchronous>, transform_indices = @transform_0, window_bounds = array<i64: 64, 128>}, {transform_indices = @transform_1, window_bounds = array<i64: 1, 4, 128, 32>}, {transform_indices = @transform_2, window_bounds = array<i64: 1, 4, 1, 32>}, {transform_indices = @transform_3, window_bounds = array<i64: 1, 4, 128, 32>}, {transform_indices = @transform_4, window_bounds = array<i64: 1, 4, 1, 32>}, {transform_indices = @transform_5, window_bounds = array<i64: 1, 4, 128, 32>}, {transform_indices = @transform_6, window_bounds = array<i64: 1, 4, 1, 32>}, {transform_indices = @transform_7, window_bounds = array<i64: 1, 128, 128>}, {transform_indices = @transform_8, window_bounds = array<i64: 1, 1, 128>}, {transform_indices = @transform_9, window_bounds = array<i64: 1, 1, 128>}, {transform_indices = @transform_10, window_bounds = array<i64: 1, 1, 128>}, {transform_indices = @transform_11, window_bounds = array<i64: 1, 128, 256>}, {transform_indices = @transform_12, window_bounds = array<i64: 1, 1, 256>}, {transform_indices = @transform_13, window_bounds = array<i64: 1, 256, 128>}, {transform_indices = @transform_14, window_bounds = array<i64: 1, 1, 128>}, {transform_indices = @transform_15, window_bounds = array<i64: 1, 1, 128>}, {transform_indices = @transform_16, window_bounds = array<i64: 1, 1, 128>}, {pipeline_mode = #tpu.pipeline_mode<synchronous>, transform_indices = @transform_17, window_bounds = array<i64: 64, 128>}]} {
    %c0_i32 = arith.constant 0 : i32
    %0 = arith.cmpi eq, %arg0, %c0_i32 : i32
    %1 = arith.extui %0 : i1 to i32
    %c0_i32_0 = arith.constant 0 : i32
    %2 = arith.cmpi ne, %1, %c0_i32_0 : i32
    scf.if %2 {
      %c0_176 = arith.constant 0 : index
      %c0_177 = arith.constant 0 : index
      %253 = vector.load %arg1[%c0_176, %c0_177] : memref<64x128xf32, #tpu.memory_space<vmem>>, vector<64x128xf32>
      %c0_178 = arith.constant 0 : index
      %c0_179 = arith.constant 0 : index
      %254 = vector.load %arg19[%c0_178, %c0_179] : memref<64x128xf32, #tpu.memory_space<vmem>>, vector<64x128xf32>
      tpu.vector_store %arg19[%c0_178, %c0_179], %253 {strides = array<i32>} : memref<64x128xf32, #tpu.memory_space<vmem>>, vector<64x128xf32>,
    } else {
    }
    %c0 = arith.constant 0 : index
    %c0_1 = arith.constant 0 : index
    %3 = vector.load %arg19[%c0, %c0_1] : memref<64x128xf32, #tpu.memory_space<vmem>>, vector<64x128xf32>
    %c0_2 = arith.constant 0 : index
    %c0_3 = arith.constant 0 : index
    %c0_4 = arith.constant 0 : index
    %c0_5 = arith.constant 0 : index
    %4 = vector.load %arg2[%c0_2, %c0_3, %c0_4, %c0_5] : memref<1x4x128x32xf32, #tpu.memory_space<vmem>>, vector<1x1x128x32xf32>
    %5 = vector.shape_cast %4 : vector<1x1x128x32xf32> to vector<128x32xf32>
    %cst = arith.constant dense<0.000000e+00> : vector<64x32xf32>
    %6 = tpu.matmul %3, %5, %cst {dimension_numbers = #tpu.dot_dimension_numbers<[1], [0], [0], [1], [0, 0, 1, 1], [], []>} : vector<64x128xf32>, vector<128x32xf32>, vector<64x32xf32> -> vector<64x32xf32>
    %c0_6 = arith.constant 0 : index
    %c0_7 = arith.constant 0 : index
    %c0_8 = arith.constant 0 : index
    %c0_9 = arith.constant 0 : index
    %7 = vector.load %arg3[%c0_6, %c0_7, %c0_8, %c0_9] : memref<1x4x1x32xf32, #tpu.memory_space<vmem>>, vector<1x1x1x32xf32>
    %8 = vector.shape_cast %7 : vector<1x1x1x32xf32> to vector<1x32xf32>
    %9 = vector.broadcast %8 : vector<1x32xf32> to vector<64x32xf32>
    %10 = arith.addf %6, %9 : vector<64x32xf32>
    %c0_10 = arith.constant 0 : index
    %c0_11 = arith.constant 0 : index
    %c0_12 = arith.constant 0 : index
    %c0_13 = arith.constant 0 : index
    %11 = vector.load %arg4[%c0_10, %c0_11, %c0_12, %c0_13] : memref<1x4x128x32xf32, #tpu.memory_space<vmem>>, vector<1x1x128x32xf32>
    %12 = vector.shape_cast %11 : vector<1x1x128x32xf32> to vector<128x32xf32>
    %cst_14 = arith.constant dense<0.000000e+00> : vector<64x32xf32>
    %13 = tpu.matmul %3, %12, %cst_14 {dimension_numbers = #tpu.dot_dimension_numbers<[1], [0], [0], [1], [0, 0, 1, 1], [], []>} : vector<64x128xf32>, vector<128x32xf32>, vector<64x32xf32> -> vector<64x32xf32>
    %c0_15 = arith.constant 0 : index
    %c0_16 = arith.constant 0 : index
    %c0_17 = arith.constant 0 : index
    %c0_18 = arith.constant 0 : index
    %14 = vector.load %arg5[%c0_15, %c0_16, %c0_17, %c0_18] : memref<1x4x1x32xf32, #tpu.memory_space<vmem>>, vector<1x1x1x32xf32>
    %15 = vector.shape_cast %14 : vector<1x1x1x32xf32> to vector<1x32xf32>
    %16 = vector.broadcast %15 : vector<1x32xf32> to vector<64x32xf32>
    %17 = arith.addf %13, %16 : vector<64x32xf32>
    %c0_19 = arith.constant 0 : index
    %c0_20 = arith.constant 0 : index
    %c0_21 = arith.constant 0 : index
    %c0_22 = arith.constant 0 : index
    %18 = vector.load %arg6[%c0_19, %c0_20, %c0_21, %c0_22] : memref<1x4x128x32xf32, #tpu.memory_space<vmem>>, vector<1x1x128x32xf32>
    %19 = vector.shape_cast %18 : vector<1x1x128x32xf32> to vector<128x32xf32>
    %cst_23 = arith.constant dense<0.000000e+00> : vector<64x32xf32>
    %20 = tpu.matmul %3, %19, %cst_23 {dimension_numbers = #tpu.dot_dimension_numbers<[1], [0], [0], [1], [0, 0, 1, 1], [], []>} : vector<64x128xf32>, vector<128x32xf32>, vector<64x32xf32> -> vector<64x32xf32>
    %c0_24 = arith.constant 0 : index
    %c0_25 = arith.constant 0 : index
    %c0_26 = arith.constant 0 : index
    %c0_27 = arith.constant 0 : index
    %21 = vector.load %arg7[%c0_24, %c0_25, %c0_26, %c0_27] : memref<1x4x1x32xf32, #tpu.memory_space<vmem>>, vector<1x1x1x32xf32>
    %22 = vector.shape_cast %21 : vector<1x1x1x32xf32> to vector<1x32xf32>
    %23 = vector.broadcast %22 : vector<1x32xf32> to vector<64x32xf32>
    %24 = arith.addf %20, %23 : vector<64x32xf32>
    %25 = vector.shape_cast %10 : vector<64x32xf32> to vector<4x16x32xf32>
    %26 = vector.shape_cast %17 : vector<64x32xf32> to vector<4x16x32xf32>
    %27 = vector.shape_cast %24 : vector<64x32xf32> to vector<4x16x32xf32>
    "tpu.trace_start"() <{level = 10 : i32, message = "bqd,bkd->bqk"}> : () -> ()
    %cst_28 = arith.constant dense<0.000000e+00> : vector<4x16x16xf32>
    %28 = tpu.matmul %25, %26, %cst_28 {dimension_numbers = #tpu.dot_dimension_numbers<[2], [2], [1], [1], [0, 0, 0, 1, 1, 1], [0], [0]>} : vector<4x16x32xf32>, vector<4x16x32xf32>, vector<4x16x16xf32> -> vector<4x16x16xf32>
    "tpu.trace_stop"() : () -> ()
    %cst_29 = arith.constant 0.176776692 : f32
    %29 = vector.broadcast %cst_29 : f32 to vector<4x16x16xf32>
    %30 = arith.mulf %28, %29 : vector<4x16x16xf32>
    %cst_30 = arith.constant dense<0xFF800000> : vector<4x16xf32>
    %31 = vector.multi_reduction <maximumf>, %30, %cst_30 [2] : vector<4x16x16xf32> to vector<4x16xf32>
    %32 = vector.shape_cast %31 : vector<4x16xf32> to vector<4x16x1xf32>
    %33 = vector.broadcast %32 : vector<4x16x1xf32> to vector<4x16x16xf32>
    %34 = arith.subf %30, %33 : vector<4x16x16xf32>
    %35 = math.exp %34 : vector<4x16x16xf32>
    %cst_31 = arith.constant dense<0.000000e+00> : vector<4x16xf32>
    %36 = vector.multi_reduction <add>, %35, %cst_31 [2] : vector<4x16x16xf32> to vector<4x16xf32>
    %37 = vector.shape_cast %36 : vector<4x16xf32> to vector<4x16x1xf32>
    %38 = tpu.reciprocal %37 {approx = true} : vector<4x16x1xf32> -> vector<4x16x1xf32>
    %39 = vector.broadcast %38 : vector<4x16x1xf32> to vector<4x16x16xf32>
    %40 = arith.mulf %35, %39 : vector<4x16x16xf32>
    "tpu.trace_start"() <{level = 10 : i32, message = "bqk,bkd->bqd"}> : () -> ()
    %cst_32 = arith.constant dense<0.000000e+00> : vector<4x16x32xf32>
    %41 = tpu.matmul %40, %27, %cst_32 {dimension_numbers = #tpu.dot_dimension_numbers<[2], [1], [1], [2], [0, 0, 0, 1, 1, 2], [0], [0]>} : vector<4x16x16xf32>, vector<4x16x32xf32>, vector<4x16x32xf32> -> vector<4x16x32xf32>
    "tpu.trace_stop"() : () -> ()
    %42 = vector.shape_cast %41 : vector<4x16x32xf32> to vector<64x32xf32>
    %c0_33 = arith.constant 0 : index
    %c1 = arith.constant 1 : index
    %c0_34 = arith.constant 0 : index
    %c0_35 = arith.constant 0 : index
    %43 = vector.load %arg2[%c0_33, %c1, %c0_34, %c0_35] : memref<1x4x128x32xf32, #tpu.memory_space<vmem>>, vector<1x1x128x32xf32>
    %44 = vector.shape_cast %43 : vector<1x1x128x32xf32> to vector<128x32xf32>
    %cst_36 = arith.constant dense<0.000000e+00> : vector<64x32xf32>
    %45 = tpu.matmul %3, %44, %cst_36 {dimension_numbers = #tpu.dot_dimension_numbers<[1], [0], [0], [1], [0, 0, 1, 1], [], []>} : vector<64x128xf32>, vector<128x32xf32>, vector<64x32xf32> -> vector<64x32xf32>
    %c0_37 = arith.constant 0 : index
    %c1_38 = arith.constant 1 : index
    %c0_39 = arith.constant 0 : index
    %c0_40 = arith.constant 0 : index
    %46 = vector.load %arg3[%c0_37, %c1_38, %c0_39, %c0_40] : memref<1x4x1x32xf32, #tpu.memory_space<vmem>>, vector<1x1x1x32xf32>
    %47 = vector.shape_cast %46 : vector<1x1x1x32xf32> to vector<1x32xf32>
    %48 = vector.broadcast %47 : vector<1x32xf32> to vector<64x32xf32>
    %49 = arith.addf %45, %48 : vector<64x32xf32>
    %c0_41 = arith.constant 0 : index
    %c1_42 = arith.constant 1 : index
    %c0_43 = arith.constant 0 : index
    %c0_44 = arith.constant 0 : index
    %50 = vector.load %arg4[%c0_41, %c1_42, %c0_43, %c0_44] : memref<1x4x128x32xf32, #tpu.memory_space<vmem>>, vector<1x1x128x32xf32>
    %51 = vector.shape_cast %50 : vector<1x1x128x32xf32> to vector<128x32xf32>
    %cst_45 = arith.constant dense<0.000000e+00> : vector<64x32xf32>
    %52 = tpu.matmul %3, %51, %cst_45 {dimension_numbers = #tpu.dot_dimension_numbers<[1], [0], [0], [1], [0, 0, 1, 1], [], []>} : vector<64x128xf32>, vector<128x32xf32>, vector<64x32xf32> -> vector<64x32xf32>
    %c0_46 = arith.constant 0 : index
    %c1_47 = arith.constant 1 : index
    %c0_48 = arith.constant 0 : index
    %c0_49 = arith.constant 0 : index
    %53 = vector.load %arg5[%c0_46, %c1_47, %c0_48, %c0_49] : memref<1x4x1x32xf32, #tpu.memory_space<vmem>>, vector<1x1x1x32xf32>
    %54 = vector.shape_cast %53 : vector<1x1x1x32xf32> to vector<1x32xf32>
    %55 = vector.broadcast %54 : vector<1x32xf32> to vector<64x32xf32>
    %56 = arith.addf %52, %55 : vector<64x32xf32>
    %c0_50 = arith.constant 0 : index
    %c1_51 = arith.constant 1 : index
    %c0_52 = arith.constant 0 : index
    %c0_53 = arith.constant 0 : index
    %57 = vector.load %arg6[%c0_50, %c1_51, %c0_52, %c0_53] : memref<1x4x128x32xf32, #tpu.memory_space<vmem>>, vector<1x1x128x32xf32>
    %58 = vector.shape_cast %57 : vector<1x1x128x32xf32> to vector<128x32xf32>
    %cst_54 = arith.constant dense<0.000000e+00> : vector<64x32xf32>
    %59 = tpu.matmul %3, %58, %cst_54 {dimension_numbers = #tpu.dot_dimension_numbers<[1], [0], [0], [1], [0, 0, 1, 1], [], []>} : vector<64x128xf32>, vector<128x32xf32>, vector<64x32xf32> -> vector<64x32xf32>
    %c0_55 = arith.constant 0 : index
    %c1_56 = arith.constant 1 : index
    %c0_57 = arith.constant 0 : index
    %c0_58 = arith.constant 0 : index
    %60 = vector.load %arg7[%c0_55, %c1_56, %c0_57, %c0_58] : memref<1x4x1x32xf32, #tpu.memory_space<vmem>>, vector<1x1x1x32xf32>
    %61 = vector.shape_cast %60 : vector<1x1x1x32xf32> to vector<1x32xf32>
    %62 = vector.broadcast %61 : vector<1x32xf32> to vector<64x32xf32>
    %63 = arith.addf %59, %62 : vector<64x32xf32>
    %64 = vector.shape_cast %49 : vector<64x32xf32> to vector<4x16x32xf32>
    %65 = vector.shape_cast %56 : vector<64x32xf32> to vector<4x16x32xf32>
    %66 = vector.shape_cast %63 : vector<64x32xf32> to vector<4x16x32xf32>
    "tpu.trace_start"() <{level = 10 : i32, message = "bqd,bkd->bqk"}> : () -> ()
    %cst_59 = arith.constant dense<0.000000e+00> : vector<4x16x16xf32>
    %67 = tpu.matmul %64, %65, %cst_59 {dimension_numbers = #tpu.dot_dimension_numbers<[2], [2], [1], [1], [0, 0, 0, 1, 1, 1], [0], [0]>} : vector<4x16x32xf32>, vector<4x16x32xf32>, vector<4x16x16xf32> -> vector<4x16x16xf32>
    "tpu.trace_stop"() : () -> ()
    %cst_60 = arith.constant 0.176776692 : f32
    %68 = vector.broadcast %cst_60 : f32 to vector<4x16x16xf32>
    %69 = arith.mulf %67, %68 : vector<4x16x16xf32>
    %cst_61 = arith.constant dense<0xFF800000> : vector<4x16xf32>
    %70 = vector.multi_reduction <maximumf>, %69, %cst_61 [2] : vector<4x16x16xf32> to vector<4x16xf32>
    %71 = vector.shape_cast %70 : vector<4x16xf32> to vector<4x16x1xf32>
    %72 = vector.broadcast %71 : vector<4x16x1xf32> to vector<4x16x16xf32>
    %73 = arith.subf %69, %72 : vector<4x16x16xf32>
    %74 = math.exp %73 : vector<4x16x16xf32>
    %cst_62 = arith.constant dense<0.000000e+00> : vector<4x16xf32>
    %75 = vector.multi_reduction <add>, %74, %cst_62 [2] : vector<4x16x16xf32> to vector<4x16xf32>
    %76 = vector.shape_cast %75 : vector<4x16xf32> to vector<4x16x1xf32>
    %77 = tpu.reciprocal %76 {approx = true} : vector<4x16x1xf32> -> vector<4x16x1xf32>
    %78 = vector.broadcast %77 : vector<4x16x1xf32> to vector<4x16x16xf32>
    %79 = arith.mulf %74, %78 : vector<4x16x16xf32>
    "tpu.trace_start"() <{level = 10 : i32, message = "bqk,bkd->bqd"}> : () -> ()
    %cst_63 = arith.constant dense<0.000000e+00> : vector<4x16x32xf32>
    %80 = tpu.matmul %79, %66, %cst_63 {dimension_numbers = #tpu.dot_dimension_numbers<[2], [1], [1], [2], [0, 0, 0, 1, 1, 2], [0], [0]>} : vector<4x16x16xf32>, vector<4x16x32xf32>, vector<4x16x32xf32> -> vector<4x16x32xf32>
    "tpu.trace_stop"() : () -> ()
    %81 = vector.shape_cast %80 : vector<4x16x32xf32> to vector<64x32xf32>
    %c0_64 = arith.constant 0 : index
    %c2 = arith.constant 2 : index
    %c0_65 = arith.constant 0 : index
    %c0_66 = arith.constant 0 : index
    %82 = vector.load %arg2[%c0_64, %c2, %c0_65, %c0_66] : memref<1x4x128x32xf32, #tpu.memory_space<vmem>>, vector<1x1x128x32xf32>
    %83 = vector.shape_cast %82 : vector<1x1x128x32xf32> to vector<128x32xf32>
    %cst_67 = arith.constant dense<0.000000e+00> : vector<64x32xf32>
    %84 = tpu.matmul %3, %83, %cst_67 {dimension_numbers = #tpu.dot_dimension_numbers<[1], [0], [0], [1], [0, 0, 1, 1], [], []>} : vector<64x128xf32>, vector<128x32xf32>, vector<64x32xf32> -> vector<64x32xf32>
    %c0_68 = arith.constant 0 : index
    %c2_69 = arith.constant 2 : index
    %c0_70 = arith.constant 0 : index
    %c0_71 = arith.constant 0 : index
    %85 = vector.load %arg3[%c0_68, %c2_69, %c0_70, %c0_71] : memref<1x4x1x32xf32, #tpu.memory_space<vmem>>, vector<1x1x1x32xf32>
    %86 = vector.shape_cast %85 : vector<1x1x1x32xf32> to vector<1x32xf32>
    %87 = vector.broadcast %86 : vector<1x32xf32> to vector<64x32xf32>
    %88 = arith.addf %84, %87 : vector<64x32xf32>
    %c0_72 = arith.constant 0 : index
    %c2_73 = arith.constant 2 : index
    %c0_74 = arith.constant 0 : index
    %c0_75 = arith.constant 0 : index
    %89 = vector.load %arg4[%c0_72, %c2_73, %c0_74, %c0_75] : memref<1x4x128x32xf32, #tpu.memory_space<vmem>>, vector<1x1x128x32xf32>
    %90 = vector.shape_cast %89 : vector<1x1x128x32xf32> to vector<128x32xf32>
    %cst_76 = arith.constant dense<0.000000e+00> : vector<64x32xf32>
    %91 = tpu.matmul %3, %90, %cst_76 {dimension_numbers = #tpu.dot_dimension_numbers<[1], [0], [0], [1], [0, 0, 1, 1], [], []>} : vector<64x128xf32>, vector<128x32xf32>, vector<64x32xf32> -> vector<64x32xf32>
    %c0_77 = arith.constant 0 : index
    %c2_78 = arith.constant 2 : index
    %c0_79 = arith.constant 0 : index
    %c0_80 = arith.constant 0 : index
    %92 = vector.load %arg5[%c0_77, %c2_78, %c0_79, %c0_80] : memref<1x4x1x32xf32, #tpu.memory_space<vmem>>, vector<1x1x1x32xf32>
    %93 = vector.shape_cast %92 : vector<1x1x1x32xf32> to vector<1x32xf32>
    %94 = vector.broadcast %93 : vector<1x32xf32> to vector<64x32xf32>
    %95 = arith.addf %91, %94 : vector<64x32xf32>
    %c0_81 = arith.constant 0 : index
    %c2_82 = arith.constant 2 : index
    %c0_83 = arith.constant 0 : index
    %c0_84 = arith.constant 0 : index
    %96 = vector.load %arg6[%c0_81, %c2_82, %c0_83, %c0_84] : memref<1x4x128x32xf32, #tpu.memory_space<vmem>>, vector<1x1x128x32xf32>
    %97 = vector.shape_cast %96 : vector<1x1x128x32xf32> to vector<128x32xf32>
    %cst_85 = arith.constant dense<0.000000e+00> : vector<64x32xf32>
    %98 = tpu.matmul %3, %97, %cst_85 {dimension_numbers = #tpu.dot_dimension_numbers<[1], [0], [0], [1], [0, 0, 1, 1], [], []>} : vector<64x128xf32>, vector<128x32xf32>, vector<64x32xf32> -> vector<64x32xf32>
    %c0_86 = arith.constant 0 : index
    %c2_87 = arith.constant 2 : index
    %c0_88 = arith.constant 0 : index
    %c0_89 = arith.constant 0 : index
    %99 = vector.load %arg7[%c0_86, %c2_87, %c0_88, %c0_89] : memref<1x4x1x32xf32, #tpu.memory_space<vmem>>, vector<1x1x1x32xf32>
    %100 = vector.shape_cast %99 : vector<1x1x1x32xf32> to vector<1x32xf32>
    %101 = vector.broadcast %100 : vector<1x32xf32> to vector<64x32xf32>
    %102 = arith.addf %98, %101 : vector<64x32xf32>
    %103 = vector.shape_cast %88 : vector<64x32xf32> to vector<4x16x32xf32>
    %104 = vector.shape_cast %95 : vector<64x32xf32> to vector<4x16x32xf32>
    %105 = vector.shape_cast %102 : vector<64x32xf32> to vector<4x16x32xf32>
    "tpu.trace_start"() <{level = 10 : i32, message = "bqd,bkd->bqk"}> : () -> ()
    %cst_90 = arith.constant dense<0.000000e+00> : vector<4x16x16xf32>
    %106 = tpu.matmul %103, %104, %cst_90 {dimension_numbers = #tpu.dot_dimension_numbers<[2], [2], [1], [1], [0, 0, 0, 1, 1, 1], [0], [0]>} : vector<4x16x32xf32>, vector<4x16x32xf32>, vector<4x16x16xf32> -> vector<4x16x16xf32>
    "tpu.trace_stop"() : () -> ()
    %cst_91 = arith.constant 0.176776692 : f32
    %107 = vector.broadcast %cst_91 : f32 to vector<4x16x16xf32>
    %108 = arith.mulf %106, %107 : vector<4x16x16xf32>
    %cst_92 = arith.constant dense<0xFF800000> : vector<4x16xf32>
    %109 = vector.multi_reduction <maximumf>, %108, %cst_92 [2] : vector<4x16x16xf32> to vector<4x16xf32>
    %110 = vector.shape_cast %109 : vector<4x16xf32> to vector<4x16x1xf32>
    %111 = vector.broadcast %110 : vector<4x16x1xf32> to vector<4x16x16xf32>
    %112 = arith.subf %108, %111 : vector<4x16x16xf32>
    %113 = math.exp %112 : vector<4x16x16xf32>
    %cst_93 = arith.constant dense<0.000000e+00> : vector<4x16xf32>
    %114 = vector.multi_reduction <add>, %113, %cst_93 [2] : vector<4x16x16xf32> to vector<4x16xf32>
    %115 = vector.shape_cast %114 : vector<4x16xf32> to vector<4x16x1xf32>
    %116 = tpu.reciprocal %115 {approx = true} : vector<4x16x1xf32> -> vector<4x16x1xf32>
    %117 = vector.broadcast %116 : vector<4x16x1xf32> to vector<4x16x16xf32>
    %118 = arith.mulf %113, %117 : vector<4x16x16xf32>
    "tpu.trace_start"() <{level = 10 : i32, message = "bqk,bkd->bqd"}> : () -> ()
    %cst_94 = arith.constant dense<0.000000e+00> : vector<4x16x32xf32>
    %119 = tpu.matmul %118, %105, %cst_94 {dimension_numbers = #tpu.dot_dimension_numbers<[2], [1], [1], [2], [0, 0, 0, 1, 1, 2], [0], [0]>} : vector<4x16x16xf32>, vector<4x16x32xf32>, vector<4x16x32xf32> -> vector<4x16x32xf32>
    "tpu.trace_stop"() : () -> ()
    %120 = vector.shape_cast %119 : vector<4x16x32xf32> to vector<64x32xf32>
    %c0_95 = arith.constant 0 : index
    %c3 = arith.constant 3 : index
    %c0_96 = arith.constant 0 : index
    %c0_97 = arith.constant 0 : index
    %121 = vector.load %arg2[%c0_95, %c3, %c0_96, %c0_97] : memref<1x4x128x32xf32, #tpu.memory_space<vmem>>, vector<1x1x128x32xf32>
    %122 = vector.shape_cast %121 : vector<1x1x128x32xf32> to vector<128x32xf32>
    %cst_98 = arith.constant dense<0.000000e+00> : vector<64x32xf32>
    %123 = tpu.matmul %3, %122, %cst_98 {dimension_numbers = #tpu.dot_dimension_numbers<[1], [0], [0], [1], [0, 0, 1, 1], [], []>} : vector<64x128xf32>, vector<128x32xf32>, vector<64x32xf32> -> vector<64x32xf32>
    %c0_99 = arith.constant 0 : index
    %c3_100 = arith.constant 3 : index
    %c0_101 = arith.constant 0 : index
    %c0_102 = arith.constant 0 : index
    %124 = vector.load %arg3[%c0_99, %c3_100, %c0_101, %c0_102] : memref<1x4x1x32xf32, #tpu.memory_space<vmem>>, vector<1x1x1x32xf32>
    %125 = vector.shape_cast %124 : vector<1x1x1x32xf32> to vector<1x32xf32>
    %126 = vector.broadcast %125 : vector<1x32xf32> to vector<64x32xf32>
    %127 = arith.addf %123, %126 : vector<64x32xf32>
    %c0_103 = arith.constant 0 : index
    %c3_104 = arith.constant 3 : index
    %c0_105 = arith.constant 0 : index
    %c0_106 = arith.constant 0 : index
    %128 = vector.load %arg4[%c0_103, %c3_104, %c0_105, %c0_106] : memref<1x4x128x32xf32, #tpu.memory_space<vmem>>, vector<1x1x128x32xf32>
    %129 = vector.shape_cast %128 : vector<1x1x128x32xf32> to vector<128x32xf32>
    %cst_107 = arith.constant dense<0.000000e+00> : vector<64x32xf32>
    %130 = tpu.matmul %3, %129, %cst_107 {dimension_numbers = #tpu.dot_dimension_numbers<[1], [0], [0], [1], [0, 0, 1, 1], [], []>} : vector<64x128xf32>, vector<128x32xf32>, vector<64x32xf32> -> vector<64x32xf32>
    %c0_108 = arith.constant 0 : index
    %c3_109 = arith.constant 3 : index
    %c0_110 = arith.constant 0 : index
    %c0_111 = arith.constant 0 : index
    %131 = vector.load %arg5[%c0_108, %c3_109, %c0_110, %c0_111] : memref<1x4x1x32xf32, #tpu.memory_space<vmem>>, vector<1x1x1x32xf32>
    %132 = vector.shape_cast %131 : vector<1x1x1x32xf32> to vector<1x32xf32>
    %133 = vector.broadcast %132 : vector<1x32xf32> to vector<64x32xf32>
    %134 = arith.addf %130, %133 : vector<64x32xf32>
    %c0_112 = arith.constant 0 : index
    %c3_113 = arith.constant 3 : index
    %c0_114 = arith.constant 0 : index
    %c0_115 = arith.constant 0 : index
    %135 = vector.load %arg6[%c0_112, %c3_113, %c0_114, %c0_115] : memref<1x4x128x32xf32, #tpu.memory_space<vmem>>, vector<1x1x128x32xf32>
    %136 = vector.shape_cast %135 : vector<1x1x128x32xf32> to vector<128x32xf32>
    %cst_116 = arith.constant dense<0.000000e+00> : vector<64x32xf32>
    %137 = tpu.matmul %3, %136, %cst_116 {dimension_numbers = #tpu.dot_dimension_numbers<[1], [0], [0], [1], [0, 0, 1, 1], [], []>} : vector<64x128xf32>, vector<128x32xf32>, vector<64x32xf32> -> vector<64x32xf32>
    %c0_117 = arith.constant 0 : index
    %c3_118 = arith.constant 3 : index
    %c0_119 = arith.constant 0 : index
    %c0_120 = arith.constant 0 : index
    %138 = vector.load %arg7[%c0_117, %c3_118, %c0_119, %c0_120] : memref<1x4x1x32xf32, #tpu.memory_space<vmem>>, vector<1x1x1x32xf32>
    %139 = vector.shape_cast %138 : vector<1x1x1x32xf32> to vector<1x32xf32>
    %140 = vector.broadcast %139 : vector<1x32xf32> to vector<64x32xf32>
    %141 = arith.addf %137, %140 : vector<64x32xf32>
    %142 = vector.shape_cast %127 : vector<64x32xf32> to vector<4x16x32xf32>
    %143 = vector.shape_cast %134 : vector<64x32xf32> to vector<4x16x32xf32>
    %144 = vector.shape_cast %141 : vector<64x32xf32> to vector<4x16x32xf32>
    "tpu.trace_start"() <{level = 10 : i32, message = "bqd,bkd->bqk"}> : () -> ()
    %cst_121 = arith.constant dense<0.000000e+00> : vector<4x16x16xf32>
    %145 = tpu.matmul %142, %143, %cst_121 {dimension_numbers = #tpu.dot_dimension_numbers<[2], [2], [1], [1], [0, 0, 0, 1, 1, 1], [0], [0]>} : vector<4x16x32xf32>, vector<4x16x32xf32>, vector<4x16x16xf32> -> vector<4x16x16xf32>
    "tpu.trace_stop"() : () -> ()
    %cst_122 = arith.constant 0.176776692 : f32
    %146 = vector.broadcast %cst_122 : f32 to vector<4x16x16xf32>
    %147 = arith.mulf %145, %146 : vector<4x16x16xf32>
    %cst_123 = arith.constant dense<0xFF800000> : vector<4x16xf32>
    %148 = vector.multi_reduction <maximumf>, %147, %cst_123 [2] : vector<4x16x16xf32> to vector<4x16xf32>
    %149 = vector.shape_cast %148 : vector<4x16xf32> to vector<4x16x1xf32>
    %150 = vector.broadcast %149 : vector<4x16x1xf32> to vector<4x16x16xf32>
    %151 = arith.subf %147, %150 : vector<4x16x16xf32>
    %152 = math.exp %151 : vector<4x16x16xf32>
    %cst_124 = arith.constant dense<0.000000e+00> : vector<4x16xf32>
    %153 = vector.multi_reduction <add>, %152, %cst_124 [2] : vector<4x16x16xf32> to vector<4x16xf32>
    %154 = vector.shape_cast %153 : vector<4x16xf32> to vector<4x16x1xf32>
    %155 = tpu.reciprocal %154 {approx = true} : vector<4x16x1xf32> -> vector<4x16x1xf32>
    %156 = vector.broadcast %155 : vector<4x16x1xf32> to vector<4x16x16xf32>
    %157 = arith.mulf %152, %156 : vector<4x16x16xf32>
    "tpu.trace_start"() <{level = 10 : i32, message = "bqk,bkd->bqd"}> : () -> ()
    %cst_125 = arith.constant dense<0.000000e+00> : vector<4x16x32xf32>
    %158 = tpu.matmul %157, %144, %cst_125 {dimension_numbers = #tpu.dot_dimension_numbers<[2], [1], [1], [2], [0, 0, 0, 1, 1, 2], [0], [0]>} : vector<4x16x16xf32>, vector<4x16x32xf32>, vector<4x16x32xf32> -> vector<4x16x32xf32>
    "tpu.trace_stop"() : () -> ()
    %159 = vector.shape_cast %158 : vector<4x16x32xf32> to vector<64x32xf32>
    %160 = tpu.concatenate %42, %81, %120, %159 in 1 : vector<64x32xf32>, vector<64x32xf32>, vector<64x32xf32>, vector<64x32xf32> -> vector<64x128xf32>
    %c0_126 = arith.constant 0 : index
    %c0_127 = arith.constant 0 : index
    %c0_128 = arith.constant 0 : index
    %161 = vector.load %arg8[%c0_126, %c0_127, %c0_128] : memref<1x128x128xf32, #tpu.memory_space<vmem>>, vector<1x128x128xf32>
    %162 = vector.shape_cast %161 : vector<1x128x128xf32> to vector<128x128xf32>
    %cst_129 = arith.constant dense<0.000000e+00> : vector<64x128xf32>
    %163 = tpu.matmul %160, %162, %cst_129 {dimension_numbers = #tpu.dot_dimension_numbers<[1], [0], [0], [1], [0, 0, 1, 1], [], []>} : vector<64x128xf32>, vector<128x128xf32>, vector<64x128xf32> -> vector<64x128xf32>
    %c0_130 = arith.constant 0 : index
    %c0_131 = arith.constant 0 : index
    %c0_132 = arith.constant 0 : index
    %164 = vector.load %arg9[%c0_130, %c0_131, %c0_132] : memref<1x1x128xf32, #tpu.memory_space<vmem>>, vector<1x1x128xf32>
    %165 = vector.shape_cast %164 : vector<1x1x128xf32> to vector<1x128xf32>
    %166 = vector.broadcast %165 : vector<1x128xf32> to vector<64x128xf32>
    %167 = arith.addf %163, %166 : vector<64x128xf32>
    %168 = arith.addf %3, %167 : vector<64x128xf32>
    %c0_133 = arith.constant 0 : index
    %c0_134 = arith.constant 0 : index
    %c0_135 = arith.constant 0 : index
    %169 = vector.load %arg10[%c0_133, %c0_134, %c0_135] : memref<1x1x128xf32, #tpu.memory_space<vmem>>, vector<1x1x128xf32>
    %170 = vector.shape_cast %169 : vector<1x1x128xf32> to vector<1x128xf32>
    %c0_136 = arith.constant 0 : index
    %c0_137 = arith.constant 0 : index
    %c0_138 = arith.constant 0 : index
    %171 = vector.load %arg11[%c0_136, %c0_137, %c0_138] : memref<1x1x128xf32, #tpu.memory_space<vmem>>, vector<1x1x128xf32>
    %172 = vector.shape_cast %171 : vector<1x1x128xf32> to vector<1x128xf32>
    %cst_139 = arith.constant dense<0.000000e+00> : vector<128xf32>
    %173 = vector.multi_reduction <add>, %168, %cst_139 [0] : vector<64x128xf32> to vector<128xf32>
    %174 = vector.shape_cast %173 : vector<128xf32> to vector<1x128xf32>
    %cst_140 = arith.constant 6.400000e+01 : f32
    %175 = vector.broadcast %cst_140 : f32 to vector<1x128xf32>
    %176 = arith.divf %174, %175 : vector<1x128xf32>
    %177 = arith.mulf %168, %168 : vector<64x128xf32>
    %cst_141 = arith.constant dense<0.000000e+00> : vector<128xf32>
    %178 = vector.multi_reduction <add>, %177, %cst_141 [0] : vector<64x128xf32> to vector<128xf32>
    %179 = vector.shape_cast %178 : vector<128xf32> to vector<1x128xf32>
    %cst_142 = arith.constant 6.400000e+01 : f32
    %180 = vector.broadcast %cst_142 : f32 to vector<1x128xf32>
    %181 = arith.divf %179, %180 : vector<1x128xf32>
    %182 = arith.mulf %176, %176 : vector<1x128xf32>
    %183 = arith.subf %181, %182 : vector<1x128xf32>
    %184 = vector.broadcast %176 : vector<1x128xf32> to vector<64x128xf32>
    %185 = arith.subf %168, %184 : vector<64x128xf32>
    %cst_143 = arith.constant 9.99999974E-6 : f32
    %186 = vector.broadcast %cst_143 : f32 to vector<1x128xf32>
    %187 = arith.addf %183, %186 : vector<1x128xf32>
    %188 = math.rsqrt %187 : vector<1x128xf32>
    %189 = vector.broadcast %188 : vector<1x128xf32> to vector<64x128xf32>
    %190 = arith.mulf %185, %189 : vector<64x128xf32>
    %191 = vector.broadcast %170 : vector<1x128xf32> to vector<64x128xf32>
    %192 = arith.mulf %190, %191 : vector<64x128xf32>
    %193 = vector.broadcast %172 : vector<1x128xf32> to vector<64x128xf32>
    %194 = arith.addf %192, %193 : vector<64x128xf32>
    %c0_144 = arith.constant 0 : index
    %c0_145 = arith.constant 0 : index
    %c0_146 = arith.constant 0 : index
    %195 = vector.load %arg12[%c0_144, %c0_145, %c0_146] : memref<1x128x256xf32, #tpu.memory_space<vmem>>, vector<1x128x256xf32>
    %196 = vector.shape_cast %195 : vector<1x128x256xf32> to vector<128x256xf32>
    %cst_147 = arith.constant dense<0.000000e+00> : vector<64x256xf32>
    %197 = tpu.matmul %194, %196, %cst_147 {dimension_numbers = #tpu.dot_dimension_numbers<[1], [0], [0], [1], [0, 0, 1, 1], [], []>} : vector<64x128xf32>, vector<128x256xf32>, vector<64x256xf32> -> vector<64x256xf32>
    %c0_148 = arith.constant 0 : index
    %c0_149 = arith.constant 0 : index
    %c0_150 = arith.constant 0 : index
    %198 = vector.load %arg13[%c0_148, %c0_149, %c0_150] : memref<1x1x256xf32, #tpu.memory_space<vmem>>, vector<1x1x256xf32>
    %199 = vector.shape_cast %198 : vector<1x1x256xf32> to vector<1x256xf32>
    %200 = vector.broadcast %199 : vector<1x256xf32> to vector<64x256xf32>
    %201 = arith.addf %197, %200 : vector<64x256xf32>
    %cst_151 = arith.constant 5.000000e-01 : f32
    %202 = vector.broadcast %cst_151 : f32 to vector<64x256xf32>
    %203 = arith.mulf %202, %201 : vector<64x256xf32>
    %cst_152 = arith.constant 4.471500e-02 : f32
    %204 = vector.broadcast %cst_152 : f32 to vector<64x256xf32>
    %205 = arith.mulf %204, %201 : vector<64x256xf32>
    %206 = arith.mulf %205, %201 : vector<64x256xf32>
    %207 = arith.mulf %206, %201 : vector<64x256xf32>
    %208 = arith.addf %201, %207 : vector<64x256xf32>
    %cst_153 = arith.constant 0.797884583 : f32
    %209 = vector.broadcast %cst_153 : f32 to vector<64x256xf32>
    %210 = arith.mulf %209, %208 : vector<64x256xf32>
    %211 = math.tanh %210 : vector<64x256xf32>
    %cst_154 = arith.constant 1.000000e+00 : f32
    %212 = vector.broadcast %cst_154 : f32 to vector<64x256xf32>
    %213 = arith.addf %212, %211 : vector<64x256xf32>
    %214 = arith.mulf %203, %213 : vector<64x256xf32>
    %c0_155 = arith.constant 0 : index
    %c0_156 = arith.constant 0 : index
    %c0_157 = arith.constant 0 : index
    %215 = vector.load %arg14[%c0_155, %c0_156, %c0_157] : memref<1x256x128xf32, #tpu.memory_space<vmem>>, vector<1x256x128xf32>
    %216 = vector.shape_cast %215 : vector<1x256x128xf32> to vector<256x128xf32>
    %cst_158 = arith.constant dense<0.000000e+00> : vector<64x128xf32>
    %217 = tpu.matmul %214, %216, %cst_158 {dimension_numbers = #tpu.dot_dimension_numbers<[1], [0], [0], [1], [0, 0, 1, 1], [], []>} : vector<64x256xf32>, vector<256x128xf32>, vector<64x128xf32> -> vector<64x128xf32>
    %c0_159 = arith.constant 0 : index
    %c0_160 = arith.constant 0 : index
    %c0_161 = arith.constant 0 : index
    %218 = vector.load %arg15[%c0_159, %c0_160, %c0_161] : memref<1x1x128xf32, #tpu.memory_space<vmem>>, vector<1x1x128xf32>
    %219 = vector.shape_cast %218 : vector<1x1x128xf32> to vector<1x128xf32>
    %220 = vector.broadcast %219 : vector<1x128xf32> to vector<64x128xf32>
    %221 = arith.addf %217, %220 : vector<64x128xf32>
    %222 = arith.addf %194, %221 : vector<64x128xf32>
    %c0_162 = arith.constant 0 : index
    %c0_163 = arith.constant 0 : index
    %c0_164 = arith.constant 0 : index
    %223 = vector.load %arg16[%c0_162, %c0_163, %c0_164] : memref<1x1x128xf32, #tpu.memory_space<vmem>>, vector<1x1x128xf32>
    %224 = vector.shape_cast %223 : vector<1x1x128xf32> to vector<1x128xf32>
    %c0_165 = arith.constant 0 : index
    %c0_166 = arith.constant 0 : index
    %c0_167 = arith.constant 0 : index
    %225 = vector.load %arg17[%c0_165, %c0_166, %c0_167] : memref<1x1x128xf32, #tpu.memory_space<vmem>>, vector<1x1x128xf32>
    %226 = vector.shape_cast %225 : vector<1x1x128xf32> to vector<1x128xf32>
    %cst_168 = arith.constant dense<0.000000e+00> : vector<128xf32>
    %227 = vector.multi_reduction <add>, %222, %cst_168 [0] : vector<64x128xf32> to vector<128xf32>
    %228 = vector.shape_cast %227 : vector<128xf32> to vector<1x128xf32>
    %cst_169 = arith.constant 6.400000e+01 : f32
    %229 = vector.broadcast %cst_169 : f32 to vector<1x128xf32>
    %230 = arith.divf %228, %229 : vector<1x128xf32>
    %231 = arith.mulf %222, %222 : vector<64x128xf32>
    %cst_170 = arith.constant dense<0.000000e+00> : vector<128xf32>
    %232 = vector.multi_reduction <add>, %231, %cst_170 [0] : vector<64x128xf32> to vector<128xf32>
    %233 = vector.shape_cast %232 : vector<128xf32> to vector<1x128xf32>
    %cst_171 = arith.constant 6.400000e+01 : f32
    %234 = vector.broadcast %cst_171 : f32 to vector<1x128xf32>
    %235 = arith.divf %233, %234 : vector<1x128xf32>
    %236 = arith.mulf %230, %230 : vector<1x128xf32>
    %237 = arith.subf %235, %236 : vector<1x128xf32>
    %238 = vector.broadcast %230 : vector<1x128xf32> to vector<64x128xf32>
    %239 = arith.subf %222, %238 : vector<64x128xf32>
    %cst_172 = arith.constant 9.99999974E-6 : f32
    %240 = vector.broadcast %cst_172 : f32 to vector<1x128xf32>
    %241 = arith.addf %237, %240 : vector<1x128xf32>
    %242 = math.rsqrt %241 : vector<1x128xf32>
    %243 = vector.broadcast %242 : vector<1x128xf32> to vector<64x128xf32>
    %244 = arith.mulf %239, %243 : vector<64x128xf32>
    %245 = vector.broadcast %224 : vector<1x128xf32> to vector<64x128xf32>
    %246 = arith.mulf %244, %245 : vector<64x128xf32>
    %247 = vector.broadcast %226 : vector<1x128xf32> to vector<64x128xf32>
    %248 = arith.addf %246, %247 : vector<64x128xf32>
    %c0_173 = arith.constant 0 : index
    %c0_174 = arith.constant 0 : index
    %249 = vector.load %arg19[%c0_173, %c0_174] : memref<64x128xf32, #tpu.memory_space<vmem>>, vector<64x128xf32>
    tpu.vector_store %arg19[%c0_173, %c0_174], %248 {strides = array<i32>} : memref<64x128xf32, #tpu.memory_space<vmem>>, vector<64x128xf32>,
    %c1_i32 = arith.constant 1 : i32
    %250 = arith.cmpi eq, %arg0, %c1_i32 : i32
    %251 = arith.extui %250 : i1 to i32
    %c0_i32_175 = arith.constant 0 : i32
    %252 = arith.cmpi ne, %251, %c0_i32_175 : i32
    scf.if %252 {
      %c0_176 = arith.constant 0 : index
      %c0_177 = arith.constant 0 : index
      %253 = vector.load %arg18[%c0_176, %c0_177] : memref<64x128xf32, #tpu.memory_space<vmem>>, vector<64x128xf32>
      tpu.vector_store %arg18[%c0_176, %c0_177], %248 {strides = array<i32>} : memref<64x128xf32, #tpu.memory_space<vmem>>, vector<64x128xf32>,
    } else {
    }
    return
  }
  func.func @transform_0(%arg0: i32) -> (i32, i32) {
    %c0_i32 = arith.constant 0 : i32
    %c0_i32_0 = arith.constant 0 : i32
    %c0_i32_1 = arith.constant 0 : i32
    return %c0_i32, %c0_i32_0 : i32, i32
  }
  func.func @transform_1(%arg0: i32) -> (i32, i32, i32, i32) {
    %c0_i32 = arith.constant 0 : i32
    %c0_i32_0 = arith.constant 0 : i32
    %c0_i32_1 = arith.constant 0 : i32
    %c0_i32_2 = arith.constant 0 : i32
    return %arg0, %c0_i32, %c0_i32_0, %c0_i32_1 : i32, i32, i32, i32
  }
  func.func @transform_2(%arg0: i32) -> (i32, i32, i32, i32) {
    %c0_i32 = arith.constant 0 : i32
    %c0_i32_0 = arith.constant 0 : i32
    %c0_i32_1 = arith.constant 0 : i32
    %c0_i32_2 = arith.constant 0 : i32
    return %arg0, %c0_i32, %c0_i32_0, %c0_i32_1 : i32, i32, i32, i32
  }
  func.func @transform_3(%arg0: i32) -> (i32, i32, i32, i32) {
    %c0_i32 = arith.constant 0 : i32
    %c0_i32_0 = arith.constant 0 : i32
    %c0_i32_1 = arith.constant 0 : i32
    %c0_i32_2 = arith.constant 0 : i32
    return %arg0, %c0_i32, %c0_i32_0, %c0_i32_1 : i32, i32, i32, i32
  }
  func.func @transform_4(%arg0: i32) -> (i32, i32, i32, i32) {
    %c0_i32 = arith.constant 0 : i32
    %c0_i32_0 = arith.constant 0 : i32
    %c0_i32_1 = arith.constant 0 : i32
    %c0_i32_2 = arith.constant 0 : i32
    return %arg0, %c0_i32, %c0_i32_0, %c0_i32_1 : i32, i32, i32, i32
  }
  func.func @transform_5(%arg0: i32) -> (i32, i32, i32, i32) {
    %c0_i32 = arith.constant 0 : i32
    %c0_i32_0 = arith.constant 0 : i32
    %c0_i32_1 = arith.constant 0 : i32
    %c0_i32_2 = arith.constant 0 : i32
    return %arg0, %c0_i32, %c0_i32_0, %c0_i32_1 : i32, i32, i32, i32
  }
  func.func @transform_6(%arg0: i32) -> (i32, i32, i32, i32) {
    %c0_i32 = arith.constant 0 : i32
    %c0_i32_0 = arith.constant 0 : i32
    %c0_i32_1 = arith.constant 0 : i32
    %c0_i32_2 = arith.constant 0 : i32
    return %arg0, %c0_i32, %c0_i32_0, %c0_i32_1 : i32, i32, i32, i32
  }
  func.func @transform_7(%arg0: i32) -> (i32, i32, i32) {
    %c0_i32 = arith.constant 0 : i32
    %c0_i32_0 = arith.constant 0 : i32
    %c0_i32_1 = arith.constant 0 : i32
    return %arg0, %c0_i32, %c0_i32_0 : i32, i32, i32
  }
  func.func @transform_8(%arg0: i32) -> (i32, i32, i32) {
    %c0_i32 = arith.constant 0 : i32
    %c0_i32_0 = arith.constant 0 : i32
    %c0_i32_1 = arith.constant 0 : i32
    return %arg0, %c0_i32, %c0_i32_0 : i32, i32, i32
  }
  func.func @transform_9(%arg0: i32) -> (i32, i32, i32) {
    %c0_i32 = arith.constant 0 : i32
    %c0_i32_0 = arith.constant 0 : i32
    %c0_i32_1 = arith.constant 0 : i32
    return %arg0, %c0_i32, %c0_i32_0 : i32, i32, i32
  }
  func.func @transform_10(%arg0: i32) -> (i32, i32, i32) {
    %c0_i32 = arith.constant 0 : i32
    %c0_i32_0 = arith.constant 0 : i32
    %c0_i32_1 = arith.constant 0 : i32
    return %arg0, %c0_i32, %c0_i32_0 : i32, i32, i32
  }
  func.func @transform_11(%arg0: i32) -> (i32, i32, i32) {
    %c0_i32 = arith.constant 0 : i32
    %c0_i32_0 = arith.constant 0 : i32
    %c0_i32_1 = arith.constant 0 : i32
    return %arg0, %c0_i32, %c0_i32_0 : i32, i32, i32
  }
  func.func @transform_12(%arg0: i32) -> (i32, i32, i32) {
    %c0_i32 = arith.constant 0 : i32
    %c0_i32_0 = arith.constant 0 : i32
    %c0_i32_1 = arith.constant 0 : i32
    return %arg0, %c0_i32, %c0_i32_0 : i32, i32, i32
  }
  func.func @transform_13(%arg0: i32) -> (i32, i32, i32) {
    %c0_i32 = arith.constant 0 : i32
    %c0_i32_0 = arith.constant 0 : i32
    %c0_i32_1 = arith.constant 0 : i32
    return %arg0, %c0_i32, %c0_i32_0 : i32, i32, i32
  }
  func.func @transform_14(%arg0: i32) -> (i32, i32, i32) {
    %c0_i32 = arith.constant 0 : i32
    %c0_i32_0 = arith.constant 0 : i32
    %c0_i32_1 = arith.constant 0 : i32
    return %arg0, %c0_i32, %c0_i32_0 : i32, i32, i32
  }
  func.func @transform_15(%arg0: i32) -> (i32, i32, i32) {
    %c0_i32 = arith.constant 0 : i32
    %c0_i32_0 = arith.constant 0 : i32
    %c0_i32_1 = arith.constant 0 : i32
    return %arg0, %c0_i32, %c0_i32_0 : i32, i32, i32
  }
  func.func @transform_16(%arg0: i32) -> (i32, i32, i32) {
    %c0_i32 = arith.constant 0 : i32
    %c0_i32_0 = arith.constant 0 : i32
    %c0_i32_1 = arith.constant 0 : i32
    return %arg0, %c0_i32, %c0_i32_0 : i32, i32, i32
  }
  func.func @transform_17(%arg0: i32) -> (i32, i32) {
    %c0_i32 = arith.constant 0 : i32
    %c0_i32_0 = arith.constant 0 : i32
    %c0_i32_1 = arith.constant 0 : i32
    return %c0_i32, %c0_i32_0 : i32, i32
  }
}

</mosaic_0001>

<bundles_post_ra>
// kernel: tpu_custom_call.1
= control target key start
LH: loop header
LB: loop body
LE: loop exit
PB: predicated region body
PF: predicated region fallthrough
CT: control target
= control target key end

     0   :  { %s10464_s0 = inlined_call_operand.vmem [shape: f32[64,128], index: 0, kind: input, shape index: {}]   ;;  %s10465_s1 = inlined_call_operand.vmem [shape: f32[2,4,128,32], index: 1, kind: input, shape index: {}]   ;;  %s10466_s2 = inlined_call_operand.vmem [shape: f32[2,4,1,32], index: 2, kind: input, shape index: {}]   ;;  %s10467_s3 = inlined_call_operand.vmem [shape: f32[2,4,128,32], index: 3, kind: input, shape index: {}]   ;;  %s10468_s4 = inlined_call_operand.vmem [shape: f32[2,4,1,32], index: 4, kind: input, shape index: {}]   ;;  %s10469_s5 = inlined_call_operand.vmem [shape: f32[2,4,128,32], index: 5, kind: input, shape index: {}]   ;;  %s10470_s6 = inlined_call_operand.vmem [shape: f32[2,4,1,32], index: 6, kind: input, shape index: {}]   ;;  %s10471_s7 = inlined_call_operand.vmem [shape: f32[2,128,128], index: 7, kind: input, shape index: {}]   ;;  %s10472_s8 = inlined_call_operand.vmem [shape: f32[2,1,128], index: 8, kind: input, shape index: {}]   ;;  %s10473_s9 = inlined_call_operand.vmem [shape: f32[2,1,128], index: 9, kind: input, shape index: {}]   ;;  %s10474_s10 = inlined_call_operand.vmem [shape: f32[2,1,128], index: 10, kind: input, shape index: {}]   ;;  %s10475_s11 = inlined_call_operand.vmem [shape: f32[2,128,256], index: 11, kind: input, shape index: {}]   ;;  %s10476_s12 = inlined_call_operand.vmem [shape: f32[2,1,256], index: 12, kind: input, shape index: {}]   ;;  %s10477_s13 = inlined_call_operand.vmem [shape: f32[2,256,128], index: 13, kind: input, shape index: {}]   ;;  %s10478_s14 = inlined_call_operand.vmem [shape: f32[2,1,128], index: 14, kind: input, shape index: {}]   ;;  %s10479_s15 = inlined_call_operand.vmem [shape: f32[2,1,128], index: 15, kind: input, shape index: {}]   ;;  %s10480_s16 = inlined_call_operand.vmem [shape: f32[2,1,128], index: 16, kind: input, shape index: {}]   ;;  %s10481_s17 = inlined_call_operand.hbm [shape: f32[64,128], index: 17, kind: output, shape index: {}]  }
   0x1   :  { %10490 = sst [smem:[#allocation11_spill]] %s10464_s0 }
   0x2   :  { %10491 = sst [smem:[#allocation12_spill]] %s10465_s1 }
   0x3   :  { %10492 = sst [smem:[#allocation13_spill]] %s10466_s2 }
   0x4   :  { %10493 = sst [smem:[#allocation14_spill]] %s10467_s3 }
   0x5   :  { %10494 = sst [smem:[#allocation15_spill]] %s10468_s4 }
   0x6   :  { %10495 = sst [smem:[#allocation16_spill]] %s10469_s5 }
   0x7   :  { %10496 = sst [smem:[#allocation17_spill]] %s10470_s6 }
   0x8   :  { %10497 = sst [smem:[#allocation18_spill]] %s10471_s7 }
   0x9   :  { %10498 = sst [smem:[#allocation19_spill]] %s10475_s11 }
   0xa   :  { %10499 = sst [smem:[#allocation20_spill]] %s10481_s17 }
   0xb   :  { %22 = vsyncpa [#allocation4], 0  ;;  %s9200_s24 = smov 0  }
   0xc LB: > { %10500 = sst [smem:[#allocation6_spill]] %s9101_s24  ;;  %s9206_s25 = sadd.s32 4294967295, %s9101_s24   ;;  %s9101_s24 = sphi %s9200_s24, %s28_s24  }
   0xd   : > { %10501 = sst [smem:[#allocation7_spill]] %s9206_s25  ;;  %p6560_p0 = scmp.ge.s32.totalorder %s9101_s24, 1 }
   0xe   : > { %p617_p1 = scmp.lt.s32.totalorder %s9101_s24, 3 }
  0x10   : > { %p618_p2 = pnand %p6560_p0, %p617_p1 }
  0x12   : > { %621 = sbr.rel (%p618_p2) target bundleno = 4473 (0x1179), region = 88 }
  0x19   : > { %p723_p3 = scmp.lt.s32.totalorder %s9206_s25, 1  ;;  %s10502_s30 = sld [smem:[#allocation12_spill]] }
  0x1a   : > { %s10504_s2 = sld [smem:[#allocation13_spill]]  ;;  %s10506_s3 = sld [smem:[#allocation14_spill]] }
  0x1b   : > { %s9212_s26 = scalar_select %p723_p3, %s9206_s25, 1 }
  0x1c   : > { %s10507_s4 = sld [smem:[#allocation15_spill]]  ;;  %s10509_s5 = sld [smem:[#allocation16_spill]] }
  0x1d   : > { %s6850_s27 = sshll.u32 %s9212_s26, 9  ;;  %s6563_s28 = sshll.u32 %s9212_s26, 2 }
  0x1e   : > { %s10510_s6 = sld [smem:[#allocation17_spill]]  ;;  %s6853_s21 = sshll.u32 %s9212_s26, 7 }
  0x1f   : > { %s9219_s18 = scalar_lea.vmem %s10502_s30, %s6850_s27  ;;  %s10511_s7 = sld [smem:[#allocation18_spill]] }
  0x20   : > { %10503 = sst [smem:[#allocation8_spill]] %s9219_s18  ;;  %s9224_s20 = scalar_lea.vmem %s10504_s2, %s6563_s28 }
  0x21   : > { %10505 = sst [smem:[#allocation9_spill]] %s9224_s20  ;;  %s9229_s23 = scalar_lea.vmem %s10506_s3, %s6850_s27 }
  0x22   : > { %s9234_s25 = scalar_lea.vmem %s10507_s4, %s6563_s28  ;;  %s9239_s30 = scalar_lea.vmem %s10509_s5, %s6850_s27 }
  0x23   : > { %10508 = sst [smem:[#allocation10_spill]] %s9234_s25  ;;  %s10512_s11 = sld [smem:[#allocation19_spill]] }
  0x24   : > { %s9244_s2 = scalar_lea.vmem %s10510_s6, %s6563_s28  ;;  %s6854_s28 = sshll.u32 %s9212_s26, 8 }
  0x25   : > { %s9254_s24 = scalar_lea.vmem %s10511_s7, %s6853_s21  ;;  %s6574_s3 = sshll.u32 %s9212_s26, 1 }
  0x26   : > { %s9274_s18 = scalar_lea.vmem %s10476_s12, %s6574_s3  ;;  %s9279_s4 = scalar_lea.vmem %s10477_s13, %s6854_s28 }
  0x27   : > { %s780_s0 = scalar_lea.vmem %s10478_s14, %s9212_s26  ;;  %s783_s5 = scalar_lea.vmem %s10479_s15, %s9212_s26 }
  0x28   : > { %s10513_s20 = sld [smem:[#allocation7_spill]] }
  0x29   : > { %s9268_s6 = scalar_lea.vmem %s10512_s11, %s6854_s28  ;;  %s786_s11 = scalar_lea.vmem %s10480_s16, %s9212_s26 }
  0x2e   : > { %p6577_p4 = scmp.ne.s32.totalorder %s10513_s20, 0 }
  0x2f   : > { %s10514_s21 = sld [smem:[#allocation11_spill]] (!%p6577_p4) }
  0x30   : > { %790 = sbr.rel (%p6577_p4) target bundleno = 58 (0x3a), region = 92 }
  0x35   : > { %v791_v0 = vld [vmem:[%s10514_s21] sm:$0xff] (!%p6577_p4)  ;;  %v792_v1 = vld [vmem:[%s10514_s21 + $0x8] sm:$0xff] (!%p6577_p4)  ;;  %v793_v2 = vld [vmem:[%s10514_s21 + $0x10] sm:$0xff] (!%p6577_p4) }
  0x36   : > { %799 = vst [vmem:[#allocation2] sm:$0xff] (!%p6577_p4), %v791_v0  ;;  %800 = vst [vmem:[#allocation2 + $0x8] sm:$0xff] (!%p6577_p4), %v792_v1  ;;  %v794_v3 = vld [vmem:[%s10514_s21 + $0x18] sm:$0xff] (!%p6577_p4)  ;;  %v795_v4 = vld [vmem:[%s10514_s21 + $0x20] sm:$0xff] (!%p6577_p4) }
  0x37   : > { %801 = vst [vmem:[#allocation2 + $0x10] sm:$0xff] %v793_v2  ;;  %v796_v5 = vld [vmem:[%s10514_s21 + $0x28] sm:$0xff]  ;;  %802 = vst [vmem:[#allocation2 + $0x18] sm:$0xff] %v794_v3  ;;  %v797_v6 = vld [vmem:[%s10514_s21 + $0x30] sm:$0xff] }
  0x38   : > { %803 = vst [vmem:[#allocation2 + $0x20] sm:$0xff] %v795_v4  ;;  %804 = vst [vmem:[#allocation2 + $0x28] sm:$0xff] %v796_v5  ;;  %v798_v7 = vld [vmem:[%s10514_s21 + $0x38] sm:$0xff] }
  0x39   : > { %805 = vst [vmem:[#allocation2 + $0x30] sm:$0xff] %v797_v6  ;;  %806 = vst [vmem:[#allocation2 + $0x38] sm:$0xff] %v798_v7 }
  0x3a PF: > { %s10515_s29 = sld [smem:[#allocation8_spill]]  ;;  %v943_v8 = vld [vmem:[%s9229_s23] sm:$0xff]  ;;  %v944_v9 = vld [vmem:[%s9229_s23 + $0x8] sm:$0xff]  ;;  %v945_v10 = vld [vmem:[%s9229_s23 + $0x10] sm:$0xff]  ;;  %s10516_s7 = sld [smem:[#allocation10_spill]]  ;;  %vm1199_vm0 = vcmask 261120  }
  0x3b   : > { %v8180_v11 = vpack.c.bf16 %v944_v9, %v943_v8  ;;  %v946_v12 = vld [vmem:[%s9229_s23 + $0x18] sm:$0xff]  ;;  %v947_v13 = vld [vmem:[%s9229_s23 + $0x20] sm:$0xff]  ;;  %v948_v15 = vld [vmem:[%s9229_s23 + $0x28] sm:$0xff]  ;;  %s10517_s27 = sld [smem:[#allocation9_spill]]  ;;  %vm1556_vm2 = vcmask 130048   ;;  %vm5547_vm3 = vcmask 523264   ;;  %s10520_s1 = scalar_lea.vmem %s10472_s8, %s9212_s26 }
  0x3c   : > { %v8184_v14 = vpack.c.bf16 %v946_v12, %v945_v10  ;;  %v8188_v23 = vpack.c.bf16 %v948_v15, %v947_v13  ;;  %v949_v25 = vld [vmem:[%s9229_s23 + $0x30] sm:$0xff]  ;;  %v950_v26 = vld [vmem:[%s9229_s23 + $0x38] sm:$0xff]  ;;  %v951_v32 = vld [vmem:[%s9229_s23 + $0x40] sm:$0xff]  ;;  %vm5556_vm4 = vcmask 785408   ;;  %s10521_s3 = scalar_lea.vmem %s10473_s9, %s9212_s26  ;;  %s10522_s17 = scalar_lea.vmem %s10474_s10, %s9212_s26 }
  0x3d   : > { %8181 = vmatprep.subr.bf16.mxu1 %v8180_v11  ;;  %v8192_v30 = vpack.c.bf16 %v950_v26, %v949_v25  ;;  %v952_v33 = vld [vmem:[%s9229_s23 + $0x48] sm:$0xff]  ;;  %v953_v38 = vld [vmem:[%s9229_s23 + $0x50] sm:$0xff]  ;;  %v954_v39 = vld [vmem:[%s9229_s23 + $0x58] sm:$0xff] }
  0x3e   : > { %8183 = vmatpush3.bf16.msra.mxu1 %v8180_v11  ;;  %v8196_v37 = vpack.c.bf16 %v952_v33, %v951_v32  ;;  %v8200_v43 = vpack.c.bf16 %v954_v39, %v953_v38  ;;  %v955_v44 = vld [vmem:[%s9229_s23 + $0x60] sm:$0xff]  ;;  %v956_v45 = vld [vmem:[%s9229_s23 + $0x68] sm:$0xff]  ;;  %v957_v50 = vld [vmem:[%s9229_s23 + $0x70] sm:$0xff] }
  0x3f   : > { %8185 = vmatprep.subr.bf16.mxu1 %v8184_v14  ;;  %v8204_v49 = vpack.c.bf16 %v956_v45, %v955_v44  ;;  %v958_v51 = vld [vmem:[%s9229_s23 + $0x78] sm:$0xff]  ;;  %v9363_v60 = vld [vmem:[#allocation2 + $0x20] sm:$0xff]  ;;  %v9368_v61 = vld [vmem:[#allocation2 + $0x28] sm:$0xff] }
  0x40   : > { %v815_v16 = vld [vmem:[%s10515_s29] sm:$0xff]  ;;  %v816_v17 = vld [vmem:[%s10515_s29 + $0x8] sm:$0xff]  ;;  %v817_v19 = vld [vmem:[%s10515_s29 + $0x10] sm:$0xff]  ;;  %v8208_v55 = vpack.c.bf16 %v958_v51, %v957_v50 }
  0x41   : > { %v8148_v18 = vpack.c.bf16 %v816_v17, %v815_v16  ;;  %v818_v20 = vld [vmem:[%s10515_s29 + $0x18] sm:$0xff]  ;;  %v819_v22 = vld [vmem:[%s10515_s29 + $0x20] sm:$0xff]  ;;  %v820_v24 = vld [vmem:[%s10515_s29 + $0x28] sm:$0xff] }
  0x42   : > { %v8152_v21 = vpack.c.bf16 %v818_v20, %v817_v19  ;;  %v8156_v27 = vpack.c.bf16 %v820_v24, %v819_v22  ;;  %8187 = vmatpush3.bf16.msra.mxu1 %v8184_v14  ;;  %v821_v28 = vld [vmem:[%s10515_s29 + $0x30] sm:$0xff]  ;;  %v822_v29 = vld [vmem:[%s10515_s29 + $0x38] sm:$0xff]  ;;  %v9334_v31 = vld [vmem:[#allocation2] sm:$0xff] }
  0x43   : > { %8149 = vmatprep.subr.bf16.mxu0 %v8148_v18  ;;  %8189 = vmatprep.subr.bf16.mxu1 %v8188_v23  ;;  %v8160_v34 = vpack.c.bf16 %v822_v29, %v821_v28  ;;  %v823_v35 = vld [vmem:[%s10515_s29 + $0x40] sm:$0xff]  ;;  %v824_v36 = vld [vmem:[%s10515_s29 + $0x48] sm:$0xff]  ;;  %v825_v41 = vld [vmem:[%s10515_s29 + $0x50] sm:$0xff] }
  0x44   : > { %8151 = vmatpush3.bf16.msra.mxu0 %v8148_v18  ;;  %7428 = vmatprep.mubr.f32.mxu1 %v9334_v31  ;;  %v8164_v40 = vpack.c.bf16 %v824_v36, %v823_v35  ;;  %v826_v42 = vld [vmem:[%s10515_s29 + $0x58] sm:$0xff]  ;;  %v827_v47 = vld [vmem:[%s10515_s29 + $0x60] sm:$0xff]  ;;  %v828_v48 = vld [vmem:[%s10515_s29 + $0x68] sm:$0xff] }
  0x45   : > { %8153 = vmatprep.subr.bf16.mxu0 %v8152_v21  ;;  %7384 = vmatprep.mubr.f32.mxu0 %v9334_v31  ;;  %v8168_v46 = vpack.c.bf16 %v826_v42, %v825_v41  ;;  %v8172_v52 = vpack.c.bf16 %v828_v48, %v827_v47  ;;  %v829_v53 = vld [vmem:[%s10515_s29 + $0x70] sm:$0xff]  ;;  %v830_v54 = vld [vmem:[%s10515_s29 + $0x78] sm:$0xff]  ;;  %v9354_v57 = vld [vmem:[#allocation2 + $0x8] sm:$0xff] }
  0x46   : > { %8191 = vmatpush3.bf16.msra.mxu1 %v8188_v23  ;;  %v8176_v56 = vpack.c.bf16 %v830_v54, %v829_v53  ;;  %v9356_v58 = vld [vmem:[#allocation2 + $0x10] sm:$0xff]  ;;  %v9360_v59 = vld [vmem:[#allocation2 + $0x18] sm:$0xff]  ;;  %v6579_v0 = vld [vmem:[%s10516_s7] ss:$0 sm:$0xff] }
  0x47   : > { %8193 = vmatprep.subr.bf16.mxu1 %v8192_v30  ;;  %v9371_v62 = vld [vmem:[#allocation2 + $0x30] sm:$0xff]  ;;  %v9376_v63 = vld [vmem:[#allocation2 + $0x38] sm:$0xff]  ;;  %v6578_v4 = vld [vmem:[%s10517_s27] ss:$0 sm:$0xff] }
  0x48   : > { %8155 = vmatpush3.bf16.msra.mxu0 %v8152_v21  ;;  %vm9387_vm1 = vmpackc.low %vm1199_vm0, %vm1199_vm0  ;;  %v1072_v41 = vld [vmem:[%s9239_s30 + $0x8] sm:$0xff]  ;;  %v1073_v42 = vld [vmem:[%s9239_s30 + $0x10] sm:$0xff] }
  0x49   : > { %8157 = vmatprep.subr.bf16.mxu0 %v8156_v27  ;;  %v1074_v44 = vld [vmem:[%s9239_s30 + $0x18] sm:$0xff]  ;;  %v1076_v47 = vld [vmem:[%s9239_s30 + $0x28] sm:$0xff] }
  0x4a   : > { %8195 = vmatpush3.bf16.msra.mxu1 %v8192_v30  ;;  %v8216_v45 = vpack.c.bf16 %v1074_v44, %v1073_v42  ;;  %v1078_v50 = vld [vmem:[%s9239_s30 + $0x38] sm:$0xff]  ;;  %v1080_v53 = vld [vmem:[%s9239_s30 + $0x48] sm:$0xff] }
  0x4b   : > { %8197 = vmatprep.subr.bf16.mxu1 %v8196_v37 }
  0x4c   : > { %8159 = vmatpush3.bf16.msra.mxu0 %v8156_v27 }
  0x4d   : > { %8161 = vmatprep.subr.bf16.mxu0 %v8160_v34 }
  0x4e   : > { %8199 = vmatpush3.bf16.msra.mxu1 %v8196_v37 }
  0x4f   : > { %8201 = vmatprep.subr.bf16.mxu1 %v8200_v43 }
  0x50   : > { %8163 = vmatpush3.bf16.msra.mxu0 %v8160_v34 }
  0x51   : > { %8165 = vmatprep.subr.bf16.mxu0 %v8164_v40 }
  0x52   : > { %8203 = vmatpush3.bf16.msra.mxu1 %v8200_v43 }
  0x53   : > { %8205 = vmatprep.subr.bf16.mxu1 %v8204_v49 }
  0x54   : > { %8167 = vmatpush3.bf16.msra.mxu0 %v8164_v40  ;;  %v1071_v40 = vld [vmem:[%s9239_s30] sm:$0xff] }
  0x55   : > { %8169 = vmatprep.subr.bf16.mxu0 %v8168_v46  ;;  %v8212_v43 = vpack.c.bf16 %v1072_v41, %v1071_v40 }
  0x56   : > { %8207 = vmatpush3.bf16.msra.mxu1 %v8204_v49  ;;  %v1077_v49 = vld [vmem:[%s9239_s30 + $0x30] sm:$0xff] }
  0x57   : > { %8209 = vmatprep.subr.bf16.mxu1 %v8208_v55  ;;  %v8224_v51 = vpack.c.bf16 %v1078_v50, %v1077_v49 }
  0x58   : > { %8171 = vmatpush3.bf16.msra.mxu0 %v8168_v46  ;;  %v1075_v46 = vld [vmem:[%s9239_s30 + $0x20] sm:$0xff] }
  0x59   : > { %8173 = vmatprep.subr.bf16.mxu0 %v8172_v52  ;;  %v8220_v48 = vpack.c.bf16 %v1076_v47, %v1075_v46 }
  0x5a   : > { %8211 = vmatpush3.bf16.msra.mxu1 %v8208_v55  ;;  %v1081_v55 = vld [vmem:[%s9239_s30 + $0x50] sm:$0xff] }
  0x5c   : > { %8175 = vmatpush3.bf16.msra.mxu0 %v8172_v52  ;;  %v1079_v52 = vld [vmem:[%s9239_s30 + $0x40] sm:$0xff] }
  0x5d   : > { %8177 = vmatprep.subr.bf16.mxu0 %v8176_v56  ;;  %7429 = vmatmul.mubr.f32.vlgmr.msra.gmra.mrb[0].mxu1 %v9354_v57  ;;  %v8228_v54 = vpack.c.bf16 %v1080_v53, %v1079_v52 }
  0x5e   : > { %7431 = vmatprep.mubr.f32.mxu1 %v9356_v58 }
  0x60   : > { %8179 = vmatpush3.bf16.msra.mxu0 %v8176_v56  ;;  %v1082_v56 = vld [vmem:[%s9239_s30 + $0x58] sm:$0xff] }
  0x61   : > { %7432 = vmatmul.mubr.f32.gmra.mrb[2].mxu1 %v9360_v59  ;;  %8213 = vmatprep.subr.bf16.mxu0 %v8212_v43 }
  0x62   : > { %7434 = vmatprep.mubr.f32.mxu1 %v9363_v60 }
  0x63   : > { %7385 = vmatmul.mubr.f32.vlgmr.msra.gmra.mrb[0].mxu0 %v9354_v57 }
  0x64   : > { %7387 = vmatprep.mubr.f32.mxu0 %v9356_v58  ;;  %8215 = vmatpush3.bf16.msra.mxu0 %v8212_v43 }
  0x65   : > { %7435 = vmatmul.mubr.f32.gmra.mrb[4].mxu1 %v9368_v61  ;;  %8217 = vmatprep.subr.bf16.mxu0 %v8216_v45 }
  0x66   : > { %7437 = vmatprep.mubr.f32.mxu1 %v9371_v62 }
  0x67   : > { %7388 = vmatmul.mubr.f32.gmra.mrb[2].mxu0 %v9360_v59 }
  0x68   : > { %7390 = vmatprep.mubr.f32.mxu0 %v9363_v60  ;;  %8219 = vmatpush3.bf16.msra.mxu0 %v8216_v45 }
  0x69   : > { %7438 = vmatmul.mubr.f32.gmra.mrb[6].mxu1 %v9376_v63  ;;  %8221 = vmatprep.subr.bf16.mxu0 %v8220_v48 }
  0x6b   : > { %7391 = vmatmul.mubr.f32.gmra.mrb[4].mxu0 %v9368_v61 }
  0x6c   : > { %7393 = vmatprep.mubr.f32.mxu0 %v9371_v62  ;;  %8223 = vmatpush3.bf16.msra.mxu0 %v8220_v48 }
  0x6d   : > { %8225 = vmatprep.subr.bf16.mxu0 %v8224_v51 }
  0x6f   : > { %7394 = vmatmul.mubr.f32.gmra.mrb[6].mxu0 %v9376_v63 }
  0x70   : > { %7472 = vmatprep.mubr.f32.mxu0 %v9334_v31  ;;  %8227 = vmatpush3.bf16.msra.mxu0 %v8224_v51 }
  0x71   : > { %8229 = vmatprep.subr.bf16.mxu0 %v8228_v54 }
  0x74   : > { %8231 = vmatpush3.bf16.msra.mxu0 %v8228_v54 }
 0x130   : > { %v7430_v1 = vpop.f32.mrb[0].mxu1 }
 0x131   : > { %v1038_v2 = vadd.f32 %v7430_v1, %v6579_v0  ;;  %v1032_v3 = vpop.f32.mrb[1].mxu1  ;;  %v1083_v1 = vld [vmem:[%s9239_s30 + $0x60] sm:$0xff] }
 0x132   : > { %v1033_v5 = vadd.f32 %v6579_v0, %v1032_v3 }
 0x134   : > { %v8244_v9 = vpack.c.bf16 %v1038_v2, %v1033_v5  ;;  %v7433_v10 = vpop.f32.mrb[2].mxu1  ;;  %v1084_v2 = vld [vmem:[%s9239_s30 + $0x68] sm:$0xff]  ;;  %v1086_v5 = vld [vmem:[%s9239_s30 + $0x78] sm:$0xff] }
 0x135   : > { %v1048_v12 = vadd.f32 %v7433_v10, %v6579_v0  ;;  %v1042_v13 = vpop.f32.mrb[3].mxu1  ;;  %v8236_v3 = vpack.c.bf16 %v1084_v2, %v1083_v1 }
 0x136   : > { %v7386_v6 = vpop.f32.mrb[0].mxu0  ;;  %8246 = vmatprep.subr.msk.bf16.mxu1 %vm9387_vm1, %v8244_v9  ;;  %v1043_v14 = vadd.f32 %v6579_v0, %v1042_v13 }
 0x137   : > { %v904_v8 = vpop.f32.mrb[1].mxu0  ;;  %8249 = vmatpush3.bf16.xpose.msk.msra.mxu1 %vm9387_vm1, %v8244_v9  ;;  %v910_v21 = vadd.f32 %v7386_v6, %v6578_v4 }
 0x138   : > { %v905_v11 = vadd.f32 %v6578_v4, %v904_v8  ;;  %v8250_v17 = vpack.c.bf16 %v1048_v12, %v1043_v14  ;;  %v7436_v18 = vpop.f32.mrb[4].mxu1 }
 0x139   : > { %v1058_v19 = vadd.f32 %v7436_v18, %v6579_v0  ;;  %v1052_v20 = vpop.f32.mrb[5].mxu1 }
 0x13a   : > { %7488 = vmatprep.mubr.msk.f32.mxu1 %vm1199_vm0, %v905_v11  ;;  %v7389_v15 = vpop.f32.mrb[2].mxu0  ;;  %8252 = vmatprep.subr.msk.bf16.mxu1 %vm9387_vm1, %v8250_v17  ;;  %v1053_v22 = vadd.f32 %v6579_v0, %v1052_v20 }
 0x13b   : > { %v914_v16 = vpop.f32.mrb[3].mxu0  ;;  %v920_v35 = vadd.f32 %v7389_v15, %v6578_v4 }
 0x13c   : > { %v915_v24 = vadd.f32 %v6578_v4, %v914_v16  ;;  %v8256_v26 = vpack.c.bf16 %v1058_v19, %v1053_v22  ;;  %v7439_v27 = vpop.f32.mrb[6].mxu1 }
 0x13d   : > { %v1068_v28 = vadd.f32 %v7439_v27, %v6579_v0  ;;  %v1062_v29 = vpop.f32.mrb[7].mxu1 }
 0x13e   : > { %v7392_v23 = vpop.f32.mrb[4].mxu0  ;;  %7489 = vmatmul.mubr.msk.f32.vlgmr.msra.gmra.mrb[8].mxu1 %vm1199_vm0, %v910_v21  ;;  %v1063_v30 = vadd.f32 %v6579_v0, %v1062_v29  ;;  %v8232_v0 = vpack.c.bf16 %v1082_v56, %v1081_v55 }
 0x13f   : > { %v924_v25 = vpop.f32.mrb[5].mxu0  ;;  %8255 = vmatpush3.bf16.xpose.msk.msra.mxu1 %vm9387_vm1, %v8250_v17  ;;  %7495 = vmatprep.mubr.msk.f32.mxu1 %vm1199_vm0, %v915_v24  ;;  %v930_v37 = vadd.f32 %v7392_v23, %v6578_v4 }
 0x140   : > { %8258 = vmatprep.subr.msk.bf16.mxu1 %vm9387_vm1, %v8256_v26  ;;  %v8262_v34 = vpack.c.bf16 %v1068_v28, %v1063_v30  ;;  %v925_v36 = vadd.f32 %v6578_v4, %v924_v25  ;;  %8233 = vmatprep.subr.bf16.mxu0 %v8232_v0 }
 0x141   : > { %8235 = vmatpush3.bf16.msra.mxu0 %v8232_v0 }
 0x142   : > { %v7395_v32 = vpop.f32.mrb[6].mxu0  ;;  %8237 = vmatprep.subr.bf16.mxu0 %v8236_v3 }
 0x143   : > { %v934_v33 = vpop.f32.mrb[7].mxu0  ;;  %v940_v39 = vadd.f32 %v7395_v32, %v6578_v4 }
 0x144   : > { %v935_v38 = vadd.f32 %v6578_v4, %v934_v33  ;;  %v1085_v4 = vld [vmem:[%s9239_s30 + $0x70] sm:$0xff] }
 0x145   : > { %v8240_v6 = vpack.c.bf16 %v1086_v5, %v1085_v4  ;;  %8239 = vmatpush3.bf16.msra.mxu0 %v8236_v3 }
 0x146   : > { %7496 = vmatmul.mubr.msk.f32.vlgmr.msra.gmra.mrb[10].mxu1 %vm1199_vm0, %v920_v35 }
 0x147   : > { %8261 = vmatpush3.bf16.xpose.msk.msra.mxu1 %vm9387_vm1, %v8256_v26  ;;  %7502 = vmatprep.mubr.msk.f32.mxu1 %vm1199_vm0, %v925_v36 }
 0x148   : > { %8264 = vmatprep.subr.msk.bf16.mxu1 %vm9387_vm1, %v8262_v34  ;;  %8241 = vmatprep.subr.bf16.mxu0 %v8240_v6 }
 0x149   : > { %8243 = vmatpush3.bf16.msra.mxu0 %v8240_v6 }
 0x14c   : > { %7473 = vmatmul.mubr.f32.vlgmr.msra.gmra.mrb[8].mxu0 %v9354_v57 }
 0x14d   : > { %7475 = vmatprep.mubr.f32.mxu0 %v9356_v58 }
 0x14e   : > { %7503 = vmatmul.mubr.msk.f32.vlgmr.msra.gmra.mrb[12].mxu1 %vm1199_vm0, %v930_v37 }
 0x14f   : > { %8267 = vmatpush3.bf16.xpose.msk.msra.mxu1 %vm9387_vm1, %v8262_v34  ;;  %7509 = vmatprep.mubr.msk.f32.mxu1 %vm1199_vm0, %v935_v38 }
 0x150   : > { %7476 = vmatmul.mubr.f32.gmra.mrb[10].mxu0 %v9360_v59 }
 0x151   : > { %7478 = vmatprep.mubr.f32.mxu0 %v9363_v60 }
 0x154   : > { %7479 = vmatmul.mubr.f32.gmra.mrb[12].mxu0 %v9368_v61 }
 0x155   : > { %7481 = vmatprep.mubr.f32.mxu0 %v9371_v62 }
 0x156   : > { %7510 = vmatmul.mubr.msk.f32.vlgmr.msra.gmra.mrb[14].mxu1 %vm1199_vm0, %v940_v39 }
 0x158   : > { %7482 = vmatmul.mubr.f32.gmra.mrb[14].mxu0 %v9376_v63 }
 0x211   : > { %v7490_v8 = vpop.f32.mrb[8].mxu1 }
 0x212   : > { %v1278_v9 = vpop.f32.mrb[9].mxu1  ;;  %v1549_v27 = vmul.f32 0.17677669, %v7490_v8 }
 0x213   : > { %v1548_v15 = vmul.f32 0.17677669, %v1278_v9 }
 0x214   : > { %v1560_v30 = vsel %vm1556_vm2, %v1549_v27, -inf }
 0x215   : > { %v1557_v20 = vsel %vm1556_vm2, %v1548_v15, -inf }
 0x219   : > { %v7497_v10 = vpop.f32.mrb[10].mxu1 }
 0x21a   : > { %v1365_v11 = vpop.f32.mrb[11].mxu1  ;;  %v1551_v13 = vmul.f32 0.17677669, %v7497_v10 }
 0x21b   : > { %v1550_v12 = vmul.f32 0.17677669, %v1365_v11 }
 0x21c   : > { %v1566_v17 = vsel %vm1556_vm2, %v1551_v13, -inf }
 0x21d   : > { %v1563_v14 = vsel %vm1556_vm2, %v1550_v12, -inf }
 0x21e   : > { %1564 = vmax.xlane.f32.xlu0 %v1563_v14 }
 0x21f   : > { %v7474_v11 = vpop.f32.mrb[8].mxu0 }
 0x221   : > { %v7504_v16 = vpop.f32.mrb[12].mxu1 }
 0x222   : > { %1567 = vmax.xlane.f32.xlu0 %v1566_v17  ;;  %v1452_v18 = vpop.f32.mrb[13].mxu1  ;;  %v1553_v29 = vmul.f32 0.17677669, %v7504_v16  ;;  %v6580_v16 = vld [vmem:[%s9244_s2] ss:$0 sm:$0xff] }
 0x223   : > { %v1552_v19 = vmul.f32 0.17677669, %v1452_v18 }
 0x224   : > { %v1572_v32 = vsel %vm1556_vm2, %v1553_v29, -inf }
 0x225   : > { %v1569_v22 = vsel %vm1556_vm2, %v1552_v19, -inf }
 0x226   : > { %1558 = vmax.xlane.f32.xlu0 %v1557_v20 }
 0x229   : > { %v7511_v21 = vpop.f32.mrb[14].mxu1 }
 0x22a   : > { %1570 = vmax.xlane.f32.xlu0 %v1569_v22  ;;  %v1539_v23 = vpop.f32.mrb[15].mxu1  ;;  %v1555_v25 = vmul.f32 0.17677669, %v7511_v21  ;;  %v1166_v22 = vadd.f32 %v7474_v11, %v6580_v16 }
 0x22b   : > { %v1554_v24 = vmul.f32 0.17677669, %v1539_v23 }
 0x22c   : > { %v1578_v28 = vsel %vm1556_vm2, %v1555_v25, -inf }
 0x22d   : > { %v1575_v26 = vsel %vm1556_vm2, %v1554_v24, -inf }
 0x22e   : > { %1576 = vmax.xlane.f32.xlu1 %v1575_v26 }
 0x232   : > { %1579 = vmax.xlane.f32.xlu1 %v1578_v28 }
 0x236   : > { %1561 = vmax.xlane.f32.xlu1 %v1560_v30 }
 0x23a   : > { %1573 = vmax.xlane.f32.xlu1 %v1572_v32 }
 0x2ab   : > { %v1565_v33 = vpop.xlane.xlu0 %1564 }
 0x2ac   : > { %v1583_v34 = vsub.f32 %v1550_v12, %v1565_v33 }
 0x2ae   : > { %v1593_v35 = vmul.f32 1.442695, %v1583_v34 }
 0x2af   : > { %v1568_v36 = vpop.xlane.xlu0 %1567 }
 0x2b0   : > { %8885 = vpow2.f32 %v1593_v35  ;;  %v1584_v37 = vsub.f32 %v1551_v13, %v1568_v36  ;;  %v1160_v13 = vpop.f32.mrb[9].mxu0 }
 0x2b1   : > { %v7477_v14 = vpop.f32.mrb[10].mxu0  ;;  %v1161_v23 = vadd.f32 %v6580_v16, %v1160_v13  ;;  %v6605_v13 = vld [vmem:[%s10515_s29 + $0x80] sm:$0xff] }
 0x2b2   : > { %v1595_v38 = vmul.f32 1.442695, %v1584_v37  ;;  %v1170_v17 = vpop.f32.mrb[11].mxu0  ;;  %v1176_v20 = vadd.f32 %v7477_v14, %v6580_v16  ;;  %v6606_v14 = vld [vmem:[%s10515_s29 + $0x88] sm:$0xff] }
 0x2b3   : > { %v1559_v39 = vpop.xlane.xlu0 %1558  ;;  %v1171_v21 = vadd.f32 %v6580_v16, %v1170_v17  ;;  %v8268_v26 = vpack.c.bf16 %v1166_v22, %v1161_v23  ;;  %v7480_v28 = vpop.f32.mrb[12].mxu0  ;;  %v6608_v22 = vld [vmem:[%s10515_s29 + $0x98] sm:$0xff] }
 0x2b4   : > { %8887 = vpow2.f32 %v1595_v38  ;;  %v1581_v41 = vsub.f32 %v1548_v15, %v1559_v39  ;;  %v1180_v30 = vpop.f32.mrb[13].mxu0 }
 0x2b5   : > { %8269 = vmatprep.subr.bf16.mxu1 %v8268_v26  ;;  %v1181_v32 = vadd.f32 %v6580_v16, %v1180_v30  ;;  %v7483_v34 = vpop.f32.mrb[14].mxu0 }
 0x2b6   : > { %v1589_v47 = vmul.f32 1.442695, %v1581_v41  ;;  %8271 = vmatpush3.bf16.msra.mxu1 %v8268_v26  ;;  %v1190_v35 = vpop.f32.mrb[15].mxu0  ;;  %v1196_v36 = vadd.f32 %v7483_v34, %v6580_v16  ;;  %v6631_v26 = vld [vmem:[%s9229_s23 + $0xc0] sm:$0xff]  ;;  %v6611_v34 = vld [vmem:[%s10515_s29 + $0xb0] sm:$0xff] }
 0x2b7   : > { %v1571_v42 = vpop.xlane.xlu0 %1570  ;;  %v1191_v37 = vadd.f32 %v6580_v16, %v1190_v35  ;;  %v6612_v35 = vld [vmem:[%s10515_s29 + $0xb8] sm:$0xff] }
 0x2b8   : > { %v1585_v48 = vsub.f32 %v1552_v19, %v1571_v42 }
 0x2b9   : > { %v8280_v38 = vpack.c.bf16 %v1196_v36, %v1191_v37  ;;  %v8296_v37 = vpack.c.bf16 %v6612_v35, %v6611_v34 }
 0x2ba   : > { %v9446_v40 = vpop.eup %8885  ;;  %v1597_v53 = vmul.f32 1.442695, %v1585_v48 }
 0x2bb   : > { %v1577_v43 = vpop.xlane.xlu1 %1576  ;;  %v1611_v44 = vsel %vm1556_vm2, %v9446_v40, 0.0 }
 0x2bc   : > { %v1587_v45 = vsub.f32 %v1554_v24, %v1577_v43  ;;  %1612 = vadd.xlane.f32.xlu0 %v1611_v44  ;;  %v8272_v24 = vpack.c.bf16 %v1176_v20, %v1171_v21  ;;  %v6623_v44 = vld [vmem:[%s9229_s23 + $0x80] sm:$0xff]  ;;  %v6630_v20 = vld [vmem:[%s9229_s23 + $0xb8] sm:$0xff]  ;;  %v6607_v21 = vld [vmem:[%s10515_s29 + $0x90] sm:$0xff] }
 0x2be   : > { %v9450_v46 = vpop.eup %8887  ;;  %v1601_v49 = vmul.f32 1.442695, %v1587_v45  ;;  %8273 = vmatprep.subr.bf16.mxu0 %v8272_v24  ;;  %v6624_v45 = vld [vmem:[%s9229_s23 + $0x88] sm:$0xff] }
 0x2bf   : > { %v1580_v50 = vpop.xlane.xlu1 %1579  ;;  %v1614_v51 = vsel %vm1556_vm2, %v9450_v46, 0.0  ;;  %8275 = vmatpush3.bf16.msra.mxu0 %v8272_v24 }
 0x2c0   : > { %8889 = vpow2.f32 %v1601_v49  ;;  %v1588_v52 = vsub.f32 %v1555_v25, %v1580_v50  ;;  %1615 = vadd.xlane.f32.xlu1 %v1614_v51  ;;  %8281 = vmatprep.subr.bf16.mxu0 %v8280_v38  ;;  %v8316_v50 = vpack.c.bf16 %v6624_v45, %v6623_v44  ;;  %v6637_v45 = vld [vmem:[%s9229_s23 + $0xf0] sm:$0xff] }
 0x2c1   : > { %8891 = vpow2.f32 %v1589_v47 }
 0x2c2   : > { %v1603_v54 = vmul.f32 1.442695, %v1588_v52 }
 0x2c3   : > { %v1562_v55 = vpop.xlane.xlu1 %1561 }
 0x2c4   : > { %8893 = vpow2.f32 %v1603_v54  ;;  %v1582_v56 = vsub.f32 %v1549_v27, %v1562_v55 }
 0x2c5   : > { %8895 = vpow2.f32 %v1597_v53 }
 0x2c6   : > { %v1591_v0 = vmul.f32 1.442695, %v1582_v56  ;;  %v6625_v56 = vld [vmem:[%s9229_s23 + $0x90] sm:$0xff] }
 0x2c7   : > { %v1574_v1 = vpop.xlane.xlu1 %1573 }
 0x2c8   : > { %8897 = vpow2.f32 %v1591_v0  ;;  %v1586_v2 = vsub.f32 %v1553_v29, %v1574_v1  ;;  %v1186_v29 = vadd.f32 %v7480_v28, %v6580_v16  ;;  %v6626_v0 = vld [vmem:[%s9229_s23 + $0x98] sm:$0xff]  ;;  %v6609_v28 = vld [vmem:[%s10515_s29 + $0xa0] sm:$0xff] }
 0x2ca   : > { %v9454_v3 = vpop.eup %8889  ;;  %v1599_v4 = vmul.f32 1.442695, %v1586_v2  ;;  %v9479_v33 = vpack.c.bf16 %v1186_v29, %v1181_v32  ;;  %v6610_v29 = vld [vmem:[%s10515_s29 + $0xa8] sm:$0xff]  ;;  %v6633_v32 = vld [vmem:[%s9229_s23 + $0xd0] sm:$0xff] }
 0x2cb   : > { %v1623_v5 = vsel %vm1556_vm2, %v9454_v3, 0.0  ;;  %v9458_v6 = vpop.eup %8891  ;;  %v8292_v30 = vpack.c.bf16 %v6610_v29, %v6609_v28 }
 0x2cc   : > { %8899 = vpow2.f32 %v1599_v4  ;;  %1624 = vadd.xlane.f32.xlu0 %v1623_v5  ;;  %v1605_v9 = vsel %vm1556_vm2, %v9458_v6, 0.0  ;;  %8277 = vmatprep.subr.bf16.mxu1 %v9479_v33 }
 0x2ce   : > { %v9460_v8 = vpop.eup %8893 }
 0x2cf   : > { %v1626_v10 = vsel %vm1556_vm2, %v9460_v8, 0.0  ;;  %v9466_v12 = vpop.eup %8895 }
 0x2d0   : > { %1606 = vadd.xlane.f32.xlu0 %v1605_v9  ;;  %1627 = vadd.xlane.f32.xlu1 %v1626_v10  ;;  %v1617_v18 = vsel %vm1556_vm2, %v9466_v12, 0.0  ;;  %v8320_v9 = vpack.c.bf16 %v6626_v0, %v6625_v56  ;;  %v6627_v10 = vld [vmem:[%s9229_s23 + $0xa0] sm:$0xff] }
 0x2d2   : > { %v9468_v15 = vpop.eup %8897 }
 0x2d3   : > { %v1608_v19 = vsel %vm1556_vm2, %v9468_v15, 0.0 }
 0x2d4   : > { %1618 = vadd.xlane.f32.xlu0 %v1617_v18  ;;  %1609 = vadd.xlane.f32.xlu1 %v1608_v19  ;;  %v6629_v18 = vld [vmem:[%s9229_s23 + $0xb0] sm:$0xff]  ;;  %v8284_v19 = vpack.c.bf16 %v6606_v14, %v6605_v13 }
 0x2d6   : > { %v9475_v25 = vpop.eup %8899 }
 0x2d7   : > { %v1620_v27 = vsel %vm1556_vm2, %v9475_v25, 0.0 }
 0x2d8   : > { %1621 = vadd.xlane.f32.xlu1 %v1620_v27  ;;  %v6632_v27 = vld [vmem:[%s9229_s23 + $0xc8] sm:$0xff] }
 0x349   : > { %v1613_v39 = vpop.xlane.xlu0 %1612 }
 0x34a   : > { %8901 = vrcp.f32 %v1613_v39  ;;  %v6636_v39 = vld [vmem:[%s9229_s23 + $0xe8] sm:$0xff] }
 0x34d   : > { %v1616_v41 = vpop.xlane.xlu1 %1615 }
 0x34e   : > { %8903 = vrcp.f32 %v1616_v41  ;;  %v6613_v41 = vld [vmem:[%s10515_s29 + $0xc0] sm:$0xff] }
 0x354   : > { %v8902_v42 = vpop.eup %8901 }
 0x355   : > { %v1639_v43 = vmul.f32 %v8902_v42, %v9446_v40  ;;  %v6614_v42 = vld [vmem:[%s10515_s29 + $0xc8] sm:$0xff] }
 0x356   : > { %v8300_v44 = vpack.c.bf16 %v6614_v42, %v6613_v41 }
 0x357   : > { %7523 = vmatprep.mubr.msk.f32.mxu0 %vm1556_vm2, %v1639_v43 }
 0x358   : > { %v8904_v47 = vpop.eup %8903 }
 0x359   : > { %v1640_v48 = vmul.f32 %v8904_v47, %v9450_v46  ;;  %v1625_v49 = vpop.xlane.xlu0 %1624  ;;  %v6638_v47 = vld [vmem:[%s9229_s23 + $0xf8] sm:$0xff] }
 0x35a   : > { %8905 = vrcp.f32 %v1625_v49  ;;  %v6616_v49 = vld [vmem:[%s10515_s29 + $0xd8] sm:$0xff] }
 0x35b   : > { %7524 = vmatmul.mubr.msk.f32.vlgmr.msra.gmra.mrb[16].mxu0 %vm1556_vm2, %v1640_v48  ;;  %v6615_v48 = vld [vmem:[%s10515_s29 + $0xd0] sm:$0xff] }
 0x35c   : > { %8283 = vmatpush3.bf16.msra.mxu0 %v8280_v38  ;;  %v6635_v38 = vld [vmem:[%s9229_s23 + $0xe0] sm:$0xff] }
 0x35d   : > { %v1607_v51 = vpop.xlane.xlu0 %1606  ;;  %v1628_v52 = vpop.xlane.xlu1 %1627  ;;  %8317 = vmatprep.subr.bf16.mxu0 %v8316_v50  ;;  %v8340_v43 = vpack.c.bf16 %v6636_v39, %v6635_v38 }
 0x35e   : > { %8907 = vrcp.f32 %v1607_v51  ;;  %v8304_v51 = vpack.c.bf16 %v6616_v49, %v6615_v48  ;;  %v6641_v48 = vld [vmem:[%s9239_s30 + $0x80] sm:$0xff]  ;;  %v6642_v49 = vld [vmem:[%s9239_s30 + $0x88] sm:$0xff] }
 0x35f   : > { %8909 = vrcp.f32 %v1628_v52  ;;  %v6617_v52 = vld [vmem:[%s10515_s29 + $0xe0] sm:$0xff] }
 0x361   : > { %v1619_v40 = vpop.xlane.xlu0 %1618  ;;  %v1610_v53 = vpop.xlane.xlu1 %1609 }
 0x362   : > { %8911 = vrcp.f32 %v1619_v40  ;;  %v6618_v40 = vld [vmem:[%s10515_s29 + $0xe8] sm:$0xff] }
 0x363   : > { %8913 = vrcp.f32 %v1610_v53  ;;  %v8308_v53 = vpack.c.bf16 %v6618_v40, %v6617_v52  ;;  %v6644_v52 = vld [vmem:[%s9239_s30 + $0x98] sm:$0xff] }
 0x364   : > { %v8906_v46 = vpop.eup %8905 }
 0x365   : > { %v1622_v54 = vpop.xlane.xlu1 %1621  ;;  %v1643_v55 = vmul.f32 %v8906_v46, %v9454_v3  ;;  %v6628_v3 = vld [vmem:[%s9229_s23 + $0xa8] sm:$0xff]  ;;  %v6619_v46 = vld [vmem:[%s10515_s29 + $0xf0] sm:$0xff] }
 0x366   : > { %8915 = vrcp.f32 %v1622_v54  ;;  %v8324_v17 = vpack.c.bf16 %v6628_v3, %v6627_v10  ;;  %v6620_v54 = vld [vmem:[%s10515_s29 + $0xf8] sm:$0xff]  ;;  %v6640_v3 = vld [vmem:[%s10516_s7 + $0x1] ss:$0 sm:$0xff] }
 0x367   : > { %7537 = vmatprep.mubr.msk.f32.mxu0 %vm1556_vm2, %v1643_v55  ;;  %v8312_v55 = vpack.c.bf16 %v6620_v54, %v6619_v46  ;;  %v6646_v46 = vld [vmem:[%s9239_s30 + $0xa8] sm:$0xff] }
 0x368   : > { %v8908_v1 = vpop.eup %8907 }
 0x369   : > { %v8910_v2 = vpop.eup %8909  ;;  %v1637_v4 = vmul.f32 %v8908_v1, %v9458_v6 }
 0x36a   : > { %v1644_v5 = vmul.f32 %v8910_v2, %v9460_v8 }
 0x36b   : > { %7516 = vmatprep.mubr.msk.f32.mxu1 %vm1556_vm2, %v1637_v4 }
 0x36c   : > { %v8912_v11 = vpop.eup %8911  ;;  %7538 = vmatmul.mubr.msk.f32.vlgmr.msra.gmra.mrb[18].mxu0 %vm1556_vm2, %v1644_v5 }
 0x36d   : > { %v8914_v16 = vpop.eup %8913  ;;  %8319 = vmatpush3.bf16.msra.mxu0 %v8316_v50  ;;  %7616 = vmatprep.mubr.f32.mxu0 %v9334_v31  ;;  %v1641_v8 = vmul.f32 %v8912_v11, %v9466_v12  ;;  %v8328_v12 = vpack.c.bf16 %v6630_v20, %v6629_v18  ;;  %v8344_v50 = vpack.c.bf16 %v6638_v47, %v6637_v45 }
 0x36e   : > { %v1638_v6 = vmul.f32 %v8914_v16, %v9468_v15  ;;  %8321 = vmatprep.subr.bf16.mxu0 %v8320_v9  ;;  %v8288_v15 = vpack.c.bf16 %v6608_v22, %v6607_v21 }
 0x370   : > { %v8916_v23 = vpop.eup %8915  ;;  %7517 = vmatmul.mubr.msk.f32.vlgmr.msra.gmra.mrb[16].mxu1 %vm1556_vm2, %v1638_v6 }
 0x371   : > { %v1642_v24 = vmul.f32 %v8916_v23, %v9475_v25  ;;  %8279 = vmatpush3.bf16.msra.mxu1 %v9479_v33  ;;  %8323 = vmatpush3.bf16.msra.mxu0 %v8320_v9  ;;  %v8332_v25 = vpack.c.bf16 %v6632_v27, %v6631_v26  ;;  %v6634_v33 = vld [vmem:[%s9229_s23 + $0xd8] sm:$0xff] }
 0x372   : > { %7530 = vmatprep.mubr.msk.f32.mxu1 %vm1556_vm2, %v1641_v8  ;;  %8325 = vmatprep.subr.bf16.mxu0 %v8324_v17  ;;  %v8336_v36 = vpack.c.bf16 %v6634_v33, %v6633_v32 }
 0x373   : > { %8285 = vmatprep.subr.bf16.mxu1 %v8284_v19 }
 0x374   : > { %7531 = vmatmul.mubr.msk.f32.vlgmr.msra.gmra.mrb[18].mxu1 %vm1556_vm2, %v1642_v24 }
 0x375   : > { %8327 = vmatpush3.bf16.msra.mxu0 %v8324_v17  ;;  %8287 = vmatpush3.bf16.msra.mxu1 %v8284_v19  ;;  %v6622_v19 = vld [vmem:[%s10517_s27 + $0x1] ss:$0 sm:$0xff] }
 0x376   : > { %8329 = vmatprep.subr.bf16.mxu0 %v8328_v12  ;;  %8289 = vmatprep.subr.bf16.mxu1 %v8288_v15 }
 0x377   : > { %7572 = vmatprep.mubr.f32.mxu1 %v9334_v31 }
 0x379   : > { %8331 = vmatpush3.bf16.msra.mxu0 %v8328_v12  ;;  %8291 = vmatpush3.bf16.msra.mxu1 %v8288_v15 }
 0x37a   : > { %8333 = vmatprep.subr.bf16.mxu0 %v8332_v25  ;;  %8293 = vmatprep.subr.bf16.mxu1 %v8292_v30 }
 0x37d   : > { %8335 = vmatpush3.bf16.msra.mxu0 %v8332_v25  ;;  %8295 = vmatpush3.bf16.msra.mxu1 %v8292_v30 }
 0x37e   : > { %8337 = vmatprep.subr.bf16.mxu0 %v8336_v36  ;;  %8297 = vmatprep.subr.bf16.mxu1 %v8296_v37 }
 0x381   : > { %8339 = vmatpush3.bf16.msra.mxu0 %v8336_v36  ;;  %8299 = vmatpush3.bf16.msra.mxu1 %v8296_v37 }
 0x382   : > { %8341 = vmatprep.subr.bf16.mxu0 %v8340_v43  ;;  %8301 = vmatprep.subr.bf16.mxu1 %v8300_v44 }
 0x385   : > { %8343 = vmatpush3.bf16.msra.mxu0 %v8340_v43  ;;  %8303 = vmatpush3.bf16.msra.mxu1 %v8300_v44 }
 0x386   : > { %8345 = vmatprep.subr.bf16.mxu0 %v8344_v50  ;;  %8305 = vmatprep.subr.bf16.mxu1 %v8304_v51 }
 0x389   : > { %8347 = vmatpush3.bf16.msra.mxu0 %v8344_v50  ;;  %8307 = vmatpush3.bf16.msra.mxu1 %v8304_v51  ;;  %v6643_v50 = vld [vmem:[%s9239_s30 + $0x90] sm:$0xff]  ;;  %v8348_v51 = vpack.c.bf16 %v6642_v49, %v6641_v48 }
 0x38a   : > { %8309 = vmatprep.subr.bf16.mxu1 %v8308_v53  ;;  %v8352_v40 = vpack.c.bf16 %v6644_v52, %v6643_v50 }
 0x38c   : > { %7617 = vmatmul.mubr.f32.vlgmr.msra.gmra.mrb[20].mxu0 %v9354_v57 }
 0x38d   : > { %8311 = vmatpush3.bf16.msra.mxu1 %v8308_v53  ;;  %7619 = vmatprep.mubr.f32.mxu0 %v9356_v58  ;;  %v6645_v53 = vld [vmem:[%s9239_s30 + $0xa0] sm:$0xff] }
 0x38e   : > { %8313 = vmatprep.subr.bf16.mxu1 %v8312_v55  ;;  %v8356_v54 = vpack.c.bf16 %v6646_v46, %v6645_v53 }
 0x390   : > { %7620 = vmatmul.mubr.f32.gmra.mrb[22].mxu0 %v9360_v59 }
 0x391   : > { %8315 = vmatpush3.bf16.msra.mxu1 %v8312_v55  ;;  %7622 = vmatprep.mubr.f32.mxu0 %v9363_v60  ;;  %v6647_v55 = vld [vmem:[%s9239_s30 + $0xb0] sm:$0xff] }
 0x392   : > { %8349 = vmatprep.subr.bf16.mxu1 %v8348_v51 }
 0x394   : > { %7573 = vmatmul.mubr.f32.vlgmr.msra.gmra.mrb[20].mxu1 %v9354_v57  ;;  %7623 = vmatmul.mubr.f32.gmra.mrb[24].mxu0 %v9368_v61 }
 0x395   : > { %7575 = vmatprep.mubr.f32.mxu1 %v9356_v58  ;;  %7625 = vmatprep.mubr.f32.mxu0 %v9371_v62 }
 0x396   : > { %8351 = vmatpush3.bf16.msra.mxu1 %v8348_v51 }
 0x397   : > { %8353 = vmatprep.subr.bf16.mxu1 %v8352_v40 }
 0x398   : > { %7576 = vmatmul.mubr.f32.gmra.mrb[22].mxu1 %v9360_v59  ;;  %7626 = vmatmul.mubr.f32.gmra.mrb[26].mxu0 %v9376_v63 }
 0x399   : > { %7578 = vmatprep.mubr.f32.mxu1 %v9363_v60 }
 0x39a   : > { %8355 = vmatpush3.bf16.msra.mxu1 %v8352_v40 }
 0x39b   : > { %8357 = vmatprep.subr.bf16.mxu1 %v8356_v54 }
 0x39c   : > { %7579 = vmatmul.mubr.f32.gmra.mrb[24].mxu1 %v9368_v61 }
 0x39d   : > { %7581 = vmatprep.mubr.f32.mxu1 %v9371_v62 }
 0x39e   : > { %8359 = vmatpush3.bf16.msra.mxu1 %v8356_v54 }
 0x3a0   : > { %7582 = vmatmul.mubr.f32.gmra.mrb[26].mxu1 %v9376_v63 }
 0x3a1   : > { %7660 = vmatprep.mubr.f32.mxu1 %v9334_v31 }
 0x42e   : > { %v9548_v56 = vpop.f32.mrb[16].mxu0 }
 0x42f   : > { %v9550_v0 = vpop.f32.mrb[17].mxu0 }
 0x43f   : > { %v9552_v1 = vpop.f32.mrb[18].mxu0 }
 0x440   : > { %v9554_v2 = vpop.f32.mrb[19].mxu0 }
 0x443   : > { %v9556_v4 = vpop.f32.mrb[16].mxu1 }
 0x444   : > { %v9558_v5 = vpop.f32.mrb[17].mxu1 }
 0x447   : > { %v9560_v9 = vpop.f32.mrb[18].mxu1 }
 0x448   : > { %v9562_v10 = vpop.f32.mrb[19].mxu1 }
 0x45f   : > { %v7618_v11 = vpop.f32.mrb[20].mxu0 }
 0x460   : > { %v2196_v31 = vadd.f32 %v7618_v11, %v6640_v3  ;;  %v2190_v13 = vpop.f32.mrb[21].mxu0 }
 0x461   : > { %v2191_v14 = vadd.f32 %v6640_v3, %v2190_v13  ;;  %v6650_v13 = vld [vmem:[%s9239_s30 + $0xc8] sm:$0xff] }
 0x463   : > { %v8380_v16 = vpack.c.bf16 %v2196_v31, %v2191_v14  ;;  %v7621_v6 = vpop.f32.mrb[22].mxu0  ;;  %v6649_v31 = vld [vmem:[%s9239_s30 + $0xc0] sm:$0xff] }
 0x464   : > { %v2206_v8 = vadd.f32 %v7621_v6, %v6640_v3  ;;  %v2200_v17 = vpop.f32.mrb[23].mxu0  ;;  %v8364_v14 = vpack.c.bf16 %v6650_v13, %v6649_v31  ;;  %v6652_v6 = vld [vmem:[%s9239_s30 + $0xd8] sm:$0xff] }
 0x465   : > { %8382 = vmatprep.subr.msk.bf16.mxu0 %vm9387_vm1, %v8380_v16  ;;  %v2201_v18 = vadd.f32 %v6640_v3, %v2200_v17  ;;  %v6653_v17 = vld [vmem:[%s9239_s30 + $0xe0] sm:$0xff] }
 0x466   : > { %8385 = vmatpush3.bf16.xpose.msk.msra.mxu0 %vm9387_vm1, %v8380_v16  ;;  %v6651_v16 = vld [vmem:[%s9239_s30 + $0xd0] sm:$0xff] }
 0x467   : > { %v8386_v20 = vpack.c.bf16 %v2206_v8, %v2201_v18  ;;  %v7574_v21 = vpop.f32.mrb[20].mxu1  ;;  %v7624_v22 = vpop.f32.mrb[24].mxu0  ;;  %v8368_v8 = vpack.c.bf16 %v6652_v6, %v6651_v16  ;;  %v6654_v18 = vld [vmem:[%s9239_s30 + $0xe8] sm:$0xff] }
 0x468   : > { %v2060_v23 = vpop.f32.mrb[21].mxu1  ;;  %v2216_v24 = vadd.f32 %v7624_v22, %v6640_v3  ;;  %v2210_v12 = vpop.f32.mrb[25].mxu0  ;;  %v2066_v15 = vadd.f32 %v7574_v21, %v6622_v19  ;;  %v6656_v21 = vld [vmem:[%s9239_s30 + $0xf8] sm:$0xff] }
 0x469   : > { %v2061_v26 = vadd.f32 %v6622_v19, %v2060_v23  ;;  %8388 = vmatprep.subr.msk.bf16.mxu0 %vm9387_vm1, %v8386_v20  ;;  %v2211_v27 = vadd.f32 %v6640_v3, %v2210_v12 }
 0x46b   : > { %7676 = vmatprep.mubr.msk.f32.mxu0 %vm1199_vm0, %v2061_v26  ;;  %v8392_v28 = vpack.c.bf16 %v2216_v24, %v2211_v27  ;;  %v7577_v29 = vpop.f32.mrb[22].mxu1  ;;  %v7627_v25 = vpop.f32.mrb[26].mxu0 }
 0x46c   : > { %v2070_v30 = vpop.f32.mrb[23].mxu1  ;;  %v2226_v32 = vadd.f32 %v7627_v25, %v6640_v3  ;;  %v2220_v33 = vpop.f32.mrb[27].mxu0  ;;  %v2076_v39 = vadd.f32 %v7577_v29, %v6622_v19 }
 0x46d   : > { %7677 = vmatmul.mubr.msk.f32.vlgmr.msra.gmra.mrb[28].mxu0 %vm1199_vm0, %v2066_v15  ;;  %v2071_v34 = vadd.f32 %v6622_v19, %v2070_v30  ;;  %v2221_v35 = vadd.f32 %v6640_v3, %v2220_v33  ;;  %v6648_v3 = vld [vmem:[%s9239_s30 + $0xb8] sm:$0xff] }
 0x46e   : > { %8391 = vmatpush3.bf16.xpose.msk.msra.mxu0 %vm9387_vm1, %v8386_v20  ;;  %v8360_v11 = vpack.c.bf16 %v6648_v3, %v6647_v55  ;;  %v6655_v20 = vld [vmem:[%s9239_s30 + $0xf0] sm:$0xff] }
 0x46f   : > { %7683 = vmatprep.mubr.msk.f32.mxu0 %vm1199_vm0, %v2071_v34  ;;  %8394 = vmatprep.subr.msk.bf16.mxu0 %vm9387_vm1, %v8392_v28  ;;  %v8398_v36 = vpack.c.bf16 %v2226_v32, %v2221_v35  ;;  %v7580_v37 = vpop.f32.mrb[24].mxu1  ;;  %v8376_v22 = vpack.c.bf16 %v6656_v21, %v6655_v20 }
 0x470   : > { %v2080_v38 = vpop.f32.mrb[25].mxu1  ;;  %v2086_v44 = vadd.f32 %v7580_v37, %v6622_v19  ;;  %8361 = vmatprep.subr.bf16.mxu1 %v8360_v11 }
 0x471   : > { %v2081_v41 = vadd.f32 %v6622_v19, %v2080_v38  ;;  %8363 = vmatpush3.bf16.msra.mxu1 %v8360_v11 }
 0x472   : > { %8365 = vmatprep.subr.bf16.mxu1 %v8364_v14 }
 0x473   : > { %v7583_v42 = vpop.f32.mrb[26].mxu1 }
 0x474   : > { %v2090_v43 = vpop.f32.mrb[27].mxu1  ;;  %v2096_v47 = vadd.f32 %v7583_v42, %v6622_v19 }
 0x475   : > { %7684 = vmatmul.mubr.msk.f32.vlgmr.msra.gmra.mrb[30].mxu0 %vm1199_vm0, %v2076_v39  ;;  %v2091_v45 = vadd.f32 %v6622_v19, %v2090_v43  ;;  %8367 = vmatpush3.bf16.msra.mxu1 %v8364_v14  ;;  %v8372_v19 = vpack.c.bf16 %v6654_v18, %v6653_v17 }
 0x476   : > { %8397 = vmatpush3.bf16.xpose.msk.msra.mxu0 %vm9387_vm1, %v8392_v28  ;;  %7690 = vmatprep.mubr.msk.f32.mxu0 %vm1199_vm0, %v2081_v41 }
 0x477   : > { %8400 = vmatprep.subr.msk.bf16.mxu0 %vm9387_vm1, %v8398_v36  ;;  %8369 = vmatprep.subr.bf16.mxu1 %v8368_v8 }
 0x479   : > { %8371 = vmatpush3.bf16.msra.mxu1 %v8368_v8 }
 0x47a   : > { %8373 = vmatprep.subr.bf16.mxu1 %v8372_v19 }
 0x47d   : > { %7691 = vmatmul.mubr.msk.f32.vlgmr.msra.gmra.mrb[32].mxu0 %vm1199_vm0, %v2086_v44  ;;  %8375 = vmatpush3.bf16.msra.mxu1 %v8372_v19 }
 0x47e   : > { %8403 = vmatpush3.bf16.xpose.msk.msra.mxu0 %vm9387_vm1, %v8398_v36  ;;  %7697 = vmatprep.mubr.msk.f32.mxu0 %vm1199_vm0, %v2091_v45 }
 0x47f   : > { %8377 = vmatprep.subr.bf16.mxu1 %v8376_v22 }
 0x481   : > { %8379 = vmatpush3.bf16.msra.mxu1 %v8376_v22 }
 0x484   : > { %7661 = vmatmul.mubr.f32.vlgmr.msra.gmra.mrb[28].mxu1 %v9354_v57 }
 0x485   : > { %7698 = vmatmul.mubr.msk.f32.vlgmr.msra.gmra.mrb[34].mxu0 %vm1199_vm0, %v2096_v47  ;;  %7663 = vmatprep.mubr.f32.mxu1 %v9356_v58 }
 0x488   : > { %7664 = vmatmul.mubr.f32.gmra.mrb[30].mxu1 %v9360_v59 }
 0x489   : > { %7666 = vmatprep.mubr.f32.mxu1 %v9363_v60 }
 0x48c   : > { %7667 = vmatmul.mubr.f32.gmra.mrb[32].mxu1 %v9368_v61 }
 0x48d   : > { %7669 = vmatprep.mubr.f32.mxu1 %v9371_v62 }
 0x490   : > { %7670 = vmatmul.mubr.f32.gmra.mrb[34].mxu1 %v9376_v63 }
 0x540   : > { %v7678_v23 = vpop.f32.mrb[28].mxu0 }
 0x541   : > { %v2437_v24 = vpop.f32.mrb[29].mxu0  ;;  %v2708_v25 = vmul.f32 0.17677669, %v7678_v23 }
 0x542   : > { %v2707_v30 = vmul.f32 0.17677669, %v2437_v24 }
 0x543   : > { %v2718_v34 = vsel %vm1556_vm2, %v2708_v25, -inf }
 0x544   : > { %v2715_v36 = vsel %vm1556_vm2, %v2707_v30, -inf }
 0x548   : > { %v7685_v12 = vpop.f32.mrb[30].mxu0 }
 0x549   : > { %v2710_v15 = vmul.f32 0.17677669, %v7685_v12  ;;  %v2524_v26 = vpop.f32.mrb[31].mxu0 }
 0x54a   : > { %v2709_v27 = vmul.f32 0.17677669, %v2524_v26 }
 0x54b   : > { %v2724_v57 = vsel %vm1556_vm2, %v2710_v15, -inf }
 0x54c   : > { %2725 = vmax.xlane.f32.xlu1 %v2724_v57  ;;  %v2721_v58 = vsel %vm1556_vm2, %v2709_v27, -inf }
 0x54d   : > { %2722 = vmax.xlane.f32.xlu0 %v2721_v58 }
 0x550   : > { %v7692_v59 = vpop.f32.mrb[32].mxu0 }
 0x551   : > { %v2611_v60 = vpop.f32.mrb[33].mxu0  ;;  %v2712_v33 = vmul.f32 0.17677669, %v7692_v59  ;;  %v6658_v59 = vld [vmem:[%s9244_s2 + $0x1] ss:$0 sm:$0xff] }
 0x552   : > { %v2711_v35 = vmul.f32 0.17677669, %v2611_v60 }
 0x553   : > { %v2730_v37 = vsel %vm1556_vm2, %v2712_v33, -inf }
 0x554   : > { %v2727_v38 = vsel %vm1556_vm2, %v2711_v35, -inf }
 0x557   : > { %v7662_v24 = vpop.f32.mrb[28].mxu1 }
 0x558   : > { %v7699_v28 = vpop.f32.mrb[34].mxu0 }
 0x559   : > { %v2714_v61 = vmul.f32 0.17677669, %v7699_v28  ;;  %v2698_v29 = vpop.f32.mrb[35].mxu0 }
 0x55a   : > { %v2713_v62 = vmul.f32 0.17677669, %v2698_v29 }
 0x55b   : > { %v2736_v63 = vsel %vm1556_vm2, %v2714_v61, -inf }
 0x55c   : > { %2737 = vmax.xlane.f32.xlu1 %v2736_v63  ;;  %v2733_v32 = vsel %vm1556_vm2, %v2713_v62, -inf }
 0x55d   : > { %2734 = vmax.xlane.f32.xlu0 %v2733_v32 }
 0x560   : > { %2719 = vmax.xlane.f32.xlu1 %v2718_v34 }
 0x561   : > { %2716 = vmax.xlane.f32.xlu0 %v2715_v36 }
 0x564   : > { %2731 = vmax.xlane.f32.xlu1 %v2730_v37 }
 0x565   : > { %2728 = vmax.xlane.f32.xlu0 %v2727_v38 }
 0x5d9   : > { %v2726_v39 = vpop.xlane.xlu1 %2725 }
 0x5da   : > { %v2742_v41 = vsub.f32 %v2710_v15, %v2726_v39  ;;  %v2723_v42 = vpop.xlane.xlu0 %2722  ;;  %v2320_v15 = vpop.f32.mrb[29].mxu1 }
 0x5db   : > { %v2741_v43 = vsub.f32 %v2709_v27, %v2723_v42  ;;  %v7665_v57 = vpop.f32.mrb[30].mxu1 }
 0x5dc   : > { %v2753_v44 = vmul.f32 1.442695, %v2742_v41  ;;  %v2330_v60 = vpop.f32.mrb[31].mxu1  ;;  %v2336_v28 = vadd.f32 %v7665_v57, %v6658_v59 }
 0x5dd   : > { %v2751_v45 = vmul.f32 1.442695, %v2741_v43 }
 0x5de   : > { %8917 = vpow2.f32 %v2753_v44 }
 0x5df   : > { %8919 = vpow2.f32 %v2751_v45 }
 0x5e8   : > { %v9621_v47 = vpop.eup %8917 }
 0x5e9   : > { %v9623_v48 = vpop.eup %8919  ;;  %v2738_v49 = vpop.xlane.xlu1 %2737  ;;  %v2772_v50 = vsel %vm1556_vm2, %v9621_v47, 0.0 }
 0x5ea   : > { %v2746_v51 = vsub.f32 %v2714_v61, %v2738_v49  ;;  %2773 = vadd.xlane.f32.xlu1 %v2772_v50  ;;  %v2735_v52 = vpop.xlane.xlu0 %2734  ;;  %v2769_v40 = vsel %vm1556_vm2, %v9623_v48, 0.0  ;;  %v2331_v61 = vadd.f32 %v6658_v59, %v2330_v60 }
 0x5eb   : > { %v2745_v53 = vsub.f32 %v2713_v62, %v2735_v52  ;;  %2770 = vadd.xlane.f32.xlu0 %v2769_v40  ;;  %v2326_v62 = vadd.f32 %v7662_v24, %v6658_v59  ;;  %v6701_v52 = vld [vmem:[%s9229_s23 + $0x100] sm:$0xff]  ;;  %v6702_v40 = vld [vmem:[%s9229_s23 + $0x108] sm:$0xff] }
 0x5ec   : > { %v2761_v46 = vmul.f32 1.442695, %v2746_v51  ;;  %v8408_v32 = vpack.c.bf16 %v2336_v28, %v2331_v61  ;;  %v6706_v24 = vld [vmem:[%s9229_s23 + $0x128] sm:$0xff]  ;;  %v6707_v28 = vld [vmem:[%s9229_s23 + $0x130] sm:$0xff] }
 0x5ed   : > { %v2759_v54 = vmul.f32 1.442695, %v2745_v53  ;;  %v2720_v55 = vpop.xlane.xlu1 %2719 }
 0x5ee   : > { %8921 = vpow2.f32 %v2761_v46  ;;  %v2740_v3 = vsub.f32 %v2708_v25, %v2720_v55  ;;  %v2717_v11 = vpop.xlane.xlu0 %2716  ;;  %v2321_v25 = vadd.f32 %v6658_v59, %v2320_v15  ;;  %8409 = vmatprep.subr.bf16.mxu1 %v8408_v32  ;;  %v8452_v55 = vpack.c.bf16 %v6702_v40, %v6701_v52  ;;  %v6683_v15 = vld [vmem:[%s10515_s29 + $0x100] sm:$0xff]  ;;  %v6692_v52 = vld [vmem:[%s10515_s29 + $0x148] sm:$0xff] }
 0x5ef   : > { %8923 = vpow2.f32 %v2759_v54  ;;  %v2739_v31 = vsub.f32 %v2707_v30, %v2717_v11  ;;  %8411 = vmatpush3.bf16.msra.mxu1 %v8408_v32 }
 0x5f0   : > { %v2749_v13 = vmul.f32 1.442695, %v2740_v3  ;;  %v8404_v34 = vpack.c.bf16 %v2326_v62, %v2321_v25  ;;  %v6708_v62 = vld [vmem:[%s9229_s23 + $0x138] sm:$0xff]  ;;  %v6685_v25 = vld [vmem:[%s10515_s29 + $0x110] sm:$0xff] }
 0x5f1   : > { %v2747_v14 = vmul.f32 1.442695, %v2739_v31  ;;  %v2732_v16 = vpop.xlane.xlu1 %2731 }
 0x5f2   : > { %8925 = vpow2.f32 %v2749_v13  ;;  %v2744_v6 = vsub.f32 %v2712_v33, %v2732_v16  ;;  %v2729_v8 = vpop.xlane.xlu0 %2728  ;;  %8405 = vmatprep.subr.bf16.mxu0 %v8404_v34  ;;  %v6703_v16 = vld [vmem:[%s9229_s23 + $0x110] sm:$0xff] }
 0x5f3   : > { %8927 = vpow2.f32 %v2747_v14  ;;  %v2743_v17 = vsub.f32 %v2711_v35, %v2729_v8  ;;  %8407 = vmatpush3.bf16.msra.mxu0 %v8404_v34  ;;  %v7668_v35 = vpop.f32.mrb[32].mxu1 }
 0x5f4   : > { %v2757_v18 = vmul.f32 1.442695, %v2744_v6  ;;  %v2346_v36 = vadd.f32 %v7668_v35, %v6658_v59  ;;  %v2340_v37 = vpop.f32.mrb[33].mxu1  ;;  %v6704_v6 = vld [vmem:[%s9229_s23 + $0x118] sm:$0xff]  ;;  %v6709_v35 = vld [vmem:[%s9229_s23 + $0x140] sm:$0xff] }
 0x5f5   : > { %v2755_v19 = vmul.f32 1.442695, %v2743_v17  ;;  %v2341_v38 = vadd.f32 %v6658_v59, %v2340_v37  ;;  %v7671_v39 = vpop.f32.mrb[34].mxu1  ;;  %v6687_v37 = vld [vmem:[%s10515_s29 + $0x120] sm:$0xff] }
 0x5f6   : > { %8929 = vpow2.f32 %v2757_v18  ;;  %v2350_v42 = vpop.f32.mrb[35].mxu1  ;;  %v2356_v43 = vadd.f32 %v7671_v39, %v6658_v59  ;;  %v6711_v39 = vld [vmem:[%s9229_s23 + $0x150] sm:$0xff] }
 0x5f7   : > { %8931 = vpow2.f32 %v2755_v19  ;;  %v9654_v41 = vpack.c.bf16 %v2346_v36, %v2341_v38  ;;  %v2351_v44 = vadd.f32 %v6658_v59, %v2350_v42  ;;  %v8456_v19 = vpack.c.bf16 %v6704_v6, %v6703_v16  ;;  %v6710_v36 = vld [vmem:[%s9229_s23 + $0x148] sm:$0xff]  ;;  %v6689_v42 = vld [vmem:[%s10515_s29 + $0x130] sm:$0xff]  ;;  %v6698_v16 = vld [vmem:[%s10515_s29 + $0x178] sm:$0xff] }
 0x5f8   : > { %v9629_v20 = vpop.eup %8921  ;;  %v6688_v38 = vld [vmem:[%s10515_s29 + $0x128] sm:$0xff] }
 0x5f9   : > { %v9631_v21 = vpop.eup %8923  ;;  %v2784_v22 = vsel %vm1556_vm2, %v9629_v20, 0.0  ;;  %8413 = vmatprep.subr.bf16.mxu0 %v9654_v41  ;;  %v8416_v45 = vpack.c.bf16 %v2356_v43, %v2351_v44  ;;  %v6690_v43 = vld [vmem:[%s10515_s29 + $0x138] sm:$0xff] }
 0x5fa   : > { %2785 = vadd.xlane.f32.xlu1 %v2784_v22  ;;  %v2781_v23 = vsel %vm1556_vm2, %v9631_v21, 0.0  ;;  %v6705_v22 = vld [vmem:[%s9229_s23 + $0x120] sm:$0xff] }
 0x5fb   : > { %2782 = vadd.xlane.f32.xlu0 %v2781_v23  ;;  %8417 = vmatprep.subr.bf16.mxu1 %v8416_v45  ;;  %v8460_v59 = vpack.c.bf16 %v6706_v24, %v6705_v22  ;;  %v9723_v22 = vld [vmem:[#allocation2 + $0x28] sm:$0xff]  ;;  %v9731_v24 = vld [vmem:[#allocation2 + $0x38] sm:$0xff] }
 0x5fc   : > { %v9637_v12 = vpop.eup %8925 }
 0x5fd   : > { %v9639_v26 = vpop.eup %8927  ;;  %v2766_v27 = vsel %vm1556_vm2, %v9637_v12, 0.0 }
 0x5fe   : > { %2767 = vadd.xlane.f32.xlu1 %v2766_v27  ;;  %v2763_v58 = vsel %vm1556_vm2, %v9639_v26, 0.0  ;;  %v6684_v27 = vld [vmem:[%s10515_s29 + $0x108] sm:$0xff] }
 0x5ff   : > { %2764 = vadd.xlane.f32.xlu0 %v2763_v58  ;;  %v9674_v58 = vld [vmem:[#allocation2] sm:$0xff]  ;;  %v8420_v60 = vpack.c.bf16 %v6684_v27, %v6683_v15 }
 0x600   : > { %v9646_v29 = vpop.eup %8929 }
 0x601   : > { %v9648_v63 = vpop.eup %8931  ;;  %v2778_v30 = vsel %vm1556_vm2, %v9646_v29, 0.0 }
 0x602   : > { %2779 = vadd.xlane.f32.xlu1 %v2778_v30  ;;  %v2775_v33 = vsel %vm1556_vm2, %v9648_v63, 0.0 }
 0x603   : > { %2776 = vadd.xlane.f32.xlu0 %v2775_v33  ;;  %v8464_v33 = vpack.c.bf16 %v6708_v62, %v6707_v28 }
 0x677   : > { %v2774_v49 = vpop.xlane.xlu1 %2773 }
 0x678   : > { %8933 = vrcp.f32 %v2774_v49  ;;  %v2771_v50 = vpop.xlane.xlu0 %2770  ;;  %v6713_v49 = vld [vmem:[%s9229_s23 + $0x160] sm:$0xff] }
 0x679   : > { %8935 = vrcp.f32 %v2771_v50  ;;  %v6714_v50 = vld [vmem:[%s9229_s23 + $0x168] sm:$0xff] }
 0x67a   : > { %v8476_v40 = vpack.c.bf16 %v6714_v50, %v6713_v49 }
 0x682   : > { %v8934_v51 = vpop.eup %8933 }
 0x683   : > { %v8936_v53 = vpop.eup %8935  ;;  %v2798_v54 = vmul.f32 %v8934_v51, %v9621_v47  ;;  %v6691_v51 = vld [vmem:[%s10515_s29 + $0x140] sm:$0xff] }
 0x684   : > { %v2797_v46 = vmul.f32 %v8936_v53, %v9623_v48  ;;  %v8436_v53 = vpack.c.bf16 %v6692_v52, %v6691_v51 }
 0x686   : > { %7711 = vmatprep.mubr.msk.f32.mxu1 %vm1556_vm2, %v2797_v46  ;;  %v6715_v46 = vld [vmem:[%s9229_s23 + $0x170] sm:$0xff] }
 0x687   : > { %v2786_v3 = vpop.xlane.xlu1 %2785  ;;  %7712 = vmatmul.mubr.msk.f32.vlgmr.msra.gmra.mrb[36].mxu1 %vm1556_vm2, %v2798_v54  ;;  %v6716_v54 = vld [vmem:[%s9229_s23 + $0x178] sm:$0xff] }
 0x688   : > { %8937 = vrcp.f32 %v2786_v3  ;;  %v2783_v11 = vpop.xlane.xlu0 %2782  ;;  %8419 = vmatpush3.bf16.msra.mxu1 %v8416_v45  ;;  %v8432_v45 = vpack.c.bf16 %v6690_v43, %v6689_v42  ;;  %v6694_v3 = vld [vmem:[%s10515_s29 + $0x158] sm:$0xff] }
 0x689   : > { %8939 = vrcp.f32 %v2783_v11  ;;  %8453 = vmatprep.subr.bf16.mxu1 %v8452_v55  ;;  %v8480_v11 = vpack.c.bf16 %v6716_v54, %v6715_v46 }
 0x68b   : > { %v2768_v31 = vpop.xlane.xlu1 %2767 }
 0x68c   : > { %8941 = vrcp.f32 %v2768_v31  ;;  %v2765_v13 = vpop.xlane.xlu0 %2764 }
 0x68d   : > { %8943 = vrcp.f32 %v2765_v13  ;;  %v6695_v13 = vld [vmem:[%s10515_s29 + $0x160] sm:$0xff] }
 0x68f   : > { %v2780_v47 = vpop.xlane.xlu1 %2779 }
 0x690   : > { %8945 = vrcp.f32 %v2780_v47  ;;  %v2777_v48 = vpop.xlane.xlu0 %2776  ;;  %v6696_v47 = vld [vmem:[%s10515_s29 + $0x168] sm:$0xff] }
 0x691   : > { %8947 = vrcp.f32 %v2777_v48  ;;  %v8444_v48 = vpack.c.bf16 %v6696_v47, %v6695_v13 }
 0x692   : > { %v8938_v14 = vpop.eup %8937 }
 0x693   : > { %v8940_v8 = vpop.eup %8939  ;;  %v2802_v18 = vmul.f32 %v8938_v14, %v9629_v20  ;;  %v6697_v14 = vld [vmem:[%s10515_s29 + $0x170] sm:$0xff] }
 0x694   : > { %v2801_v17 = vmul.f32 %v8940_v8, %v9631_v21  ;;  %v8448_v6 = vpack.c.bf16 %v6698_v16, %v6697_v14  ;;  %v9710_v8 = vld [vmem:[#allocation2 + $0x8] sm:$0xff] }
 0x696   : > { %v8942_v23 = vpop.eup %8941  ;;  %7725 = vmatprep.mubr.msk.f32.mxu1 %vm1556_vm2, %v2801_v17  ;;  %v9713_v17 = vld [vmem:[#allocation2 + $0x10] sm:$0xff] }
 0x697   : > { %v8944_v57 = vpop.eup %8943  ;;  %7726 = vmatmul.mubr.msk.f32.vlgmr.msra.gmra.mrb[38].mxu1 %vm1556_vm2, %v2802_v18  ;;  %v2796_v20 = vmul.f32 %v8942_v23, %v9637_v12  ;;  %v9716_v18 = vld [vmem:[#allocation2 + $0x18] sm:$0xff]  ;;  %v9727_v23 = vld [vmem:[#allocation2 + $0x30] sm:$0xff] }
 0x698   : > { %8455 = vmatpush3.bf16.msra.mxu1 %v8452_v55  ;;  %v2795_v21 = vmul.f32 %v8944_v57, %v9639_v26  ;;  %7804 = vmatprep.mubr.f32.mxu1 %v9674_v58  ;;  %v6686_v26 = vld [vmem:[%s10515_s29 + $0x118] sm:$0xff]  ;;  %v6693_v55 = vld [vmem:[%s10515_s29 + $0x150] sm:$0xff] }
 0x699   : > { %8457 = vmatprep.subr.bf16.mxu1 %v8456_v19  ;;  %v8424_v34 = vpack.c.bf16 %v6686_v26, %v6685_v25  ;;  %v8440_v31 = vpack.c.bf16 %v6694_v3, %v6693_v55 }
 0x69a   : > { %v8946_v61 = vpop.eup %8945  ;;  %7704 = vmatprep.mubr.msk.f32.mxu0 %vm1556_vm2, %v2795_v21 }
 0x69b   : > { %v8948_v30 = vpop.eup %8947  ;;  %7705 = vmatmul.mubr.msk.f32.vlgmr.msra.gmra.mrb[36].mxu0 %vm1556_vm2, %v2796_v20  ;;  %v2800_v32 = vmul.f32 %v8946_v61, %v9646_v29  ;;  %v8468_v29 = vpack.c.bf16 %v6710_v36, %v6709_v35 }
 0x69c   : > { %8415 = vmatpush3.bf16.msra.mxu0 %v9654_v41  ;;  %8459 = vmatpush3.bf16.msra.mxu1 %v8456_v19  ;;  %v2799_v12 = vmul.f32 %v8948_v30, %v9648_v63  ;;  %v8428_v63 = vpack.c.bf16 %v6688_v38, %v6687_v37  ;;  %v6712_v41 = vld [vmem:[%s9229_s23 + $0x158] sm:$0xff]  ;;  %v9719_v19 = vld [vmem:[#allocation2 + $0x20] sm:$0xff] }
 0x69d   : > { %8461 = vmatprep.subr.bf16.mxu1 %v8460_v59  ;;  %8421 = vmatprep.subr.bf16.mxu0 %v8420_v60  ;;  %v8472_v44 = vpack.c.bf16 %v6712_v41, %v6711_v39  ;;  %v6718_v30 = vld [vmem:[%s10516_s7 + $0x2] ss:$0 sm:$0xff] }
 0x69e   : > { %7718 = vmatprep.mubr.msk.f32.mxu0 %vm1556_vm2, %v2799_v12 }
 0x69f   : > { %7719 = vmatmul.mubr.msk.f32.vlgmr.msra.gmra.mrb[38].mxu0 %vm1556_vm2, %v2800_v32 }
 0x6a0   : > { %8463 = vmatpush3.bf16.msra.mxu1 %v8460_v59  ;;  %8423 = vmatpush3.bf16.msra.mxu0 %v8420_v60 }
 0x6a1   : > { %8465 = vmatprep.subr.bf16.mxu1 %v8464_v33  ;;  %8425 = vmatprep.subr.bf16.mxu0 %v8424_v34 }
 0x6a2   : > { %7760 = vmatprep.mubr.f32.mxu0 %v9674_v58 }
 0x6a4   : > { %8467 = vmatpush3.bf16.msra.mxu1 %v8464_v33  ;;  %8427 = vmatpush3.bf16.msra.mxu0 %v8424_v34 }
 0x6a5   : > { %8469 = vmatprep.subr.bf16.mxu1 %v8468_v29  ;;  %8429 = vmatprep.subr.bf16.mxu0 %v8428_v63 }
 0x6a8   : > { %8471 = vmatpush3.bf16.msra.mxu1 %v8468_v29  ;;  %8431 = vmatpush3.bf16.msra.mxu0 %v8428_v63  ;;  %v6700_v63 = vld [vmem:[%s10517_s27 + $0x2] ss:$0 sm:$0xff] }
 0x6a9   : > { %8473 = vmatprep.subr.bf16.mxu1 %v8472_v44  ;;  %8433 = vmatprep.subr.bf16.mxu0 %v8432_v45 }
 0x6ac   : > { %8475 = vmatpush3.bf16.msra.mxu1 %v8472_v44  ;;  %8435 = vmatpush3.bf16.msra.mxu0 %v8432_v45 }
 0x6ad   : > { %8477 = vmatprep.subr.bf16.mxu1 %v8476_v40  ;;  %8437 = vmatprep.subr.bf16.mxu0 %v8436_v53 }
 0x6b0   : > { %8479 = vmatpush3.bf16.msra.mxu1 %v8476_v40  ;;  %8439 = vmatpush3.bf16.msra.mxu0 %v8436_v53 }
 0x6b1   : > { %8481 = vmatprep.subr.bf16.mxu1 %v8480_v11  ;;  %8441 = vmatprep.subr.bf16.mxu0 %v8440_v31 }
 0x6b4   : > { %8483 = vmatpush3.bf16.msra.mxu1 %v8480_v11  ;;  %8443 = vmatpush3.bf16.msra.mxu0 %v8440_v31 }
 0x6b5   : > { %8445 = vmatprep.subr.bf16.mxu0 %v8444_v48 }
 0x6b7   : > { %7805 = vmatmul.mubr.f32.vlgmr.msra.gmra.mrb[40].mxu1 %v9710_v8 }
 0x6b8   : > { %8447 = vmatpush3.bf16.msra.mxu0 %v8444_v48  ;;  %7807 = vmatprep.mubr.f32.mxu1 %v9713_v17 }
 0x6b9   : > { %8449 = vmatprep.subr.bf16.mxu0 %v8448_v6 }
 0x6bb   : > { %7808 = vmatmul.mubr.f32.gmra.mrb[42].mxu1 %v9716_v18 }
 0x6bc   : > { %8451 = vmatpush3.bf16.msra.mxu0 %v8448_v6  ;;  %7810 = vmatprep.mubr.f32.mxu1 %v9719_v19 }
 0x6bf   : > { %7761 = vmatmul.mubr.f32.vlgmr.msra.gmra.mrb[40].mxu0 %v9710_v8  ;;  %7811 = vmatmul.mubr.f32.gmra.mrb[44].mxu1 %v9723_v22 }
 0x6c0   : > { %7763 = vmatprep.mubr.f32.mxu0 %v9713_v17  ;;  %7813 = vmatprep.mubr.f32.mxu1 %v9727_v23 }
 0x6c3   : > { %7764 = vmatmul.mubr.f32.gmra.mrb[42].mxu0 %v9716_v18  ;;  %7814 = vmatmul.mubr.f32.gmra.mrb[46].mxu1 %v9731_v24 }
 0x6c4   : > { %7766 = vmatprep.mubr.f32.mxu0 %v9719_v19 }
 0x6c7   : > { %7767 = vmatmul.mubr.f32.gmra.mrb[44].mxu0 %v9723_v22 }
 0x6c8   : > { %7769 = vmatprep.mubr.f32.mxu0 %v9727_v23 }
 0x6cb   : > { %7770 = vmatmul.mubr.f32.gmra.mrb[46].mxu0 %v9731_v24 }
 0x6cc   : > { %7848 = vmatprep.mubr.f32.mxu0 %v9674_v58 }
 0x75a   : > { %v9739_v15 = vpop.f32.mrb[36].mxu1 }
 0x75b   : > { %v9741_v27 = vpop.f32.mrb[37].mxu1 }
 0x75c   : > { %v8835_v57 = vpack.i.bf16 %v9739_v15, %v9741_v27 }
 0x76a   : > { %v9745_v21 = vpop.f32.mrb[38].mxu1 }
 0x76b   : > { %v9747_v20 = vpop.f32.mrb[39].mxu1 }
 0x76c   : > { %v8865_v59 = vpack.i.bf16 %v9745_v21, %v9747_v20 }
 0x76e   : > { %v9751_v60 = vpop.f32.mrb[36].mxu0 }
 0x76f   : > { %v9753_v28 = vpop.f32.mrb[37].mxu0 }
 0x770   : > { %v8825_v61 = vpack.i.bf16 %v9751_v60, %v9753_v28 }
 0x772   : > { %v9757_v62 = vpop.f32.mrb[38].mxu0 }
 0x773   : > { %v9759_v25 = vpop.f32.mrb[39].mxu0 }
 0x774   : > { %v8845_v26 = vpack.i.bf16 %v9757_v62, %v9759_v25 }
 0x78a   : > { %v7806_v12 = vpop.f32.mrb[40].mxu1 }
 0x78b   : > { %v3354_v32 = vadd.f32 %v7806_v12, %v6718_v30  ;;  %v3348_v33 = vpop.f32.mrb[41].mxu1 }
 0x78c   : > { %v3349_v34 = vadd.f32 %v6718_v30, %v3348_v33  ;;  %v6719_v33 = vld [vmem:[%s9239_s30 + $0x100] sm:$0xff] }
 0x78e   : > { %v8516_v35 = vpack.c.bf16 %v3354_v32, %v3349_v34  ;;  %v7809_v36 = vpop.f32.mrb[42].mxu1  ;;  %v6720_v34 = vld [vmem:[%s9239_s30 + $0x108] sm:$0xff] }
 0x78f   : > { %v3364_v37 = vadd.f32 %v7809_v36, %v6718_v30  ;;  %v3358_v38 = vpop.f32.mrb[43].mxu1  ;;  %v8484_v36 = vpack.c.bf16 %v6720_v34, %v6719_v33 }
 0x790   : > { %8518 = vmatprep.subr.msk.bf16.mxu1 %vm9387_vm1, %v8516_v35  ;;  %v3359_v29 = vadd.f32 %v6718_v30, %v3358_v38 }
 0x791   : > { %8521 = vmatpush3.bf16.xpose.msk.msra.mxu1 %vm9387_vm1, %v8516_v35  ;;  %v6721_v35 = vld [vmem:[%s9239_s30 + $0x110] sm:$0xff]  ;;  %8485 = vmatprep.subr.bf16.mxu0 %v8484_v36 }
 0x792   : > { %v8522_v39 = vpack.c.bf16 %v3364_v37, %v3359_v29  ;;  %v7762_v41 = vpop.f32.mrb[40].mxu0  ;;  %v7812_v42 = vpop.f32.mrb[44].mxu1  ;;  %v6722_v37 = vld [vmem:[%s9239_s30 + $0x118] sm:$0xff]  ;;  %v6723_v29 = vld [vmem:[%s9239_s30 + $0x120] sm:$0xff]  ;;  %8487 = vmatpush3.bf16.msra.mxu0 %v8484_v36 }
 0x793   : > { %v3218_v43 = vpop.f32.mrb[41].mxu0  ;;  %v3374_v44 = vadd.f32 %v7812_v42, %v6718_v30  ;;  %v3368_v45 = vpop.f32.mrb[45].mxu1  ;;  %v3224_v49 = vadd.f32 %v7762_v41, %v6700_v63  ;;  %v8488_v38 = vpack.c.bf16 %v6722_v37, %v6721_v35  ;;  %v6726_v42 = vld [vmem:[%s9239_s30 + $0x138] sm:$0xff] }
 0x794   : > { %v3219_v50 = vadd.f32 %v6700_v63, %v3218_v43  ;;  %8524 = vmatprep.subr.msk.bf16.mxu1 %vm9387_vm1, %v8522_v39  ;;  %v3369_v51 = vadd.f32 %v6718_v30, %v3368_v45  ;;  %v6728_v45 = vld [vmem:[%s9239_s30 + $0x148] sm:$0xff] }
 0x795   : > { %8489 = vmatprep.subr.bf16.mxu0 %v8488_v38 }
 0x796   : > { %7864 = vmatprep.mubr.msk.f32.mxu1 %vm1199_vm0, %v3219_v50  ;;  %v8528_v52 = vpack.c.bf16 %v3374_v44, %v3369_v51  ;;  %v7765_v40 = vpop.f32.mrb[42].mxu0  ;;  %v7815_v53 = vpop.f32.mrb[46].mxu1  ;;  %8491 = vmatpush3.bf16.msra.mxu0 %v8488_v38  ;;  %v6727_v44 = vld [vmem:[%s9239_s30 + $0x140] sm:$0xff]  ;;  %v6729_v50 = vld [vmem:[%s9239_s30 + $0x150] sm:$0xff]  ;;  %v6730_v51 = vld [vmem:[%s9239_s30 + $0x158] sm:$0xff] }
 0x797   : > { %v3228_v46 = vpop.f32.mrb[43].mxu0  ;;  %v3384_v54 = vadd.f32 %v7815_v53, %v6718_v30  ;;  %v3378_v55 = vpop.f32.mrb[47].mxu1  ;;  %v3234_v48 = vadd.f32 %v7765_v40, %v6700_v63  ;;  %v6731_v40 = vld [vmem:[%s9239_s30 + $0x160] sm:$0xff]  ;;  %v6732_v53 = vld [vmem:[%s9239_s30 + $0x168] sm:$0xff] }
 0x798   : > { %7865 = vmatmul.mubr.msk.f32.vlgmr.msra.gmra.mrb[48].mxu1 %vm1199_vm0, %v3224_v49  ;;  %v3229_v3 = vadd.f32 %v6700_v63, %v3228_v46  ;;  %v3379_v11 = vadd.f32 %v6718_v30, %v3378_v55  ;;  %v8500_v49 = vpack.c.bf16 %v6728_v45, %v6727_v44  ;;  %v8508_v46 = vpack.c.bf16 %v6732_v53, %v6731_v40  ;;  %v6734_v55 = vld [vmem:[%s9239_s30 + $0x178] sm:$0xff] }
 0x799   : > { %8527 = vmatpush3.bf16.xpose.msk.msra.mxu1 %vm9387_vm1, %v8522_v39  ;;  %v6724_v39 = vld [vmem:[%s9239_s30 + $0x128] sm:$0xff] }
 0x79a   : > { %7871 = vmatprep.mubr.msk.f32.mxu1 %vm1199_vm0, %v3229_v3  ;;  %8530 = vmatprep.subr.msk.bf16.mxu1 %vm9387_vm1, %v8528_v52  ;;  %v8534_v31 = vpack.c.bf16 %v3384_v54, %v3379_v11  ;;  %v7768_v13 = vpop.f32.mrb[44].mxu0  ;;  %v8492_v41 = vpack.c.bf16 %v6724_v39, %v6723_v29  ;;  %v6733_v54 = vld [vmem:[%s9239_s30 + $0x170] sm:$0xff] }
 0x79b   : > { %v3238_v47 = vpop.f32.mrb[45].mxu0  ;;  %v3244_v30 = vadd.f32 %v7768_v13, %v6700_v63  ;;  %v8512_v3 = vpack.c.bf16 %v6734_v55, %v6733_v54 }
 0x79c   : > { %v3239_v14 = vadd.f32 %v6700_v63, %v3238_v47  ;;  %8493 = vmatprep.subr.bf16.mxu0 %v8492_v41 }
 0x79d   : > { %8495 = vmatpush3.bf16.msra.mxu0 %v8492_v41 }
 0x79e   : > { %v7771_v16 = vpop.f32.mrb[46].mxu0 }
 0x79f   : > { %v3248_v6 = vpop.f32.mrb[47].mxu0  ;;  %v3254_v32 = vadd.f32 %v7771_v16, %v6700_v63 }
 0x7a0   : > { %7872 = vmatmul.mubr.msk.f32.vlgmr.msra.gmra.mrb[50].mxu1 %vm1199_vm0, %v3234_v48  ;;  %v3249_v12 = vadd.f32 %v6700_v63, %v3248_v6  ;;  %v6725_v63 = vld [vmem:[%s9239_s30 + $0x130] sm:$0xff] }
 0x7a1   : > { %8533 = vmatpush3.bf16.xpose.msk.msra.mxu1 %vm9387_vm1, %v8528_v52  ;;  %7878 = vmatprep.mubr.msk.f32.mxu1 %vm1199_vm0, %v3239_v14  ;;  %v8496_v43 = vpack.c.bf16 %v6726_v42, %v6725_v63  ;;  %v8504_v52 = vpack.c.bf16 %v6730_v51, %v6729_v50 }
 0x7a2   : > { %8536 = vmatprep.subr.msk.bf16.mxu1 %vm9387_vm1, %v8534_v31 }
 0x7a3   : > { %8497 = vmatprep.subr.bf16.mxu0 %v8496_v43 }
 0x7a4   : > { %8499 = vmatpush3.bf16.msra.mxu0 %v8496_v43 }
 0x7a5   : > { %8501 = vmatprep.subr.bf16.mxu0 %v8500_v49 }
 0x7a8   : > { %7879 = vmatmul.mubr.msk.f32.vlgmr.msra.gmra.mrb[52].mxu1 %vm1199_vm0, %v3244_v30  ;;  %8503 = vmatpush3.bf16.msra.mxu0 %v8500_v49 }
 0x7a9   : > { %8539 = vmatpush3.bf16.xpose.msk.msra.mxu1 %vm9387_vm1, %v8534_v31  ;;  %7885 = vmatprep.mubr.msk.f32.mxu1 %vm1199_vm0, %v3249_v12 }
 0x7aa   : > { %8505 = vmatprep.subr.bf16.mxu0 %v8504_v52 }
 0x7ac   : > { %8507 = vmatpush3.bf16.msra.mxu0 %v8504_v52 }
 0x7ad   : > { %8509 = vmatprep.subr.bf16.mxu0 %v8508_v46 }
 0x7b0   : > { %7886 = vmatmul.mubr.msk.f32.vlgmr.msra.gmra.mrb[54].mxu1 %vm1199_vm0, %v3254_v32  ;;  %8511 = vmatpush3.bf16.msra.mxu0 %v8508_v46 }
 0x7b1   : > { %8513 = vmatprep.subr.bf16.mxu0 %v8512_v3 }
 0x7b4   : > { %8515 = vmatpush3.bf16.msra.mxu0 %v8512_v3 }
 0x7b7   : > { %7849 = vmatmul.mubr.f32.vlgmr.msra.gmra.mrb[48].mxu0 %v9710_v8 }
 0x7b8   : > { %7851 = vmatprep.mubr.f32.mxu0 %v9713_v17 }
 0x7bb   : > { %7852 = vmatmul.mubr.f32.gmra.mrb[50].mxu0 %v9716_v18 }
 0x7bc   : > { %7854 = vmatprep.mubr.f32.mxu0 %v9719_v19 }
 0x7bf   : > { %7855 = vmatmul.mubr.f32.gmra.mrb[52].mxu0 %v9723_v22 }
 0x7c0   : > { %7857 = vmatprep.mubr.f32.mxu0 %v9727_v23 }
 0x7c3   : > { %7858 = vmatmul.mubr.f32.gmra.mrb[54].mxu0 %v9731_v24 }
 0x86b   : > { %v7866_v11 = vpop.f32.mrb[48].mxu1 }
 0x86c   : > { %v3595_v31 = vpop.f32.mrb[49].mxu1  ;;  %v3866_v36 = vmul.f32 0.17677669, %v7866_v11 }
 0x86d   : > { %v3865_v38 = vmul.f32 0.17677669, %v3595_v31 }
 0x86e   : > { %v3876_v41 = vsel %vm1556_vm2, %v3866_v36, -inf }
 0x86f   : > { %v3873_v42 = vsel %vm1556_vm2, %v3865_v38, -inf }
 0x873   : > { %v7873_v13 = vpop.f32.mrb[50].mxu1 }
 0x874   : > { %v3868_v47 = vmul.f32 0.17677669, %v7873_v13  ;;  %v3682_v48 = vpop.f32.mrb[51].mxu1 }
 0x875   : > { %v3867_v14 = vmul.f32 0.17677669, %v3682_v48 }
 0x876   : > { %v3882_v16 = vsel %vm1556_vm2, %v3868_v47, -inf }
 0x877   : > { %3883 = vmax.xlane.f32.xlu1 %v3882_v16  ;;  %v3879_v6 = vsel %vm1556_vm2, %v3867_v14, -inf }
 0x878   : > { %3880 = vmax.xlane.f32.xlu0 %v3879_v6 }
 0x87b   : > { %v7880_v30 = vpop.f32.mrb[52].mxu1 }
 0x87c   : > { %v3769_v12 = vpop.f32.mrb[53].mxu1  ;;  %v3870_v39 = vmul.f32 0.17677669, %v7880_v30 }
 0x87d   : > { %v3869_v63 = vmul.f32 0.17677669, %v3769_v12 }
 0x87e   : > { %v3888_v43 = vsel %vm1556_vm2, %v3870_v39, -inf }
 0x87f   : > { %v3885_v44 = vsel %vm1556_vm2, %v3869_v63, -inf }
 0x883   : > { %v7887_v32 = vpop.f32.mrb[54].mxu1 }
 0x884   : > { %v3872_v33 = vmul.f32 0.17677669, %v7887_v32  ;;  %v3856_v34 = vpop.f32.mrb[55].mxu1 }
 0x885   : > { %v3871_v35 = vmul.f32 0.17677669, %v3856_v34 }
 0x886   : > { %v3894_v37 = vsel %vm1556_vm2, %v3872_v33, -inf }
 0x887   : > { %3895 = vmax.xlane.f32.xlu1 %v3894_v37  ;;  %v3891_v29 = vsel %vm1556_vm2, %v3871_v35, -inf }
 0x888   : > { %3892 = vmax.xlane.f32.xlu0 %v3891_v29 }
 0x88b   : > { %3877 = vmax.xlane.f32.xlu1 %v3876_v41 }
 0x88c   : > { %3874 = vmax.xlane.f32.xlu0 %v3873_v42 }
 0x88f   : > { %3889 = vmax.xlane.f32.xlu1 %v3888_v43 }
 0x890   : > { %3886 = vmax.xlane.f32.xlu0 %v3885_v44 }
 0x904   : > { %v3884_v45 = vpop.xlane.xlu1 %3883 }
 0x905   : > { %v3900_v49 = vsub.f32 %v3868_v47, %v3884_v45  ;;  %v3881_v50 = vpop.xlane.xlu0 %3880 }
 0x906   : > { %v3899_v51 = vsub.f32 %v3867_v14, %v3881_v50 }
 0x907   : > { %v3911_v52 = vmul.f32 1.442695, %v3900_v49 }
 0x908   : > { %v3909_v40 = vmul.f32 1.442695, %v3899_v51 }
 0x909   : > { %8949 = vpow2.f32 %v3911_v52  ;;  %v6736_v52 = vld [vmem:[%s9244_s2 + $0x2] ss:$0 sm:$0xff] }
 0x90a   : > { %8951 = vpow2.f32 %v3909_v40 }
 0x913   : > { %v9820_v53 = vpop.eup %8949 }
 0x914   : > { %v9822_v46 = vpop.eup %8951  ;;  %v3896_v54 = vpop.xlane.xlu1 %3895  ;;  %v3930_v55 = vsel %vm1556_vm2, %v9820_v53, 0.0 }
 0x915   : > { %v3904_v3 = vsub.f32 %v3872_v33, %v3896_v54  ;;  %3931 = vadd.xlane.f32.xlu1 %v3930_v55  ;;  %v3893_v11 = vpop.xlane.xlu0 %3892  ;;  %v3927_v31 = vsel %vm1556_vm2, %v9822_v46, 0.0 }
 0x916   : > { %v3903_v13 = vsub.f32 %v3871_v35, %v3893_v11  ;;  %3928 = vadd.xlane.f32.xlu0 %v3927_v31 }
 0x917   : > { %v3919_v47 = vmul.f32 1.442695, %v3904_v3 }
 0x918   : > { %v3917_v48 = vmul.f32 1.442695, %v3903_v13  ;;  %v3878_v14 = vpop.xlane.xlu1 %3877 }
 0x919   : > { %8953 = vpow2.f32 %v3919_v47  ;;  %v3898_v16 = vsub.f32 %v3866_v36, %v3878_v14  ;;  %v3875_v6 = vpop.xlane.xlu0 %3874 }
 0x91a   : > { %8955 = vpow2.f32 %v3917_v48  ;;  %v3897_v30 = vsub.f32 %v3865_v38, %v3875_v6 }
 0x91b   : > { %v3907_v12 = vmul.f32 1.442695, %v3898_v16 }
 0x91c   : > { %v3905_v32 = vmul.f32 1.442695, %v3897_v30  ;;  %v3890_v34 = vpop.xlane.xlu1 %3889 }
 0x91d   : > { %8957 = vpow2.f32 %v3907_v12  ;;  %v3902_v33 = vsub.f32 %v3870_v39, %v3890_v34  ;;  %v3887_v37 = vpop.xlane.xlu0 %3886  ;;  %v7850_v39 = vpop.f32.mrb[48].mxu0 }
 0x91e   : > { %8959 = vpow2.f32 %v3905_v32  ;;  %v3901_v29 = vsub.f32 %v3869_v63, %v3887_v37  ;;  %v3478_v63 = vpop.f32.mrb[49].mxu0  ;;  %v3484_v11 = vadd.f32 %v7850_v39, %v6736_v52 }
 0x91f   : > { %v3915_v41 = vmul.f32 1.442695, %v3902_v33  ;;  %v7853_v50 = vpop.f32.mrb[50].mxu0  ;;  %v3479_v31 = vadd.f32 %v6736_v52, %v3478_v63  ;;  %v6779_v63 = vld [vmem:[%s9229_s23 + $0x180] sm:$0xff] }
 0x920   : > { %v3913_v42 = vmul.f32 1.442695, %v3901_v29  ;;  %v3488_v40 = vpop.f32.mrb[51].mxu0  ;;  %v3494_v54 = vadd.f32 %v7853_v50, %v6736_v52 }
 0x921   : > { %8961 = vpow2.f32 %v3915_v41  ;;  %v3489_v55 = vadd.f32 %v6736_v52, %v3488_v40  ;;  %v8540_v16 = vpack.c.bf16 %v3484_v11, %v3479_v31  ;;  %v7856_v6 = vpop.f32.mrb[52].mxu0 }
 0x922   : > { %8963 = vpow2.f32 %v3913_v42  ;;  %v3504_v30 = vadd.f32 %v7856_v6, %v6736_v52  ;;  %v3498_v12 = vpop.f32.mrb[53].mxu0 }
 0x923   : > { %v9828_v35 = vpop.eup %8953  ;;  %v8544_v48 = vpack.c.bf16 %v3494_v54, %v3489_v55  ;;  %8541 = vmatprep.subr.bf16.mxu1 %v8540_v16  ;;  %v3499_v32 = vadd.f32 %v6736_v52, %v3498_v12  ;;  %v7859_v34 = vpop.f32.mrb[54].mxu0 }
 0x924   : > { %v9830_v43 = vpop.eup %8955  ;;  %v3942_v36 = vsel %vm1556_vm2, %v9828_v35, 0.0  ;;  %8543 = vmatpush3.bf16.msra.mxu1 %v8540_v16  ;;  %v3508_v37 = vpop.f32.mrb[55].mxu0  ;;  %v3514_v29 = vadd.f32 %v7859_v34, %v6736_v52 }
 0x925   : > { %3943 = vadd.xlane.f32.xlu1 %v3942_v36  ;;  %v3939_v38 = vsel %vm1556_vm2, %v9830_v43, 0.0  ;;  %8545 = vmatprep.subr.bf16.mxu0 %v8544_v48  ;;  %v9853_v33 = vpack.c.bf16 %v3504_v30, %v3499_v32  ;;  %v3509_v41 = vadd.f32 %v6736_v52, %v3508_v37  ;;  %v6783_v32 = vld [vmem:[%s9229_s23 + $0x1a0] sm:$0xff]  ;;  %v6784_v37 = vld [vmem:[%s9229_s23 + $0x1a8] sm:$0xff] }
 0x926   : > { %3940 = vadd.xlane.f32.xlu0 %v3939_v38  ;;  %8547 = vmatpush3.bf16.msra.mxu0 %v8544_v48  ;;  %v6781_v48 = vld [vmem:[%s9229_s23 + $0x190] sm:$0xff] }
 0x927   : > { %v9836_v44 = vpop.eup %8957  ;;  %8549 = vmatprep.subr.bf16.mxu1 %v9853_v33  ;;  %v8552_v42 = vpack.c.bf16 %v3514_v29, %v3509_v41  ;;  %v6761_v29 = vld [vmem:[%s10515_s29 + $0x180] sm:$0xff]  ;;  %v6762_v41 = vld [vmem:[%s10515_s29 + $0x188] sm:$0xff] }
 0x928   : > { %v9838_v45 = vpop.eup %8959  ;;  %v3924_v49 = vsel %vm1556_vm2, %v9836_v44, 0.0 }
 0x929   : > { %3925 = vadd.xlane.f32.xlu1 %v3924_v49  ;;  %v3921_v51 = vsel %vm1556_vm2, %v9838_v45, 0.0  ;;  %8553 = vmatprep.subr.bf16.mxu0 %v8552_v42  ;;  %v6780_v49 = vld [vmem:[%s9229_s23 + $0x188] sm:$0xff] }
 0x92a   : > { %3922 = vadd.xlane.f32.xlu0 %v3921_v51  ;;  %v8588_v54 = vpack.c.bf16 %v6780_v49, %v6779_v63  ;;  %v6786_v49 = vld [vmem:[%s9229_s23 + $0x1b8] sm:$0xff] }
 0x92b   : > { %v9845_v3 = vpop.eup %8961 }
 0x92c   : > { %v9847_v13 = vpop.eup %8963  ;;  %v3936_v47 = vsel %vm1556_vm2, %v9845_v3, 0.0 }
 0x92d   : > { %3937 = vadd.xlane.f32.xlu1 %v3936_v47  ;;  %v3933_v14 = vsel %vm1556_vm2, %v9847_v13, 0.0 }
 0x92e   : > { %3934 = vadd.xlane.f32.xlu0 %v3933_v14  ;;  %v6782_v14 = vld [vmem:[%s9229_s23 + $0x198] sm:$0xff] }
 0x92f   : > { %v8592_v12 = vpack.c.bf16 %v6782_v14, %v6781_v48  ;;  %v6768_v48 = vld [vmem:[%s10515_s29 + $0x1b8] sm:$0xff] }
 0x9a2   : > { %v3932_v36 = vpop.xlane.xlu1 %3931 }
 0x9a3   : > { %8965 = vrcp.f32 %v3932_v36  ;;  %v3929_v38 = vpop.xlane.xlu0 %3928  ;;  %v8596_v36 = vpack.c.bf16 %v6784_v37, %v6783_v32  ;;  %v6770_v32 = vld [vmem:[%s10515_s29 + $0x1c8] sm:$0xff] }
 0x9a4   : > { %8967 = vrcp.f32 %v3929_v38  ;;  %v8556_v38 = vpack.c.bf16 %v6762_v41, %v6761_v29  ;;  %v6793_v29 = vld [vmem:[%s9229_s23 + $0x1f0] sm:$0xff]  ;;  %v6794_v41 = vld [vmem:[%s9229_s23 + $0x1f8] sm:$0xff] }
 0x9ad   : > { %v8966_v39 = vpop.eup %8965 }
 0x9ae   : > { %v8968_v50 = vpop.eup %8967  ;;  %v3956_v40 = vmul.f32 %v8966_v39, %v9820_v53  ;;  %v6785_v39 = vld [vmem:[%s9229_s23 + $0x1b0] sm:$0xff] }
 0x9af   : > { %v3955_v51 = vmul.f32 %v8968_v50, %v9822_v46  ;;  %v6763_v50 = vld [vmem:[%s10515_s29 + $0x190] sm:$0xff] }
 0x9b1   : > { %7899 = vmatprep.mubr.msk.f32.mxu0 %vm1556_vm2, %v3955_v51  ;;  %v6764_v51 = vld [vmem:[%s10515_s29 + $0x198] sm:$0xff] }
 0x9b2   : > { %v3944_v52 = vpop.xlane.xlu1 %3943  ;;  %7900 = vmatmul.mubr.msk.f32.vlgmr.msra.gmra.mrb[56].mxu0 %vm1556_vm2, %v3956_v40 }
 0x9b3   : > { %8969 = vrcp.f32 %v3944_v52  ;;  %v3941_v55 = vpop.xlane.xlu0 %3940  ;;  %8555 = vmatpush3.bf16.msra.mxu0 %v8552_v42  ;;  %v8560_v52 = vpack.c.bf16 %v6764_v51, %v6763_v50  ;;  %v6776_v50 = vld [vmem:[%s10515_s29 + $0x1f8] sm:$0xff] }
 0x9b4   : > { %8971 = vrcp.f32 %v3941_v55  ;;  %8589 = vmatprep.subr.bf16.mxu0 %v8588_v54  ;;  %v6787_v55 = vld [vmem:[%s9229_s23 + $0x1c0] sm:$0xff] }
 0x9b6   : > { %v3926_v11 = vpop.xlane.xlu1 %3925 }
 0x9b7   : > { %8973 = vrcp.f32 %v3926_v11  ;;  %v3923_v31 = vpop.xlane.xlu0 %3922  ;;  %v6788_v11 = vld [vmem:[%s9229_s23 + $0x1c8] sm:$0xff] }
 0x9b8   : > { %8975 = vrcp.f32 %v3923_v31  ;;  %v6765_v31 = vld [vmem:[%s10515_s29 + $0x1a0] sm:$0xff] }
 0x9ba   : > { %v3938_v53 = vpop.xlane.xlu1 %3937 }
 0x9bb   : > { %8977 = vrcp.f32 %v3938_v53  ;;  %v3935_v46 = vpop.xlane.xlu0 %3934  ;;  %v6766_v53 = vld [vmem:[%s10515_s29 + $0x1a8] sm:$0xff] }
 0x9bc   : > { %8979 = vrcp.f32 %v3935_v46  ;;  %v6790_v46 = vld [vmem:[%s9229_s23 + $0x1d8] sm:$0xff] }
 0x9bd   : > { %v8970_v47 = vpop.eup %8969 }
 0x9be   : > { %v8972_v16 = vpop.eup %8971  ;;  %v3960_v30 = vmul.f32 %v8970_v47, %v9828_v35  ;;  %v6767_v47 = vld [vmem:[%s10515_s29 + $0x1b0] sm:$0xff] }
 0x9bf   : > { %v3959_v6 = vmul.f32 %v8972_v16, %v9830_v43  ;;  %v8568_v16 = vpack.c.bf16 %v6768_v48, %v6767_v47 }
 0x9c1   : > { %v8974_v34 = vpop.eup %8973  ;;  %7913 = vmatprep.mubr.msk.f32.mxu0 %vm1556_vm2, %v3959_v6  ;;  %v6791_v6 = vld [vmem:[%s9229_s23 + $0x1e0] sm:$0xff] }
 0x9c2   : > { %v8976_v42 = vpop.eup %8975  ;;  %7914 = vmatmul.mubr.msk.f32.vlgmr.msra.gmra.mrb[58].mxu0 %vm1556_vm2, %v3960_v30  ;;  %v3954_v35 = vmul.f32 %v8974_v34, %v9836_v44  ;;  %v6792_v30 = vld [vmem:[%s9229_s23 + $0x1e8] sm:$0xff] }
 0x9c3   : > { %8591 = vmatpush3.bf16.msra.mxu0 %v8588_v54  ;;  %v3953_v43 = vmul.f32 %v8976_v42, %v9838_v45  ;;  %7992 = vmatprep.mubr.f32.mxu0 %v9674_v58  ;;  %v8600_v54 = vpack.c.bf16 %v6786_v49, %v6785_v39  ;;  %v8612_v34 = vpack.c.bf16 %v6792_v30, %v6791_v6  ;;  %v6771_v42 = vld [vmem:[%s10515_s29 + $0x1d0] sm:$0xff]  ;;  %v6774_v39 = vld [vmem:[%s10515_s29 + $0x1e8] sm:$0xff] }
 0x9c4   : > { %8593 = vmatprep.subr.bf16.mxu0 %v8592_v12  ;;  %v6775_v49 = vld [vmem:[%s10515_s29 + $0x1f0] sm:$0xff] }
 0x9c5   : > { %v8978_v63 = vpop.eup %8977  ;;  %7892 = vmatprep.mubr.msk.f32.mxu1 %vm1556_vm2, %v3953_v43  ;;  %v6772_v43 = vld [vmem:[%s10515_s29 + $0x1d8] sm:$0xff]  ;;  %v8584_v51 = vpack.c.bf16 %v6776_v50, %v6775_v49 }
 0x9c6   : > { %v8980_v40 = vpop.eup %8979  ;;  %7893 = vmatmul.mubr.msk.f32.vlgmr.msra.gmra.mrb[56].mxu1 %vm1556_vm2, %v3954_v35  ;;  %v3958_v45 = vmul.f32 %v8978_v63, %v9845_v3  ;;  %v8604_v3 = vpack.c.bf16 %v6788_v11, %v6787_v55  ;;  %v8616_v35 = vpack.c.bf16 %v6794_v41, %v6793_v29 }
 0x9c7   : > { %8551 = vmatpush3.bf16.msra.mxu1 %v9853_v33  ;;  %8595 = vmatpush3.bf16.msra.mxu0 %v8592_v12  ;;  %v3957_v44 = vmul.f32 %v8980_v40, %v9847_v13  ;;  %v8564_v13 = vpack.c.bf16 %v6766_v53, %v6765_v31  ;;  %v6789_v33 = vld [vmem:[%s9229_s23 + $0x1d0] sm:$0xff]  ;;  %v6769_v12 = vld [vmem:[%s10515_s29 + $0x1c0] sm:$0xff]  ;;  %s9104_s23 = smov 32  }
 0x9c8   : > { %8597 = vmatprep.subr.bf16.mxu0 %v8596_v36  ;;  %8557 = vmatprep.subr.bf16.mxu1 %v8556_v38  ;;  %v8608_v14 = vpack.c.bf16 %v6790_v46, %v6789_v33  ;;  %v8572_v37 = vpack.c.bf16 %v6770_v32, %v6769_v12  ;;  %v6796_v33 = vld [vmem:[%s10516_s7 + $0x3] ss:$0 sm:$0xff] }
 0x9c9   : > { %7906 = vmatprep.mubr.msk.f32.mxu1 %vm1556_vm2, %v3957_v44 }
 0x9ca   : > { %7907 = vmatmul.mubr.msk.f32.vlgmr.msra.gmra.mrb[58].mxu1 %vm1556_vm2, %v3958_v45 }
 0x9cb   : > { %8599 = vmatpush3.bf16.msra.mxu0 %v8596_v36  ;;  %8559 = vmatpush3.bf16.msra.mxu1 %v8556_v38  ;;  %v8576_v36 = vpack.c.bf16 %v6772_v43, %v6771_v42  ;;  %v6773_v38 = vld [vmem:[%s10515_s29 + $0x1e0] sm:$0xff] }
 0x9cc   : > { %8601 = vmatprep.subr.bf16.mxu0 %v8600_v54  ;;  %8561 = vmatprep.subr.bf16.mxu1 %v8560_v52  ;;  %v8580_v63 = vpack.c.bf16 %v6774_v39, %v6773_v38 }
 0x9cd   : > { %7948 = vmatprep.mubr.f32.mxu1 %v9674_v58 }
 0x9cf   : > { %8603 = vmatpush3.bf16.msra.mxu0 %v8600_v54  ;;  %8563 = vmatpush3.bf16.msra.mxu1 %v8560_v52 }
 0x9d0   : > { %8605 = vmatprep.subr.bf16.mxu0 %v8604_v3  ;;  %8565 = vmatprep.subr.bf16.mxu1 %v8564_v13 }
 0x9d3   : > { %8607 = vmatpush3.bf16.msra.mxu0 %v8604_v3  ;;  %8567 = vmatpush3.bf16.msra.mxu1 %v8564_v13 }
 0x9d4   : > { %8609 = vmatprep.subr.bf16.mxu0 %v8608_v14  ;;  %8569 = vmatprep.subr.bf16.mxu1 %v8568_v16 }
 0x9d7   : > { %8611 = vmatpush3.bf16.msra.mxu0 %v8608_v14  ;;  %8571 = vmatpush3.bf16.msra.mxu1 %v8568_v16 }
 0x9d8   : > { %8613 = vmatprep.subr.bf16.mxu0 %v8612_v34  ;;  %8573 = vmatprep.subr.bf16.mxu1 %v8572_v37 }
 0x9db   : > { %8615 = vmatpush3.bf16.msra.mxu0 %v8612_v34  ;;  %8575 = vmatpush3.bf16.msra.mxu1 %v8572_v37  ;;  %v6778_v34 = vld [vmem:[%s10517_s27 + $0x3] ss:$0 sm:$0xff] }
 0x9dc   : > { %8617 = vmatprep.subr.bf16.mxu0 %v8616_v35  ;;  %8577 = vmatprep.subr.bf16.mxu1 %v8576_v36 }
 0x9df   : > { %8619 = vmatpush3.bf16.msra.mxu0 %v8616_v35  ;;  %8579 = vmatpush3.bf16.msra.mxu1 %v8576_v36 }
 0x9e0   : > { %8581 = vmatprep.subr.bf16.mxu1 %v8580_v63 }
 0x9e2   : > { %7993 = vmatmul.mubr.f32.vlgmr.msra.gmra.mrb[60].mxu0 %v9710_v8 }
 0x9e3   : > { %8583 = vmatpush3.bf16.msra.mxu1 %v8580_v63  ;;  %7995 = vmatprep.mubr.f32.mxu0 %v9713_v17 }
 0x9e4   : > { %8585 = vmatprep.subr.bf16.mxu1 %v8584_v51 }
 0x9e6   : > { %7996 = vmatmul.mubr.f32.gmra.mrb[62].mxu0 %v9716_v18 }
 0x9e7   : > { %8587 = vmatpush3.bf16.msra.mxu1 %v8584_v51  ;;  %7998 = vmatprep.mubr.f32.mxu0 %v9719_v19 }
 0x9ea   : > { %7949 = vmatmul.mubr.f32.vlgmr.msra.gmra.mrb[60].mxu1 %v9710_v8  ;;  %7999 = vmatmul.mubr.f32.gmra.mrb[64].mxu0 %v9723_v22 }
 0x9eb   : > { %7951 = vmatprep.mubr.f32.mxu1 %v9713_v17  ;;  %8001 = vmatprep.mubr.f32.mxu0 %v9727_v23 }
 0x9ee   : > { %7952 = vmatmul.mubr.f32.gmra.mrb[62].mxu1 %v9716_v18  ;;  %8002 = vmatmul.mubr.f32.gmra.mrb[66].mxu0 %v9731_v24 }
 0x9ef   : > { %7954 = vmatprep.mubr.f32.mxu1 %v9719_v19 }
 0x9f2   : > { %7955 = vmatmul.mubr.f32.gmra.mrb[64].mxu1 %v9723_v22 }
 0x9f3   : > { %7957 = vmatprep.mubr.f32.mxu1 %v9727_v23 }
 0x9f6   : > { %7958 = vmatmul.mubr.f32.gmra.mrb[66].mxu1 %v9731_v24 }
 0x9f7   : > { %8036 = vmatprep.mubr.f32.mxu1 %v9674_v58 }
 0xa85   : > { %v9922_v40 = vpop.f32.mrb[56].mxu0 }
 0xa86   : > { %v9924_v44 = vpop.f32.mrb[57].mxu0 }
 0xa87   : > { %v8840_v45 = vpack.i.bf16 %v9922_v40, %v9924_v44 }
 0xa95   : > { %v9928_v54 = vpop.f32.mrb[58].mxu0 }
 0xa96   : > { %v9930_v52 = vpop.f32.mrb[59].mxu0 }
 0xa97   : > { %v8875_v55 = vpack.i.bf16 %v9928_v54, %v9930_v52 }
 0xa99   : > { %v9934_v11 = vpop.f32.mrb[56].mxu1 }
 0xa9a   : > { %v9936_v31 = vpop.f32.mrb[57].mxu1 }
 0xa9b   : > { %v8830_v58 = vpack.i.bf16 %v9934_v11, %v9936_v31 }
 0xa9d   : > { %v9940_v53 = vpop.f32.mrb[58].mxu1 }
 0xa9e   : > { %v9942_v3 = vpop.f32.mrb[59].mxu1 }
 0xa9f   : > { %v8850_v13 = vpack.i.bf16 %v9940_v53, %v9942_v3 }
 0xab5   : > { %v7994_v46 = vpop.f32.mrb[60].mxu0 }
 0xab6   : > { %v4512_v47 = vadd.f32 %v7994_v46, %v6796_v33  ;;  %v4506_v48 = vpop.f32.mrb[61].mxu0 }
 0xab7   : > { %v4507_v14 = vadd.f32 %v6796_v33, %v4506_v48 }
 0xab9   : > { %v8652_v16 = vpack.c.bf16 %v4512_v47, %v4507_v14  ;;  %v7997_v6 = vpop.f32.mrb[62].mxu0 }
 0xaba   : > { %v4522_v30 = vadd.f32 %v7997_v6, %v6796_v33  ;;  %v4516_v12 = vpop.f32.mrb[63].mxu0 }
 0xabb   : > { %8654 = vmatprep.subr.msk.bf16.mxu0 %vm9387_vm1, %v8652_v16  ;;  %v4517_v32 = vadd.f32 %v6796_v33, %v4516_v12 }
 0xabc   : > { %8657 = vmatpush3.bf16.xpose.msk.msra.mxu0 %vm9387_vm1, %v8652_v16 }
 0xabd   : > { %v7950_v37 = vpop.f32.mrb[60].mxu1  ;;  %v8658_v29 = vpack.c.bf16 %v4522_v30, %v4517_v32  ;;  %v8000_v41 = vpop.f32.mrb[64].mxu0 }
 0xabe   : > { %v4376_v42 = vpop.f32.mrb[61].mxu1  ;;  %v4532_v43 = vadd.f32 %v8000_v41, %v6796_v33  ;;  %v4526_v35 = vpop.f32.mrb[65].mxu0  ;;  %v4382_v36 = vadd.f32 %v7950_v37, %v6778_v34 }
 0xabf   : > { %v4377_v38 = vadd.f32 %v6778_v34, %v4376_v42  ;;  %8660 = vmatprep.subr.msk.bf16.mxu0 %vm9387_vm1, %v8658_v29  ;;  %v4527_v39 = vadd.f32 %v6796_v33, %v4526_v35  ;;  %v6798_v35 = vld [vmem:[%s9239_s30 + $0x188] sm:$0xff] }
 0xac1   : > { %8052 = vmatprep.mubr.msk.f32.mxu0 %vm1199_vm0, %v4377_v38  ;;  %v7953_v63 = vpop.f32.mrb[62].mxu1  ;;  %v8664_v49 = vpack.c.bf16 %v4532_v43, %v4527_v39  ;;  %v8003_v50 = vpop.f32.mrb[66].mxu0  ;;  %v6797_v43 = vld [vmem:[%s9239_s30 + $0x180] sm:$0xff]  ;;  %v6800_v39 = vld [vmem:[%s9239_s30 + $0x198] sm:$0xff] }
 0xac2   : > { %v4386_v51 = vpop.f32.mrb[63].mxu1  ;;  %v4542_v46 = vadd.f32 %v8003_v50, %v6796_v33  ;;  %v4536_v47 = vpop.f32.mrb[67].mxu0  ;;  %v4392_v12 = vadd.f32 %v7953_v63, %v6778_v34  ;;  %v8620_v38 = vpack.c.bf16 %v6798_v35, %v6797_v43  ;;  %v6802_v50 = vld [vmem:[%s9239_s30 + $0x1a8] sm:$0xff] }
 0xac3   : > { %8053 = vmatmul.mubr.msk.f32.vlgmr.msra.gmra.mrb[68].mxu0 %vm1199_vm0, %v4382_v36  ;;  %v4387_v48 = vadd.f32 %v6778_v34, %v4386_v51  ;;  %v4537_v14 = vadd.f32 %v6796_v33, %v4536_v47  ;;  %v6799_v36 = vld [vmem:[%s9239_s30 + $0x190] sm:$0xff]  ;;  %v6804_v51 = vld [vmem:[%s9239_s30 + $0x1b8] sm:$0xff]  ;;  %v6805_v47 = vld [vmem:[%s9239_s30 + $0x1c0] sm:$0xff] }
 0xac4   : > { %8663 = vmatpush3.bf16.xpose.msk.msra.mxu0 %vm9387_vm1, %v8658_v29  ;;  %v8624_v63 = vpack.c.bf16 %v6800_v39, %v6799_v36  ;;  %8621 = vmatprep.subr.bf16.mxu1 %v8620_v38 }
 0xac5   : > { %8059 = vmatprep.mubr.msk.f32.mxu0 %vm1199_vm0, %v4387_v48  ;;  %8666 = vmatprep.subr.msk.bf16.mxu0 %vm9387_vm1, %v8664_v49  ;;  %v7956_v16 = vpop.f32.mrb[64].mxu1  ;;  %v8670_v6 = vpack.c.bf16 %v4542_v46, %v4537_v14  ;;  %v6806_v48 = vld [vmem:[%s9239_s30 + $0x1c8] sm:$0xff] }
 0xac6   : > { %v4396_v30 = vpop.f32.mrb[65].mxu1  ;;  %v4402_v33 = vadd.f32 %v7956_v16, %v6778_v34  ;;  %8623 = vmatpush3.bf16.msra.mxu1 %v8620_v38  ;;  %v8636_v14 = vpack.c.bf16 %v6806_v48, %v6805_v47  ;;  %v6807_v16 = vld [vmem:[%s9239_s30 + $0x1d0] sm:$0xff] }
 0xac7   : > { %v4397_v32 = vadd.f32 %v6778_v34, %v4396_v30  ;;  %8625 = vmatprep.subr.bf16.mxu1 %v8624_v63 }
 0xac9   : > { %v7959_v37 = vpop.f32.mrb[66].mxu1 }
 0xaca   : > { %v4406_v41 = vpop.f32.mrb[67].mxu1  ;;  %v4412_v42 = vadd.f32 %v7959_v37, %v6778_v34  ;;  %8627 = vmatpush3.bf16.msra.mxu1 %v8624_v63 }
 0xacb   : > { %8060 = vmatmul.mubr.msk.f32.vlgmr.msra.gmra.mrb[70].mxu0 %vm1199_vm0, %v4392_v12  ;;  %v4407_v29 = vadd.f32 %v6778_v34, %v4406_v41  ;;  %v6803_v34 = vld [vmem:[%s9239_s30 + $0x1b0] sm:$0xff]  ;;  %v6809_v12 = vld [vmem:[%s9239_s30 + $0x1e0] sm:$0xff] }
 0xacc   : > { %8669 = vmatpush3.bf16.xpose.msk.msra.mxu0 %vm9387_vm1, %v8664_v49  ;;  %8066 = vmatprep.mubr.msk.f32.mxu0 %vm1199_vm0, %v4397_v32  ;;  %v6801_v49 = vld [vmem:[%s9239_s30 + $0x1a0] sm:$0xff]  ;;  %v8632_v46 = vpack.c.bf16 %v6804_v51, %v6803_v34  ;;  %v6810_v32 = vld [vmem:[%s9239_s30 + $0x1e8] sm:$0xff]  ;;  %v6811_v41 = vld [vmem:[%s9239_s30 + $0x1f0] sm:$0xff] }
 0xacd   : > { %8672 = vmatprep.subr.msk.bf16.mxu0 %vm9387_vm1, %v8670_v6  ;;  %v8628_v7 = vpack.c.bf16 %v6802_v50, %v6801_v49  ;;  %v8644_v37 = vpack.c.bf16 %v6810_v32, %v6809_v12 }
 0xacf   : > { %8629 = vmatprep.subr.bf16.mxu1 %v8628_v7 }
 0xad0   : > { %8631 = vmatpush3.bf16.msra.mxu1 %v8628_v7 }
 0xad1   : > { %8633 = vmatprep.subr.bf16.mxu1 %v8632_v46 }
 0xad3   : > { %8067 = vmatmul.mubr.msk.f32.vlgmr.msra.gmra.mrb[72].mxu0 %vm1199_vm0, %v4402_v33  ;;  %v6812_v33 = vld [vmem:[%s9239_s30 + $0x1f8] sm:$0xff] }
 0xad4   : > { %8675 = vmatpush3.bf16.xpose.msk.msra.mxu0 %vm9387_vm1, %v8670_v6  ;;  %8073 = vmatprep.mubr.msk.f32.mxu0 %vm1199_vm0, %v4407_v29  ;;  %v6808_v6 = vld [vmem:[%s9239_s30 + $0x1d8] sm:$0xff]  ;;  %v8648_v29 = vpack.c.bf16 %v6812_v33, %v6811_v41  ;;  %s9105_s30 = smov 96  }
 0xad5   : > { %8635 = vmatpush3.bf16.msra.mxu1 %v8632_v46  ;;  %v8640_v30 = vpack.c.bf16 %v6808_v6, %v6807_v16 }
 0xad6   : > { %8637 = vmatprep.subr.bf16.mxu1 %v8636_v14 }
 0xad9   : > { %8639 = vmatpush3.bf16.msra.mxu1 %v8636_v14 }
 0xada   : > { %8641 = vmatprep.subr.bf16.mxu1 %v8640_v30 }
 0xadb   : > { %8074 = vmatmul.mubr.msk.f32.vlgmr.msra.gmra.mrb[74].mxu0 %vm1199_vm0, %v4412_v42 }
 0xadd   : > { %8643 = vmatpush3.bf16.msra.mxu1 %v8640_v30 }
 0xade   : > { %8645 = vmatprep.subr.bf16.mxu1 %v8644_v37 }
 0xae1   : > { %8647 = vmatpush3.bf16.msra.mxu1 %v8644_v37 }
 0xae2   : > { %8649 = vmatprep.subr.bf16.mxu1 %v8648_v29 }
 0xae5   : > { %8651 = vmatpush3.bf16.msra.mxu1 %v8648_v29 }
 0xae8   : > { %8037 = vmatmul.mubr.f32.vlgmr.msra.gmra.mrb[68].mxu1 %v9710_v8 }
 0xae9   : > { %8039 = vmatprep.mubr.f32.mxu1 %v9713_v17 }
 0xaec   : > { %8040 = vmatmul.mubr.f32.gmra.mrb[70].mxu1 %v9716_v18 }
 0xaed   : > { %8042 = vmatprep.mubr.f32.mxu1 %v9719_v19 }
 0xaf0   : > { %8043 = vmatmul.mubr.f32.gmra.mrb[72].mxu1 %v9723_v22 }
 0xaf1   : > { %8045 = vmatprep.mubr.f32.mxu1 %v9727_v23 }
 0xaf4   : > { %8046 = vmatmul.mubr.f32.gmra.mrb[74].mxu1 %v9731_v24 }
 0xb96   : > { %v8054_v42 = vpop.f32.mrb[68].mxu0 }
 0xb97   : > { %v5024_v43 = vmul.f32 0.17677669, %v8054_v42  ;;  %v4753_v35 = vpop.f32.mrb[69].mxu0 }
 0xb98   : > { %v5023_v36 = vmul.f32 0.17677669, %v4753_v35 }
 0xb99   : > { %v5034_v38 = vsel %vm1556_vm2, %v5024_v43, -inf }
 0xb9a   : > { %5035 = vmax.xlane.f32.xlu1 %v5034_v38  ;;  %v5031_v8 = vsel %vm1556_vm2, %v5023_v36, -inf }
 0xb9b   : > { %5032 = vmax.xlane.f32.xlu0 %v5031_v8 }
 0xb9e   : > { %v8061_v17 = vpop.f32.mrb[70].mxu0 }
 0xb9f   : > { %v5026_v18 = vmul.f32 0.17677669, %v8061_v17  ;;  %v4840_v39 = vpop.f32.mrb[71].mxu0 }
 0xba0   : > { %v5025_v19 = vmul.f32 0.17677669, %v4840_v39 }
 0xba1   : > { %v5040_v22 = vsel %vm1556_vm2, %v5026_v18, -inf }
 0xba2   : > { %5041 = vmax.xlane.f32.xlu1 %v5040_v22  ;;  %v5037_v23 = vsel %vm1556_vm2, %v5025_v19, -inf }
 0xba3   : > { %5038 = vmax.xlane.f32.xlu0 %v5037_v23 }
 0xba6   : > { %v8068_v24 = vpop.f32.mrb[72].mxu0 }
 0xba7   : > { %v5028_v63 = vmul.f32 0.17677669, %v8068_v24  ;;  %v4927_v49 = vpop.f32.mrb[73].mxu0 }
 0xba8   : > { %v5027_v50 = vmul.f32 0.17677669, %v4927_v49 }
 0xba9   : > { %v5046_v7 = vsel %vm1556_vm2, %v5028_v63, -inf }
 0xbaa   : > { %5047 = vmax.xlane.f32.xlu1 %v5046_v7  ;;  %v5043_v34 = vsel %vm1556_vm2, %v5027_v50, -inf }
 0xbab   : > { %5044 = vmax.xlane.f32.xlu0 %v5043_v34 }
 0xbae   : > { %v8075_v51 = vpop.f32.mrb[74].mxu0 }
 0xbaf   : > { %v5030_v46 = vmul.f32 0.17677669, %v8075_v51  ;;  %v5014_v47 = vpop.f32.mrb[75].mxu0 }
 0xbb0   : > { %v5029_v48 = vmul.f32 0.17677669, %v5014_v47 }
 0xbb1   : > { %v5052_v14 = vsel %vm1556_vm2, %v5030_v46, -inf }
 0xbb2   : > { %5053 = vmax.xlane.f32.xlu1 %v5052_v14  ;;  %v5049_v16 = vsel %vm1556_vm2, %v5029_v48, -inf }
 0xbb3   : > { %5050 = vmax.xlane.f32.xlu0 %v5049_v16 }
 0xc27   : > { %v5036_v6 = vpop.xlane.xlu1 %5035 }
 0xc28   : > { %v5056_v30 = vsub.f32 %v5024_v43, %v5036_v6  ;;  %v5033_v12 = vpop.xlane.xlu0 %5032 }
 0xc29   : > { %v5055_v32 = vsub.f32 %v5023_v36, %v5033_v12 }
 0xc2a   : > { %v5065_v37 = vmul.f32 1.442695, %v5056_v30 }
 0xc2b   : > { %v5063_v41 = vmul.f32 1.442695, %v5055_v32 }
 0xc2c   : > { %8981 = vpow2.f32 %v5065_v37 }
 0xc2d   : > { %8983 = vpow2.f32 %v5063_v41  ;;  %v8038_v41 = vpop.f32.mrb[68].mxu1 }
 0xc2f   : > { %v5042_v33 = vpop.xlane.xlu1 %5041 }
 0xc30   : > { %v5058_v29 = vsub.f32 %v5026_v18, %v5042_v33  ;;  %v5039_v42 = vpop.xlane.xlu0 %5038  ;;  %v6814_v33 = vld [vmem:[%s9244_s2 + $0x3] ss:$0 sm:$0xff]  ;;  %s9103_s2 = smov 64  }
 0xc31   : > { %v5057_v35 = vsub.f32 %v5025_v19, %v5039_v42 }
 0xc32   : > { %v5069_v38 = vmul.f32 1.442695, %v5058_v29  ;;  %v4642_v29 = vadd.f32 %v8038_v41, %v6814_v33 }
 0xc33   : > { %v5067_v8 = vmul.f32 1.442695, %v5057_v35 }
 0xc34   : > { %8985 = vpow2.f32 %v5069_v38 }
 0xc35   : > { %8987 = vpow2.f32 %v5067_v8 }
 0xc36   : > { %v10003_v17 = vpop.eup %8981 }
 0xc37   : > { %v10005_v39 = vpop.eup %8983  ;;  %v5048_v22 = vpop.xlane.xlu1 %5047  ;;  %v5082_v43 = vsel %vm1556_vm2, %v10003_v17, 0.0 }
 0xc38   : > { %v5060_v36 = vsub.f32 %v5028_v63, %v5048_v22  ;;  %v5045_v23 = vpop.xlane.xlu0 %5044  ;;  %5083 = vadd.xlane.f32.xlu1 %v5082_v43  ;;  %v5079_v18 = vsel %vm1556_vm2, %v10005_v39, 0.0 }
 0xc39   : > { %v5059_v24 = vsub.f32 %v5027_v50, %v5045_v23  ;;  %5080 = vadd.xlane.f32.xlu0 %v5079_v18 }
 0xc3a   : > { %v5073_v19 = vmul.f32 1.442695, %v5060_v36 }
 0xc3b   : > { %v5071_v49 = vmul.f32 1.442695, %v5059_v24 }
 0xc3c   : > { %8989 = vpow2.f32 %v5073_v19 }
 0xc3d   : > { %8991 = vpow2.f32 %v5071_v49 }
 0xc3e   : > { %v10011_v7 = vpop.eup %8985 }
 0xc3f   : > { %v10013_v34 = vpop.eup %8987  ;;  %v5054_v51 = vpop.xlane.xlu1 %5053  ;;  %v5088_v47 = vsel %vm1556_vm2, %v10011_v7, 0.0 }
 0xc40   : > { %v5062_v63 = vsub.f32 %v5030_v46, %v5054_v51  ;;  %5089 = vadd.xlane.f32.xlu1 %v5088_v47  ;;  %v5051_v14 = vpop.xlane.xlu0 %5050  ;;  %v5085_v50 = vsel %vm1556_vm2, %v10013_v34, 0.0 }
 0xc41   : > { %v5061_v16 = vsub.f32 %v5029_v48, %v5051_v14  ;;  %5086 = vadd.xlane.f32.xlu0 %v5085_v50  ;;  %v4636_v48 = vpop.f32.mrb[69].mxu1 }
 0xc42   : > { %v5077_v6 = vmul.f32 1.442695, %v5062_v63  ;;  %v4637_v42 = vadd.f32 %v6814_v33, %v4636_v48  ;;  %v8041_v36 = vpop.f32.mrb[70].mxu1 }
 0xc43   : > { %v5075_v30 = vmul.f32 1.442695, %v5061_v16  ;;  %v4646_v23 = vpop.f32.mrb[71].mxu1  ;;  %v4652_v18 = vadd.f32 %v8041_v36, %v6814_v33 }
 0xc44   : > { %8993 = vpow2.f32 %v5077_v6  ;;  %v8676_v22 = vpack.c.bf16 %v4642_v29, %v4637_v42  ;;  %v4647_v24 = vadd.f32 %v6814_v33, %v4646_v23  ;;  %v8044_v49 = vpop.f32.mrb[72].mxu1  ;;  %v5568_v29 = vld [vmem:[%s9254_s24 + $0x18] sm:$0xff]  ;;  %v5573_v23 = vld [vmem:[%s9254_s24 + $0x40] sm:$0xff] }
 0xc45   : > { %8995 = vpow2.f32 %v5075_v30  ;;  %v4656_v51 = vpop.f32.mrb[73].mxu1  ;;  %v4662_v47 = vadd.f32 %v8044_v49, %v6814_v33  ;;  %v5576_v49 = vld [vmem:[%s9254_s24 + $0x58] sm:$0xff] }
 0xc46   : > { %v10019_v12 = vpop.eup %8989  ;;  %8677 = vmatprep.subr.bf16.mxu0 %v8676_v22  ;;  %v8680_v19 = vpack.c.bf16 %v4652_v18, %v4647_v24  ;;  %v4657_v63 = vadd.f32 %v6814_v33, %v4656_v51  ;;  %v8047_v50 = vpop.f32.mrb[74].mxu1  ;;  %v5574_v18 = vld [vmem:[%s9254_s24 + $0x48] sm:$0xff] }
 0xc47   : > { %v10021_v32 = vpop.eup %8991  ;;  %v5094_v37 = vsel %vm1556_vm2, %v10019_v12, 0.0  ;;  %8679 = vmatpush3.bf16.msra.mxu0 %v8676_v22  ;;  %v4666_v16 = vpop.f32.mrb[75].mxu1  ;;  %v4672_v6 = vadd.f32 %v8047_v50, %v6814_v33  ;;  %v5570_v22 = vld [vmem:[%s9254_s24 + $0x28] sm:$0xff]  ;;  %v8708_v24 = vpack.c.bf16 %v5574_v18, %v5573_v23  ;;  %v5579_v50 = vld [vmem:[%s9254_s24 + $0x70] sm:$0xff] }
 0xc48   : > { %5095 = vadd.xlane.f32.xlu1 %v5094_v37  ;;  %v5091_v46 = vsel %vm1556_vm2, %v10021_v32, 0.0  ;;  %8681 = vmatprep.subr.bf16.mxu1 %v8680_v19  ;;  %v8684_v14 = vpack.c.bf16 %v4662_v47, %v4657_v63  ;;  %v4667_v30 = vadd.f32 %v6814_v33, %v4666_v16  ;;  %v5566_v33 = vld [vmem:[%s9254_s24 + $0x8] sm:$0xff]  ;;  %v5577_v47 = vld [vmem:[%s9254_s24 + $0x60] sm:$0xff]  ;;  %v5580_v16 = vld [vmem:[%s9254_s24 + $0x78] sm:$0xff] }
 0xc49   : > { %5092 = vadd.xlane.f32.xlu0 %v5091_v46  ;;  %8683 = vmatpush3.bf16.msra.mxu1 %v8680_v19  ;;  %v5575_v19 = vld [vmem:[%s9254_s24 + $0x50] sm:$0xff]  ;;  %v5578_v63 = vld [vmem:[%s9254_s24 + $0x68] sm:$0xff] }
 0xc4a   : > { %8685 = vmatprep.subr.bf16.mxu0 %v8684_v14  ;;  %v8688_v37 = vpack.c.bf16 %v4672_v6, %v4667_v30  ;;  %v8712_v51 = vpack.c.bf16 %v5576_v49, %v5575_v19  ;;  %v8720_v6 = vpack.c.bf16 %v5580_v16, %v5579_v50 }
 0xc4c   : > { %8689 = vmatprep.subr.bf16.mxu1 %v8688_v37 }
 0xc4e   : > { %v10028_v35 = vpop.eup %8993 }
 0xc4f   : > { %v10030_v38 = vpop.eup %8995  ;;  %v5100_v8 = vsel %vm1556_vm2, %v10028_v35, 0.0 }
 0xc50   : > { %5101 = vadd.xlane.f32.xlu1 %v5100_v8  ;;  %v5097_v43 = vsel %vm1556_vm2, %v10030_v38, 0.0  ;;  %v5569_v8 = vld [vmem:[%s9254_s24 + $0x20] sm:$0xff] }
 0xc51   : > { %5098 = vadd.xlane.f32.xlu0 %v5097_v43  ;;  %v5572_v43 = vld [vmem:[%s9254_s24 + $0x38] sm:$0xff] }
 0xc61   : > { %8831 = vrot.lane.b32.xlu1 %v8830_v58, %s9103_s2 }
 0xc65   : > { %8836 = vrot.lane.b32.xlu1 %v8835_v57, %s9104_s23 }
 0xc67   : > { %8826 = vrot.lane.b32.xlu0 %v8825_v61, %s9104_s23 }
 0xc69   : > { %8851 = vrot.lane.b32.xlu1 %v8850_v13, %s9103_s2 }
 0xc6b   : > { %8841 = vrot.lane.b32.xlu0 %v8840_v45, %s9103_s2 }
 0xc6f   : > { %8846 = vrot.lane.b32.xlu0 %v8845_v26, %s9104_s23 }
 0xcc5   : > { %v5084_v15 = vpop.xlane.xlu1 %5083 }
 0xcc6   : > { %8997 = vrcp.f32 %v5084_v15  ;;  %v5081_v27 = vpop.xlane.xlu0 %5080 }
 0xcc7   : > { %8999 = vrcp.f32 %v5081_v27 }
 0xccd   : > { %v5090_v57 = vpop.xlane.xlu1 %5089 }
 0xcce   : > { %9001 = vrcp.f32 %v5090_v57  ;;  %v5087_v60 = vpop.xlane.xlu0 %5086 }
 0xccf   : > { %9003 = vrcp.f32 %v5087_v60 }
 0xcd0   : > { %v8998_v28 = vpop.eup %8997 }
 0xcd1   : > { %v9000_v61 = vpop.eup %8999  ;;  %v5112_v40 = vmul.f32 %v8998_v28, %v10003_v17 }
 0xcd2   : > { %v5111_v11 = vmul.f32 %v9000_v61, %v10005_v39 }
 0xcd4   : > { %8080 = vmatprep.mubr.msk.f32.mxu0 %vm1556_vm2, %v5111_v11 }
 0xcd5   : > { %v5096_v44 = vpop.xlane.xlu1 %5095  ;;  %8081 = vmatmul.mubr.msk.f32.vlgmr.msra.gmra.mrb[76].mxu0 %vm1556_vm2, %v5112_v40 }
 0xcd6   : > { %9005 = vrcp.f32 %v5096_v44  ;;  %v5093_v62 = vpop.xlane.xlu0 %5092  ;;  %8687 = vmatpush3.bf16.msra.mxu0 %v8684_v14  ;;  %v8716_v14 = vpack.c.bf16 %v5578_v63, %v5577_v47 }
 0xcd7   : > { %9007 = vrcp.f32 %v5093_v62 }
 0xcd8   : > { %v9002_v25 = vpop.eup %9001 }
 0xcd9   : > { %v9004_v26 = vpop.eup %9003  ;;  %v5114_v31 = vmul.f32 %v9002_v25, %v10011_v7 }
 0xcda   : > { %v5113_v45 = vmul.f32 %v9004_v26, %v10013_v34 }
 0xcdc   : > { %8087 = vmatprep.mubr.msk.f32.mxu1 %vm1556_vm2, %v5113_v45 }
 0xcdd   : > { %v5102_v58 = vpop.xlane.xlu1 %5101  ;;  %8088 = vmatmul.mubr.msk.f32.vlgmr.msra.gmra.mrb[76].mxu1 %vm1556_vm2, %v5114_v31 }
 0xcde   : > { %9009 = vrcp.f32 %v5102_v58  ;;  %v5099_v53 = vpop.xlane.xlu0 %5098  ;;  %8691 = vmatpush3.bf16.msra.mxu1 %v8688_v37 }
 0xcdf   : > { %9011 = vrcp.f32 %v5099_v53 }
 0xce0   : > { %v9006_v3 = vpop.eup %9005 }
 0xce1   : > { %v9008_v13 = vpop.eup %9007  ;;  %v5116_v39 = vmul.f32 %v9006_v3, %v10019_v12  ;;  %v5567_v12 = vld [vmem:[%s9254_s24 + $0x10] sm:$0xff]  ;;  %v8832_v25 = vpop.permute.xlu1 %8831 }
 0xce2   : > { %v5115_v17 = vmul.f32 %v9008_v13, %v10021_v32  ;;  %v5565_v32 = vld [vmem:[%s9254_s24] sm:$0xff]  ;;  %v8696_v42 = vpack.c.bf16 %v5568_v29, %v5567_v12  ;;  %v8827_v45 = vpop.permute.xlu0 %8826  ;;  %v8834_v53 = vunpack.i.h.bf16 %v8832_v25  ;;  %v8833_v54 = vunpack.i.l.bf16 %v8832_v25 }
 0xce3   : > { %v8692_v48 = vpack.c.bf16 %v5566_v33, %v5565_v32  ;;  %v8829_v31 = vunpack.i.h.bf16 %v8827_v45  ;;  %v8828_v58 = vunpack.i.l.bf16 %v8827_v45  ;;  %v5788_v25 = vld [vmem:[%s9268_s6] sm:$0xff]  ;;  %v5793_v45 = vld [vmem:[%s9268_s6 + $0x28] sm:$0xff] }
 0xce4   : > { %8094 = vmatprep.mubr.msk.f32.mxu0 %vm1556_vm2, %v5115_v17 }
 0xce5   : > { %8095 = vmatmul.mubr.msk.f32.vlgmr.msra.gmra.mrb[78].mxu0 %vm1556_vm2, %v5116_v39  ;;  %8693 = vmatprep.subr.bf16.mxu0 %v8692_v48  ;;  %v8837_v26 = vpop.permute.xlu1 %8836  ;;  %v5540_v20 = vsel %vm1199_vm0, %v9556_v4, %v8829_v31  ;;  %v5795_v31 = vld [vmem:[%s9268_s6 + $0x38] sm:$0xff] }
 0xce6   : > { %8695 = vmatpush3.bf16.msra.mxu0 %v8692_v48  ;;  %v8842_v13 = vpop.permute.xlu0 %8841  ;;  %v5549_v39 = vsel %vm5547_vm3, %v5540_v20, %v8834_v53  ;;  %v5794_v20 = vld [vmem:[%s9268_s6 + $0x30] sm:$0xff]  ;;  %v5797_v53 = vld [vmem:[%s9268_s6 + $0x48] sm:$0xff] }
 0xce7   : > { %8697 = vmatprep.subr.bf16.mxu0 %v8696_v42 }
 0xce8   : > { %v9010_v7 = vpop.eup %9009 }
 0xce9   : > { %v9012_v34 = vpop.eup %9011  ;;  %v5118_v41 = vmul.f32 %v9010_v7, %v10028_v35  ;;  %v8700_v35 = vpack.c.bf16 %v5570_v22, %v5569_v8  ;;  %v8852_v21 = vpop.permute.xlu1 %8851  ;;  %v8839_v7 = vunpack.i.h.bf16 %v8837_v26 }
 0xcea   : > { %v5117_v46 = vmul.f32 %v9012_v34, %v10030_v38  ;;  %v5571_v38 = vld [vmem:[%s9254_s24 + $0x30] sm:$0xff]  ;;  %8699 = vmatpush3.bf16.msra.mxu0 %v8696_v42  ;;  %v8838_v34 = vunpack.i.l.bf16 %v8837_v26  ;;  %v8847_v12 = vpop.permute.xlu0 %8846  ;;  %v8854_v23 = vunpack.i.h.bf16 %v8852_v21  ;;  %v8853_v18 = vunpack.i.l.bf16 %v8852_v21  ;;  %v5792_v21 = vld [vmem:[%s9268_s6 + $0x20] sm:$0xff] }
 0xceb   : > { %8701 = vmatprep.subr.bf16.mxu0 %v8700_v35  ;;  %v8704_v36 = vpack.c.bf16 %v5572_v43, %v5571_v38  ;;  %v5542_v33 = vsel %vm1199_vm0, %v9548_v56, %v8839_v7  ;;  %v8848_v38 = vunpack.i.l.bf16 %v8847_v12 }
 0xcec   : > { %8101 = vmatprep.mubr.msk.f32.mxu1 %vm1556_vm2, %v5117_v46  ;;  %v5541_v32 = vsel %vm1199_vm0, %v9550_v0, %v8838_v34  ;;  %v5800_v34 = vld [vmem:[%s9268_s6 + $0x60] sm:$0xff] }
 0xced   : > { %8102 = vmatmul.mubr.msk.f32.vlgmr.msra.gmra.mrb[78].mxu1 %vm1556_vm2, %v5118_v41  ;;  %v8843_v41 = vunpack.i.l.bf16 %v8842_v13  ;;  %v5543_v0 = vsel %vm1199_vm0, %v9562_v10, %v8848_v38  ;;  %v5813_v38 = vld [vmem:[%s9268_s6 + $0xc8] sm:$0xff] }
 0xcee   : > { %8703 = vmatpush3.bf16.msra.mxu0 %v8700_v35  ;;  %v8849_v35 = vunpack.i.h.bf16 %v8847_v12  ;;  %v5552_v47 = vsel %vm5547_vm3, %v5543_v0, %v8853_v18  ;;  %v5806_v12 = vld [vmem:[%s9268_s6 + $0x90] sm:$0xff] }
 0xcef   : > { %8705 = vmatprep.subr.bf16.mxu0 %v8704_v36  ;;  %v5550_v8 = vsel %vm5547_vm3, %v5541_v32, %v8843_v41  ;;  %v5807_v41 = vld [vmem:[%s9268_s6 + $0x98] sm:$0xff]  ;;  %v5814_v18 = vld [vmem:[%s9268_s6 + $0xd0] sm:$0xff] }
 0xcf0   : > { %v5544_v56 = vsel %vm1199_vm0, %v9560_v9, %v8849_v35  ;;  %v5810_v35 = vld [vmem:[%s9268_s6 + $0xb0] sm:$0xff] }
 0xcf1   : > { %v5553_v63 = vsel %vm5547_vm3, %v5544_v56, %v8854_v23  ;;  %v5812_v23 = vld [vmem:[%s9268_s6 + $0xc0] sm:$0xff] }
 0xcf2   : > { %8707 = vmatpush3.bf16.msra.mxu0 %v8704_v36 }
 0xcf3   : > { %8709 = vmatprep.subr.bf16.mxu0 %v8708_v24 }
 0xcf6   : > { %8711 = vmatpush3.bf16.msra.mxu0 %v8708_v24 }
 0xcf7   : > { %8713 = vmatprep.subr.bf16.mxu0 %v8712_v51 }
 0xcfa   : > { %8715 = vmatpush3.bf16.msra.mxu0 %v8712_v51 }
 0xcfb   : > { %8717 = vmatprep.subr.bf16.mxu0 %v8716_v14 }
 0xcfe   : > { %8719 = vmatpush3.bf16.msra.mxu0 %v8716_v14 }
 0xcff   : > { %8721 = vmatprep.subr.bf16.mxu0 %v8720_v6 }
 0xd02   : > { %8723 = vmatpush3.bf16.msra.mxu0 %v8720_v6 }
 0xda8   : > { %v8082_v30 = vpop.f32.mrb[76].mxu0 }
 0xda9   : > { %v5191_v37 = vpop.f32.mrb[77].mxu0 }
 0xdaa   : > { %v8855_v15 = vpack.i.bf16 %v8082_v30, %v5191_v37 }
 0xdac   : > { %8856 = vrot.lane.b32.xlu1 %v8855_v15, %s9105_s30 }
 0xdb0   : > { %v8089_v27 = vpop.f32.mrb[76].mxu1 }
 0xdb1   : > { %v5272_v57 = vpop.f32.mrb[77].mxu1 }
 0xdb2   : > { %v8860_v60 = vpack.i.bf16 %v8089_v27, %v5272_v57 }
 0xdb4   : > { %8861 = vrot.lane.b32.xlu1 %v8860_v60, %s9105_s30 }
 0xdb8   : > { %8866 = vrot.lane.b32.xlu1 %v8865_v59, %s9104_s23  ;;  %v8096_v28 = vpop.f32.mrb[78].mxu0  ;;  %v5539_v59 = vsel %vm1199_vm0, %v9558_v5, %v8828_v58  ;;  %v8844_v5 = vunpack.i.h.bf16 %v8842_v13  ;;  %v8728_v58 = vpack.c.bf16 %v5795_v31, %v5793_v45 }
 0xdb9   : > { %v5353_v61 = vpop.f32.mrb[79].mxu0  ;;  %v5548_v17 = vsel %vm5547_vm3, %v5539_v59, %v8833_v54  ;;  %v8730_v59 = vpack.c.bf16 %v5794_v20, %v5792_v21  ;;  %v5799_v54 = vld [vmem:[%s9268_s6 + $0x58] sm:$0xff]  ;;  %v9060_v20 = vld [vmem:[#allocation2 + $0x10] sm:$0xff] }
 0xdba   : > { %v8870_v11 = vpack.i.bf16 %v8096_v28, %v5353_v61  ;;  %v5551_v22 = vsel %vm5547_vm3, %v5542_v33, %v8844_v5  ;;  %v5805_v5 = vld [vmem:[%s9268_s6 + $0x88] sm:$0xff]  ;;  %v5804_v33 = vld [vmem:[%s9268_s6 + $0x80] sm:$0xff] }
 0xdbb   : > { %v8740_v32 = vpack.c.bf16 %v5807_v41, %v5805_v5  ;;  %v9062_v5 = vld [vmem:[#allocation2 + $0x20] sm:$0xff] }
 0xdbc   : > { %8871 = vrot.lane.b32.xlu0 %v8870_v11, %s9105_s30 }
 0xdc0   : > { %8876 = vrot.lane.b32.xlu0 %v8875_v55, %s9103_s2  ;;  %v8103_v40 = vpop.f32.mrb[78].mxu1 }
 0xdc1   : > { %v5434_v44 = vpop.f32.mrb[79].mxu1 }
 0xdc2   : > { %v8880_v62 = vpack.i.bf16 %v8103_v40, %v5434_v44  ;;  %v5789_v44 = vld [vmem:[%s9268_s6 + $0x8] sm:$0xff] }
 0xdc4   : > { %8881 = vrot.lane.b32.xlu1 %v8880_v62, %s9105_s30 }
 0xe1e   : > { %v8857_v52 = vpop.permute.xlu1 %8856 }
 0xe1f   : > { %v8859_v55 = vunpack.i.h.bf16 %v8857_v52  ;;  %v8858_v3 = vunpack.i.l.bf16 %v8857_v52  ;;  %v8732_v52 = vpack.c.bf16 %v5799_v54, %v5797_v53 }
 0xe21   : > { %v5557_v46 = vsel %vm5556_vm4, %v5548_v17, %v8858_v3  ;;  %v5558_v4 = vsel %vm5556_vm4, %v5549_v39, %v8859_v55  ;;  %v5796_v55 = vld [vmem:[%s9268_s6 + $0x40] sm:$0xff]  ;;  %v5798_v3 = vld [vmem:[%s9268_s6 + $0x50] sm:$0xff]  ;;  %v5801_v17 = vld [vmem:[%s9268_s6 + $0x68] sm:$0xff] }
 0xe22   : > { %8136 = vmatprep.mubr.f32.mxu0 %v5557_v46  ;;  %v8734_v13 = vpack.c.bf16 %v5798_v3, %v5796_v55  ;;  %v5803_v39 = vld [vmem:[%s9268_s6 + $0x78] sm:$0xff]  ;;  %v5802_v46 = vld [vmem:[%s9268_s6 + $0x70] sm:$0xff] }
 0xe23   : > { %8137 = vmatmul.mubr.f32.vlgmr.msra.gmra.mrb[80].mxu0 %v5558_v4  ;;  %v8736_v7 = vpack.c.bf16 %v5803_v39, %v5801_v17  ;;  %v8738_v4 = vpack.c.bf16 %v5802_v46, %v5800_v34  ;;  %v9061_v46 = vld [vmem:[#allocation2 + $0x28] sm:$0xff] }
 0xe26   : > { %v8862_v48 = vpop.permute.xlu1 %8861 }
 0xe27   : > { %v8864_v29 = vunpack.i.h.bf16 %v8862_v48  ;;  %v8863_v42 = vunpack.i.l.bf16 %v8862_v48  ;;  %v8742_v48 = vpack.c.bf16 %v5806_v12, %v5804_v33 }
 0xe29   : > { %v5559_v43 = vsel %vm5556_vm4, %v5550_v8, %v8863_v42  ;;  %v5560_v36 = vsel %vm5556_vm4, %v5551_v22, %v8864_v29  ;;  %v5809_v29 = vld [vmem:[%s9268_s6 + $0xa8] sm:$0xff]  ;;  %v5811_v42 = vld [vmem:[%s9268_s6 + $0xb8] sm:$0xff]  ;;  %v5808_v8 = vld [vmem:[%s9268_s6 + $0xa0] sm:$0xff] }
 0xe2a   : > { %8139 = vmatprep.mubr.f32.mxu0 %v5559_v43  ;;  %v8867_v51 = vpop.permute.xlu1 %8866  ;;  %v8744_v22 = vpack.c.bf16 %v5811_v42, %v5809_v29  ;;  %v5815_v43 = vld [vmem:[%s9268_s6 + $0xd8] sm:$0xff]  ;;  %v8746_v0 = vpack.c.bf16 %v5810_v35, %v5808_v8 }
 0xe2b   : > { %8140 = vmatmul.mubr.f32.gmra.mrb[82].mxu0 %v5560_v36  ;;  %v8869_v10 = vunpack.i.h.bf16 %v8867_v51  ;;  %v8868_v6 = vunpack.i.l.bf16 %v8867_v51  ;;  %v9106_v36 = vmov 0.0   ;;  %v8748_v56 = vpack.c.bf16 %v5815_v43, %v5813_v38  ;;  %v9063_v43 = vld [vmem:[#allocation2 + $0x38] sm:$0xff] }
 0xe2c   : > { %5896 = vmatprep.mubr.f32.mxu1 %v9106_v36 }
 0xe2d   : > { %v5545_v57 = vsel %vm1199_vm0, %v9554_v2, %v8868_v6  ;;  %v5546_v60 = vsel %vm1199_vm0, %v9552_v1, %v8869_v10  ;;  %v5791_v2 = vld [vmem:[%s9268_s6 + $0x18] sm:$0xff]  ;;  %v5790_v1 = vld [vmem:[%s9268_s6 + $0x10] sm:$0xff]  ;;  %v6089_v10 = vld [vmem:[%s9279_s4] sm:$0xff] }
 0xe2e   : > { %v8872_v24 = vpop.permute.xlu0 %8871  ;;  %v8724_v62 = vpack.c.bf16 %v5791_v2, %v5789_v44  ;;  %v8726_v26 = vpack.c.bf16 %v5790_v1, %v5788_v25 }
 0xe2f   : > { %v8874_v19 = vunpack.i.h.bf16 %v8872_v24  ;;  %v8873_v49 = vunpack.i.l.bf16 %v8872_v24  ;;  %v5817_v24 = vld [vmem:[%s9268_s6 + $0xe8] sm:$0xff] }
 0xe30   : > { %8725 = vmatprep.subr.bf16.mxu1 %v8724_v62 }
 0xe31   : > { %v5561_v14 = vsel %vm5556_vm4, %v5552_v47, %v8873_v49  ;;  %v5562_v50 = vsel %vm5556_vm4, %v5553_v63, %v8874_v19  ;;  %8727 = vmatpush1.bf16.msra.mxu1 %v8726_v26  ;;  %v5819_v19 = vld [vmem:[%s9268_s6 + $0xf8] sm:$0xff]  ;;  %v8750_v49 = vpack.c.bf16 %v5814_v18, %v5812_v23  ;;  %v5816_v47 = vld [vmem:[%s9268_s6 + $0xe0] sm:$0xff]  ;;  %v5818_v63 = vld [vmem:[%s9268_s6 + $0xf0] sm:$0xff] }
 0xe32   : > { %v8877_v16 = vpop.permute.xlu0 %8876  ;;  %8142 = vmatprep.mubr.f32.mxu0 %v5561_v14  ;;  %8729 = vmatprep.subr.bf16.mxu1 %v8728_v58  ;;  %v8752_v51 = vpack.c.bf16 %v5819_v19, %v5817_v24  ;;  %v8754_v14 = vpack.c.bf16 %v5818_v63, %v5816_v47  ;;  %v9059_v58 = vld [vmem:[#allocation2 + $0x18] sm:$0xff] }
 0xe33   : > { %8143 = vmatmul.mubr.f32.gmra.mrb[84].mxu0 %v5562_v50  ;;  %v8879_v9 = vunpack.i.h.bf16 %v8877_v16  ;;  %v8878_v30 = vunpack.i.l.bf16 %v8877_v16  ;;  %v6105_v50 = vld [vmem:[%s9279_s4 + $0x80] sm:$0xff]  ;;  %v6106_v16 = vld [vmem:[%s9279_s4 + $0x88] sm:$0xff] }
 0xe34   : > { %v8756_v6 = vpack.c.bf16 %v6106_v16, %v6105_v50 }
 0xe35   : > { %v5554_v28 = vsel %vm5547_vm3, %v5545_v57, %v8878_v30  ;;  %v5555_v61 = vsel %vm5547_vm3, %v5546_v60, %v8879_v9  ;;  %8731 = vmatpush1.bf16.msra.mxu1 %v8730_v59  ;;  %v6090_v9 = vld [vmem:[%s9279_s4 + $0x8] sm:$0xff] }
 0xe36   : > { %v8882_v37 = vpop.permute.xlu1 %8881  ;;  %8733 = vmatprep.subr.bf16.mxu1 %v8732_v52  ;;  %v10169_v30 = vpack.c.bf16 %v6090_v9, %v6089_v10  ;;  %8757 = vmatprep.subr.bf16.mxu0 %v8756_v6 }
 0xe37   : > { %v8884_v15 = vunpack.i.h.bf16 %v8882_v37  ;;  %v8883_v27 = vunpack.i.l.bf16 %v8882_v37  ;;  %v6839_v37 = vld [vmem:[%s10520_s1] ss:$0 sm:$0xff] }
 0xe38   : > { %8759 = vmatpush3.bf16.msra.mxu0 %v10169_v30 }
 0xe39   : > { %v5563_v11 = vsel %vm5556_vm4, %v5554_v28, %v8883_v27  ;;  %v5564_v40 = vsel %vm5556_vm4, %v5555_v61, %v8884_v15  ;;  %8735 = vmatpush1.bf16.msra.mxu1 %v8734_v13  ;;  %v9057_v28 = vld [vmem:[#allocation2 + $0x8] sm:$0xff] }
 0xe3a   : > { %8145 = vmatprep.mubr.f32.mxu0 %v5563_v11  ;;  %8737 = vmatprep.subr.bf16.mxu1 %v8736_v7  ;;  %v9058_v11 = vld [vmem:[#allocation2] sm:$0xff] }
 0xe3b   : > { %8146 = vmatmul.mubr.f32.gmra.mrb[86].mxu0 %v5564_v40 }
 0xe3d   : > { %8739 = vmatpush1.bf16.msra.mxu1 %v8738_v4 }
 0xe3e   : > { %8741 = vmatprep.subr.bf16.mxu1 %v8740_v32 }
 0xe41   : > { %8743 = vmatpush1.bf16.msra.mxu1 %v8742_v48 }
 0xe42   : > { %8745 = vmatprep.subr.bf16.mxu1 %v8744_v22 }
 0xe45   : > { %8747 = vmatpush1.bf16.msra.mxu1 %v8746_v0 }
 0xe46   : > { %8749 = vmatprep.subr.bf16.mxu1 %v8748_v56  ;;  %v9064_v56 = vld [vmem:[#allocation2 + $0x30] sm:$0xff] }
 0xe49   : > { %8751 = vmatpush1.bf16.msra.mxu1 %v8750_v49 }
 0xe4a   : > { %8753 = vmatprep.subr.bf16.mxu1 %v8752_v51 }
 0xe4d   : > { %8755 = vmatpush1.bf16.msra.mxu1 %v8754_v14 }
 0xe4e   : > { %8788 = vmatprep.subr.bf16.mxu1 %v8756_v6 }
 0xef6   : > { %v8138_v15 = vpop.f32.mrb[80].mxu0 }
 0xef7   : > { %v5660_v27 = vadd.f32 %v8138_v15, %v6839_v37  ;;  %v5654_v57 = vpop.f32.mrb[81].mxu0 }
 0xef8   : > { %v5655_v60 = vadd.f32 %v6839_v37, %v5654_v57 }
 0xef9   : > { %v10177_v61 = vadd.f32 %v9057_v28, %v5660_v27 }
 0xefa   : > { %v10179_v40 = vadd.f32 %v9058_v11, %v5655_v60 }
 0xefb   : > { %v5719_v44 = vmul.f32 %v10177_v61, %v10177_v61 }
 0xefc   : > { %v5703_v2 = vadd.f32 %v10177_v61, %v10179_v40  ;;  %v5718_v62 = vmul.f32 %v10179_v40, %v10179_v40 }
 0xefe   : > { %v5726_v25 = vadd.f32 %v5719_v44, %v5718_v62  ;;  %v8141_v1 = vpop.f32.mrb[82].mxu0 }
 0xeff   : > { %v5670_v26 = vadd.f32 %v8141_v1, %v6839_v37  ;;  %v5664_v45 = vpop.f32.mrb[83].mxu0 }
 0xf00   : > { %v5665_v31 = vadd.f32 %v6839_v37, %v5664_v45 }
 0xf01   : > { %v10187_v21 = vadd.f32 %v9059_v58, %v5670_v26 }
 0xf02   : > { %v10189_v59 = vadd.f32 %v9060_v20, %v5665_v31 }
 0xf03   : > { %v5721_v52 = vmul.f32 %v10187_v21, %v10187_v21 }
 0xf04   : > { %v5704_v53 = vadd.f32 %v5703_v2, %v10189_v59  ;;  %v5720_v54 = vmul.f32 %v10189_v59, %v10189_v59 }
 0xf06   : > { %v5727_v55 = vadd.f32 %v5726_v25, %v5720_v54  ;;  %v8144_v3 = vpop.f32.mrb[84].mxu0  ;;  %v5705_v13 = vadd.f32 %v5704_v53, %v10187_v21 }
 0xf07   : > { %v5680_v17 = vadd.f32 %v8144_v3, %v6839_v37  ;;  %v5674_v39 = vpop.f32.mrb[85].mxu0 }
 0xf08   : > { %v5675_v7 = vadd.f32 %v6839_v37, %v5674_v39  ;;  %v5728_v34 = vadd.f32 %v5727_v55, %v5721_v52  ;;  %v6840_v52 = vld [vmem:[%s10521_s3] ss:$0 sm:$0xff] }
 0xf09   : > { %v5698_v4 = vadd.f32 %v9061_v46, %v5680_v17 }
 0xf0a   : > { %v5697_v41 = vadd.f32 %v9062_v5, %v5675_v7 }
 0xf0b   : > { %v5723_v12 = vmul.f32 %v5698_v4, %v5698_v4 }
 0xf0c   : > { %v5706_v32 = vadd.f32 %v5705_v13, %v5697_v41  ;;  %v5722_v33 = vmul.f32 %v5697_v41, %v5697_v41 }
 0xf0e   : > { %v5729_v48 = vadd.f32 %v5728_v34, %v5722_v33  ;;  %v8147_v29 = vpop.f32.mrb[86].mxu0  ;;  %v5707_v42 = vadd.f32 %v5706_v32, %v5698_v4 }
 0xf0f   : > { %v5690_v8 = vadd.f32 %v8147_v29, %v6839_v37  ;;  %v5684_v22 = vpop.f32.mrb[87].mxu0 }
 0xf10   : > { %v5685_v35 = vadd.f32 %v6839_v37, %v5684_v22  ;;  %v5730_v38 = vadd.f32 %v5729_v48, %v5723_v12 }
 0xf11   : > { %v5700_v0 = vadd.f32 %v9063_v43, %v5690_v8  ;;  %v6108_v43 = vld [vmem:[%s9279_s4 + $0x98] sm:$0xff] }
 0xf12   : > { %v5699_v23 = vadd.f32 %v9064_v56, %v5685_v35  ;;  %v6091_v56 = vld [vmem:[%s9279_s4 + $0x10] sm:$0xff] }
 0xf13   : > { %v5725_v19 = vmul.f32 %v5700_v0, %v5700_v0 }
 0xf14   : > { %v5708_v18 = vadd.f32 %v5707_v42, %v5699_v23  ;;  %v5724_v24 = vmul.f32 %v5699_v23, %v5699_v23 }
 0xf16   : > { %v5709_v49 = vadd.f32 %v5708_v18, %v5700_v0  ;;  %v5731_v51 = vadd.f32 %v5730_v38, %v5724_v24  ;;  %v6107_v38 = vld [vmem:[%s9279_s4 + $0x90] sm:$0xff]  ;;  %v6110_v24 = vld [vmem:[%s9279_s4 + $0xa8] sm:$0xff] }
 0xf18   : > { %v5710_v47 = vrot.slane %v5709_v49, 4  ;;  %v5732_v63 = vadd.f32 %v5731_v51, %v5725_v19  ;;  %v6094_v51 = vld [vmem:[%s9279_s4 + $0x28] sm:$0xff] }
 0xf1a   : > { %v5711_v14 = vadd.f32 %v5710_v47, %v5709_v49  ;;  %v5733_v50 = vrot.slane %v5732_v63, 4  ;;  %v6093_v49 = vld [vmem:[%s9279_s4 + $0x20] sm:$0xff] }
 0xf1b   : > { %v8766_v47 = vpack.c.bf16 %v6094_v51, %v6093_v49 }
 0xf1c   : > { %v5712_v16 = vrot.slane %v5711_v14, 2  ;;  %v5734_v10 = vadd.f32 %v5733_v50, %v5732_v63  ;;  %v6111_v63 = vld [vmem:[%s9279_s4 + $0xb0] sm:$0xff] }
 0xf1e   : > { %v5713_v6 = vadd.f32 %v5712_v16, %v5711_v14  ;;  %v5735_v9 = vrot.slane %v5734_v10, 2  ;;  %v6112_v14 = vld [vmem:[%s9279_s4 + $0xb8] sm:$0xff]  ;;  %v6095_v16 = vld [vmem:[%s9279_s4 + $0x30] sm:$0xff] }
 0xf1f   : > { %v8768_v50 = vpack.c.bf16 %v6112_v14, %v6111_v63 }
 0xf20   : > { %v5714_v15 = vrot.slane %v5713_v6, 1  ;;  %v5736_v37 = vadd.f32 %v5735_v9, %v5734_v10  ;;  %v6096_v10 = vld [vmem:[%s9279_s4 + $0x38] sm:$0xff]  ;;  %v6113_v9 = vld [vmem:[%s9279_s4 + $0xc0] sm:$0xff] }
 0xf22   : > { %v5715_v27 = vadd.f32 %v5714_v15, %v5713_v6  ;;  %v5737_v57 = vrot.slane %v5736_v37, 1  ;;  %v8770_v6 = vpack.c.bf16 %v6096_v10, %v6095_v16  ;;  %v6114_v15 = vld [vmem:[%s9279_s4 + $0xc8] sm:$0xff] }
 0xf24   : > { %v5717_v60 = vmul.f32 0.015625, %v5715_v27  ;;  %v5738_v28 = vadd.f32 %v5737_v57, %v5736_v37  ;;  %v8772_v37 = vpack.c.bf16 %v6114_v15, %v6113_v9  ;;  %v6097_v27 = vld [vmem:[%s9279_s4 + $0x40] sm:$0xff]  ;;  %v6098_v57 = vld [vmem:[%s9279_s4 + $0x48] sm:$0xff] }
 0xf26   : > { %v5739_v11 = vmul.f32 0.015625, %v5738_v28  ;;  %v5740_v44 = vmul.f32 %v5717_v60, %v5717_v60  ;;  %v5748_v2 = vsub.f32 %v5699_v23, %v5717_v60  ;;  %v5742_v62 = vsub.f32 %v10179_v40, %v5717_v60  ;;  %v6092_v23 = vld [vmem:[%s9279_s4 + $0x18] sm:$0xff]  ;;  %v6115_v28 = vld [vmem:[%s9279_s4 + $0xd0] sm:$0xff] }
 0xf27   : > { %v5743_v25 = vsub.f32 %v10177_v61, %v5717_v60  ;;  %v5744_v1 = vsub.f32 %v10189_v59, %v5717_v60  ;;  %v5745_v26 = vsub.f32 %v10187_v21, %v5717_v60  ;;  %v5746_v45 = vsub.f32 %v5697_v41, %v5717_v60  ;;  %v6841_v21 = vld [vmem:[%s10522_s17] ss:$0 sm:$0xff] }
 0xf28   : > { %v5741_v31 = vsub.f32 %v5739_v11, %v5740_v44  ;;  %v5747_v58 = vsub.f32 %v5698_v4, %v5717_v60  ;;  %v5749_v20 = vsub.f32 %v5700_v0, %v5717_v60  ;;  %v8760_v0 = vpack.c.bf16 %v6108_v43, %v6107_v38  ;;  %v6116_v11 = vld [vmem:[%s9279_s4 + $0xd8] sm:$0xff] }
 0xf29   : > { %v8762_v18 = vpack.c.bf16 %v6092_v23, %v6091_v56  ;;  %v8774_v60 = vpack.c.bf16 %v6098_v57, %v6097_v27  ;;  %v8776_v44 = vpack.c.bf16 %v6116_v11, %v6115_v28 }
 0xf2a   : > { %v5750_v53 = vadd.f32 1e-05, %v5741_v31  ;;  %8761 = vmatprep.subr.bf16.mxu0 %v8760_v0  ;;  %v6101_v31 = vld [vmem:[%s9279_s4 + $0x60] sm:$0xff] }
 0xf2b   : > { %8763 = vmatpush3.bf16.msra.mxu0 %v8762_v18 }
 0xf2c   : > { %9013 = vrsqrt.f32 %v5750_v53  ;;  %v6119_v53 = vld [vmem:[%s9279_s4 + $0xf0] sm:$0xff] }
 0xf36   : > { %v9014_v54 = vpop.eup %9013 }
 0xf37   : > { %v5752_v40 = vmul.f32 %v9014_v54, %v5742_v62  ;;  %v5753_v55 = vmul.f32 %v9014_v54, %v5743_v25  ;;  %v5754_v3 = vmul.f32 %v9014_v54, %v5744_v1  ;;  %v5755_v61 = vmul.f32 %v9014_v54, %v5745_v26  ;;  %v6100_v62 = vld [vmem:[%s9279_s4 + $0x58] sm:$0xff]  ;;  %v6117_v1 = vld [vmem:[%s9279_s4 + $0xe0] sm:$0xff]  ;;  %v6118_v26 = vld [vmem:[%s9279_s4 + $0xe8] sm:$0xff] }
 0xf38   : > { %v5756_v59 = vmul.f32 %v9014_v54, %v5746_v45  ;;  %v5757_v13 = vmul.f32 %v9014_v54, %v5747_v58  ;;  %v5758_v17 = vmul.f32 %v9014_v54, %v5748_v2  ;;  %v5759_v39 = vmul.f32 %v9014_v54, %v5749_v20  ;;  %v6099_v2 = vld [vmem:[%s9279_s4 + $0x50] sm:$0xff]  ;;  %v6102_v58 = vld [vmem:[%s9279_s4 + $0x68] sm:$0xff]  ;;  %v6120_v54 = vld [vmem:[%s9279_s4 + $0xf8] sm:$0xff] }
 0xf39   : > { %v5766_v7 = vmul.f32 %v6840_v52, %v5752_v40  ;;  %v5767_v46 = vmul.f32 %v6840_v52, %v5753_v55  ;;  %v5768_v5 = vmul.f32 %v6840_v52, %v5754_v3  ;;  %v5769_v32 = vmul.f32 %v6840_v52, %v5755_v61  ;;  %v6103_v40 = vld [vmem:[%s9279_s4 + $0x70] sm:$0xff]  ;;  %v6104_v55 = vld [vmem:[%s9279_s4 + $0x78] sm:$0xff] }
 0xf3a   : > { %v5770_v12 = vmul.f32 %v6840_v52, %v5756_v59  ;;  %v5771_v48 = vmul.f32 %v6840_v52, %v5757_v13  ;;  %v5772_v42 = vmul.f32 %v6840_v52, %v5758_v17  ;;  %v5773_v22 = vmul.f32 %v6840_v52, %v5759_v39  ;;  %v5820_v13 = vld [vmem:[%s9274_s18] sm:$0x3] }
 0xf3b   : > { %v10211_v34 = vadd.f32 %v6841_v21, %v5766_v7  ;;  %v10216_v4 = vadd.f32 %v6841_v21, %v5767_v46  ;;  %v10220_v41 = vadd.f32 %v6841_v21, %v5768_v5  ;;  %v10224_v33 = vadd.f32 %v6841_v21, %v5769_v32 }
 0xf3c   : > { %v10232_v29 = vadd.f32 %v6841_v21, %v5771_v48  ;;  %v10236_v8 = vadd.f32 %v6841_v21, %v5772_v42  ;;  %v10240_v35 = vadd.f32 %v6841_v21, %v5773_v22  ;;  %v8778_v25 = vpack.c.bf16 %v6100_v62, %v6099_v2 }
 0xf3d   : > { %5897 = vmatmul.mubr.f32.vlgmr.msra.gmra.mrb[80].mxu1 %v10211_v34  ;;  %v8780_v45 = vpack.c.bf16 %v6118_v26, %v6117_v1  ;;  %v8782_v20 = vpack.c.bf16 %v6102_v58, %v6101_v31  ;;  %v8784_v52 = vpack.c.bf16 %v6120_v54, %v6119_v53  ;;  %v8786_v3 = vpack.c.bf16 %v6104_v55, %v6103_v40 }
 0xf3e   : > { %5902 = vmatprep.mubr.f32.mxu1 %v9106_v36  ;;  %8796 = vmatpush3.bf16.msra.mxu1 %v10169_v30  ;;  %v10228_v30 = vadd.f32 %v6841_v21, %v5770_v12  ;;  %v5822_v61 = vlaneseq }
 0xf3f   : > { %8789 = vmatprep.subr.bf16.mxu1 %v8760_v0 }
 0xf40   : > { %v5823_v21 = vshrl.u32 %v5822_v61, 7 }
 0xf41   : > { %5903 = vmatmul.mubr.f32.gmra.mrb[82].mxu1 %v10216_v4 }
 0xf42   : > { %5908 = vmatprep.mubr.f32.mxu1 %v9106_v36  ;;  %8797 = vmatpush3.bf16.msra.mxu1 %v8762_v18  ;;  %v5824_v59 = vsub.s32 0, %v5823_v21  ;;  %v5828_v17 = vsub.s32 1, %v5823_v21 }
 0xf44   : > { %v10272_v39 = vrot.slane %v5820_v13, %v5824_v59  ;;  %v10274_v7 = vrot.slane %v5820_v13, %v5828_v17 }
 0xf45   : > { %5909 = vmatmul.mubr.f32.gmra.mrb[84].mxu1 %v10220_v41 }
 0xf46   : > { %5914 = vmatprep.mubr.f32.mxu1 %v9106_v36 }
 0xf49   : > { %5915 = vmatmul.mubr.f32.gmra.mrb[86].mxu1 %v10224_v33 }
 0xf4a   : > { %5920 = vmatprep.mubr.f32.mxu1 %v9106_v36 }
 0xf4d   : > { %5921 = vmatmul.mubr.f32.gmra.mrb[88].mxu1 %v10228_v30 }
 0xf4e   : > { %5926 = vmatprep.mubr.f32.mxu1 %v9106_v36 }
 0xf51   : > { %5927 = vmatmul.mubr.f32.gmra.mrb[90].mxu1 %v10232_v29 }
 0xf52   : > { %5932 = vmatprep.mubr.f32.mxu1 %v9106_v36 }
 0xf55   : > { %5933 = vmatmul.mubr.f32.gmra.mrb[92].mxu1 %v10236_v8 }
 0xf56   : > { %5938 = vmatprep.mubr.f32.mxu1 %v9106_v36  ;;  %v6109_v36 = vld [vmem:[%s9279_s4 + $0xa0] sm:$0xff] }
 0xf57   : > { %v8764_v19 = vpack.c.bf16 %v6110_v24, %v6109_v36 }
 0xf59   : > { %5939 = vmatmul.mubr.f32.gmra.mrb[94].mxu1 %v10240_v35  ;;  %8765 = vmatprep.subr.bf16.mxu0 %v8764_v19 }
 0xf5a   : > { %8790 = vmatprep.subr.bf16.mxu1 %v8764_v19  ;;  %8767 = vmatpush3.bf16.msra.mxu0 %v8766_v47 }
 0xf5b   : > { %8798 = vmatpush3.bf16.msra.mxu1 %v8766_v47  ;;  %8769 = vmatprep.subr.bf16.mxu0 %v8768_v50 }
 0xf5c   : > { %8791 = vmatprep.subr.bf16.mxu1 %v8768_v50 }
 0xf5e   : > { %8771 = vmatpush3.bf16.msra.mxu0 %v8770_v6 }
 0xf5f   : > { %8799 = vmatpush3.bf16.msra.mxu1 %v8770_v6  ;;  %8773 = vmatprep.subr.bf16.mxu0 %v8772_v37 }
 0xf60   : > { %8792 = vmatprep.subr.bf16.mxu1 %v8772_v37 }
 0xf62   : > { %8775 = vmatpush3.bf16.msra.mxu0 %v8774_v60 }
 0xf63   : > { %8800 = vmatpush3.bf16.msra.mxu1 %v8774_v60  ;;  %8777 = vmatprep.subr.bf16.mxu0 %v8776_v44 }
 0xf64   : > { %8793 = vmatprep.subr.bf16.mxu1 %v8776_v44 }
 0xf66   : > { %8779 = vmatpush3.bf16.msra.mxu0 %v8778_v25 }
 0xf67   : > { %8801 = vmatpush3.bf16.msra.mxu1 %v8778_v25  ;;  %8781 = vmatprep.subr.bf16.mxu0 %v8780_v45 }
 0xf68   : > { %8794 = vmatprep.subr.bf16.mxu1 %v8780_v45 }
 0xf6a   : > { %8783 = vmatpush3.bf16.msra.mxu0 %v8782_v20 }
 0xf6b   : > { %8802 = vmatpush3.bf16.msra.mxu1 %v8782_v20  ;;  %8785 = vmatprep.subr.bf16.mxu0 %v8784_v52 }
 0xf6c   : > { %8795 = vmatprep.subr.bf16.mxu1 %v8784_v52 }
 0xf6e   : > { %8787 = vmatpush3.bf16.msra.mxu0 %v8786_v3 }
 0xf6f   : > { %8803 = vmatpush3.bf16.msra.mxu1 %v8786_v3 }
0x1010   : > { %v5898_v46 = vpop.f32.mrb[80].mxu1 }
0x1011   : > { %v5899_v5 = vadd.f32 %v5898_v46, %v10272_v39  ;;  %v5900_v32 = vpop.f32.mrb[81].mxu1 }
0x1012   : > { %v5901_v12 = vadd.f32 %v5900_v32, %v10274_v7 }
0x1013   : > { %v5961_v48 = vmul.f32 0.044715, %v5899_v5  ;;  %v5945_v13 = vmul.f32 0.5, %v5899_v5 }
0x1014   : > { %v5962_v42 = vmul.f32 0.044715, %v5901_v12  ;;  %v5904_v22 = vpop.f32.mrb[82].mxu1 }
0x1015   : > { %v5977_v38 = vmul.f32 %v5961_v48, %v5899_v5  ;;  %v10279_v43 = vadd.f32 %v5904_v22, %v10272_v39  ;;  %v5906_v0 = vpop.f32.mrb[83].mxu1  ;;  %v5946_v22 = vmul.f32 0.5, %v5901_v12 }
0x1016   : > { %v5978_v56 = vmul.f32 %v5962_v42, %v5901_v12  ;;  %v10282_v23 = vadd.f32 %v5906_v0, %v10274_v7 }
0x1017   : > { %v5993_v18 = vmul.f32 %v5977_v38, %v5899_v5  ;;  %v5963_v36 = vmul.f32 0.044715, %v10279_v43 }
0x1018   : > { %v5964_v24 = vmul.f32 0.044715, %v10282_v23  ;;  %v5910_v19 = vpop.f32.mrb[84].mxu1  ;;  %v5994_v49 = vmul.f32 %v5978_v56, %v5901_v12 }
0x1019   : > { %v6009_v51 = vadd.f32 %v5993_v18, %v5899_v5  ;;  %v5979_v47 = vmul.f32 %v5963_v36, %v10279_v43  ;;  %v10288_v63 = vadd.f32 %v5910_v19, %v10272_v39  ;;  %v5912_v14 = vpop.f32.mrb[85].mxu1 }
0x101a   : > { %v5980_v50 = vmul.f32 %v5964_v24, %v10282_v23  ;;  %v10292_v16 = vadd.f32 %v5912_v14, %v10274_v7  ;;  %v6010_v10 = vadd.f32 %v5994_v49, %v5901_v12  ;;  %v5947_v14 = vmul.f32 0.5, %v10279_v43 }
0x101b   : > { %v6025_v6 = vmul.f32 0.7978846, %v6009_v51  ;;  %v5965_v9 = vmul.f32 0.044715, %v10288_v63  ;;  %v5995_v15 = vmul.f32 %v5979_v47, %v10279_v43 }
0x101c   : > { %v5966_v37 = vmul.f32 0.044715, %v10292_v16  ;;  %v5916_v27 = vpop.f32.mrb[86].mxu1  ;;  %v6026_v57 = vmul.f32 0.7978846, %v6010_v10  ;;  %v5996_v60 = vmul.f32 %v5980_v50, %v10282_v23 }
0x101d   : > { %9015 = vtanh.f32 %v6025_v6  ;;  %v5981_v28 = vmul.f32 %v5965_v9, %v10288_v63  ;;  %v10300_v11 = vadd.f32 %v5916_v27, %v10272_v39  ;;  %v5918_v44 = vpop.f32.mrb[87].mxu1  ;;  %v6011_v2 = vadd.f32 %v5995_v15, %v10279_v43 }
0x101e   : > { %v5982_v62 = vmul.f32 %v5966_v37, %v10292_v16  ;;  %v10305_v25 = vadd.f32 %v5918_v44, %v10274_v7  ;;  %9017 = vtanh.f32 %v6026_v57  ;;  %v6012_v1 = vadd.f32 %v5996_v60, %v10282_v23 }
0x101f   : > { %v5967_v26 = vmul.f32 0.044715, %v10300_v11  ;;  %v6027_v45 = vmul.f32 0.7978846, %v6011_v2  ;;  %v5997_v31 = vmul.f32 %v5981_v28, %v10288_v63  ;;  %v5948_v2 = vmul.f32 0.5, %v10282_v23 }
0x1020   : > { %v5968_v58 = vmul.f32 0.044715, %v10305_v25  ;;  %v5922_v20 = vpop.f32.mrb[88].mxu1  ;;  %v6028_v53 = vmul.f32 0.7978846, %v6012_v1  ;;  %v5998_v54 = vmul.f32 %v5982_v62, %v10292_v16 }
0x1021   : > { %v5983_v52 = vmul.f32 %v5967_v26, %v10300_v11  ;;  %v10314_v40 = vadd.f32 %v5922_v20, %v10272_v39  ;;  %v5924_v55 = vpop.f32.mrb[89].mxu1  ;;  %9019 = vtanh.f32 %v6027_v45  ;;  %v6013_v3 = vadd.f32 %v5997_v31, %v10288_v63 }
0x1022   : > { %v5984_v61 = vmul.f32 %v5968_v58, %v10305_v25  ;;  %v10319_v21 = vadd.f32 %v5924_v55, %v10274_v7  ;;  %9021 = vtanh.f32 %v6028_v53  ;;  %v6014_v59 = vadd.f32 %v5998_v54, %v10292_v16 }
0x1023   : > { %v5969_v17 = vmul.f32 0.044715, %v10314_v40  ;;  %v6029_v46 = vmul.f32 0.7978846, %v6013_v3  ;;  %v5999_v32 = vmul.f32 %v5983_v52, %v10300_v11 }
0x1024   : > { %v5970_v48 = vmul.f32 0.044715, %v10319_v21  ;;  %v5928_v42 = vpop.f32.mrb[90].mxu1  ;;  %v6030_v38 = vmul.f32 0.7978846, %v6014_v59  ;;  %v6000_v0 = vmul.f32 %v5984_v61, %v10305_v25 }
0x1025   : > { %v5985_v56 = vmul.f32 %v5969_v17, %v10314_v40  ;;  %v10328_v18 = vadd.f32 %v5928_v42, %v10272_v39  ;;  %v5930_v36 = vpop.f32.mrb[91].mxu1  ;;  %9023 = vtanh.f32 %v6029_v46  ;;  %v6015_v5 = vadd.f32 %v5999_v32, %v10300_v11 }
0x1026   : > { %v5986_v24 = vmul.f32 %v5970_v48, %v10319_v21  ;;  %v10333_v19 = vadd.f32 %v5930_v36, %v10274_v7  ;;  %9025 = vtanh.f32 %v6030_v38  ;;  %v6016_v12 = vadd.f32 %v6000_v0, %v10305_v25 }
0x1027   : > { %v9016_v49 = vpop.eup %9015  ;;  %v6001_v51 = vmul.f32 %v5985_v56, %v10314_v40  ;;  %v5971_v47 = vmul.f32 0.044715, %v10328_v18  ;;  %v6031_v50 = vmul.f32 0.7978846, %v6015_v5  ;;  %v5950_v17 = vmul.f32 0.5, %v10292_v16 }
0x1028   : > { %v9018_v10 = vpop.eup %9017  ;;  %v5972_v6 = vmul.f32 0.044715, %v10333_v19  ;;  %v5934_v9 = vpop.f32.mrb[92].mxu1  ;;  %v6057_v15 = vadd.f32 1.0, %v9016_v49  ;;  %v6032_v37 = vmul.f32 0.7978846, %v6016_v12  ;;  %v6002_v27 = vmul.f32 %v5986_v24, %v10319_v21 }
0x1029   : > { %v6017_v57 = vadd.f32 %v6001_v51, %v10314_v40  ;;  %v10343_v60 = vadd.f32 %v5934_v9, %v10272_v39  ;;  %v5936_v28 = vpop.f32.mrb[93].mxu1  ;;  %v6058_v44 = vadd.f32 1.0, %v9018_v10  ;;  %v5987_v43 = vmul.f32 %v5971_v47, %v10328_v18 }
0x102a   : > { %v5988_v62 = vmul.f32 %v5972_v6, %v10333_v19  ;;  %v10349_v1 = vadd.f32 %v5936_v28, %v10274_v7  ;;  %9027 = vtanh.f32 %v6032_v37  ;;  %v6073_v52 = vmul.f32 %v6057_v15, %v5945_v13 }
0x102b   : > { %v9020_v26 = vpop.eup %9019  ;;  %v6033_v45 = vmul.f32 0.7978846, %v6017_v57  ;;  %v5973_v31 = vmul.f32 0.044715, %v10343_v60  ;;  %v6074_v58 = vmul.f32 %v6058_v44, %v5946_v22  ;;  %9029 = vtanh.f32 %v6031_v50 }
0x102c   : > { %v9022_v20 = vpop.eup %9021  ;;  %v5974_v53 = vmul.f32 0.044715, %v10349_v1  ;;  %v5940_v54 = vpop.f32.mrb[94].mxu1  ;;  %v6059_v23 = vadd.f32 1.0, %v9020_v26  ;;  %v6018_v55 = vadd.f32 %v6002_v27, %v10319_v21  ;;  %v6003_v0 = vmul.f32 %v5987_v43, %v10328_v18 }
0x102d   : > { %9031 = vtanh.f32 %v6033_v45  ;;  %v10355_v3 = vadd.f32 %v5940_v54, %v10272_v39  ;;  %v5942_v61 = vpop.f32.mrb[95].mxu1  ;;  %6192 = vmatprep.mubr.f32.mxu0 %v6074_v58  ;;  %v6060_v59 = vadd.f32 1.0, %v9022_v20  ;;  %v5989_v46 = vmul.f32 %v5973_v31, %v10343_v60 }
0x102e   : > { %v5990_v32 = vmul.f32 %v5974_v53, %v10349_v1  ;;  %v10361_v48 = vadd.f32 %v5942_v61, %v10274_v7  ;;  %6193 = vmatmul.mubr.f32.vlgmr.msra.gmra.mrb[88].mxu0 %v6073_v52  ;;  %v6034_v13 = vmul.f32 0.7978846, %v6018_v55  ;;  %v6004_v39 = vmul.f32 %v5988_v62, %v10333_v19 }
0x102f   : > { %v9024_v42 = vpop.eup %9023  ;;  %v5975_v22 = vmul.f32 0.044715, %v10355_v3  ;;  %v6076_v38 = vmul.f32 %v6060_v59, %v5948_v2  ;;  %v6075_v36 = vmul.f32 %v6059_v23, %v5947_v14  ;;  %v6019_v49 = vadd.f32 %v6003_v0, %v10328_v18 }
0x1030   : > { %v9026_v56 = vpop.eup %9025  ;;  %v5976_v16 = vmul.f32 0.044715, %v10361_v48  ;;  %v6061_v5 = vadd.f32 1.0, %v9024_v42  ;;  %9033 = vtanh.f32 %v6034_v13  ;;  %v6020_v12 = vadd.f32 %v6004_v39, %v10333_v19 }
0x1031   : > { %v5991_v24 = vmul.f32 %v5975_v22, %v10355_v3  ;;  %6197 = vmatprep.mubr.f32.mxu0 %v6076_v38  ;;  %v6062_v7 = vadd.f32 1.0, %v9026_v56  ;;  %v5949_v47 = vmul.f32 0.5, %v10288_v63  ;;  %v5951_v50 = vmul.f32 0.5, %v10300_v11 }
0x1032   : > { %v5992_v51 = vmul.f32 %v5976_v16, %v10361_v48  ;;  %6198 = vmatmul.mubr.f32.gmra.mrb[90].mxu0 %v6075_v36  ;;  %v6006_v10 = vmul.f32 %v5990_v32, %v10349_v1  ;;  %v6036_v6 = vmul.f32 0.7978846, %v6020_v12  ;;  %v6035_v9 = vmul.f32 0.7978846, %v6019_v49 }
0x1033   : > { %v6078_v14 = vmul.f32 %v6062_v7, %v5950_v17  ;;  %v6005_v15 = vmul.f32 %v5989_v46, %v10343_v60  ;;  %v6077_v27 = vmul.f32 %v6061_v5, %v5949_v47  ;;  %v5952_v57 = vmul.f32 0.5, %v10305_v25 }
0x1034   : > { %v9028_v37 = vpop.eup %9027  ;;  %v6022_v28 = vadd.f32 %v6006_v10, %v10349_v1  ;;  %v6008_v44 = vmul.f32 %v5992_v51, %v10361_v48  ;;  %9035 = vtanh.f32 %v6036_v6  ;;  %v6007_v43 = vmul.f32 %v5991_v24, %v10355_v3 }
0x1035   : > { %v9030_v2 = vpop.eup %9029  ;;  %6202 = vmatprep.mubr.f32.mxu0 %v6078_v14  ;;  %v6064_v63 = vadd.f32 1.0, %v9028_v37  ;;  %v6021_v11 = vadd.f32 %v6005_v15, %v10343_v60  ;;  %9037 = vtanh.f32 %v6035_v9  ;;  %v5954_v61 = vmul.f32 0.5, %v10319_v21  ;;  %v6842_v9 = vld [vmem:[%s780_s0] ss:$0 sm:$0xff] }
0x1036   : > { %6203 = vmatmul.mubr.f32.gmra.mrb[92].mxu0 %v6077_v27  ;;  %v6063_v62 = vadd.f32 1.0, %v9030_v2  ;;  %v6038_v26 = vmul.f32 0.7978846, %v6022_v28  ;;  %v6024_v45 = vadd.f32 %v6008_v44, %v10361_v48  ;;  %v6023_v20 = vadd.f32 %v6007_v43, %v10355_v3 }
0x1037   : > { %v9032_v31 = vpop.eup %9031  ;;  %v6080_v25 = vmul.f32 %v6064_v63, %v5952_v57  ;;  %v6037_v58 = vmul.f32 0.7978846, %v6021_v11  ;;  %v5953_v17 = vmul.f32 0.5, %v10314_v40  ;;  %v5956_v22 = vmul.f32 0.5, %v10333_v19 }
0x1038   : > { %v6079_v53 = vmul.f32 %v6063_v62, %v5951_v50  ;;  %9039 = vtanh.f32 %v6038_v26  ;;  %v6040_v54 = vmul.f32 0.7978846, %v6024_v45  ;;  %v6039_v52 = vmul.f32 0.7978846, %v6023_v20 }
0x1039   : > { %6207 = vmatprep.mubr.f32.mxu0 %v6080_v25  ;;  %9041 = vtanh.f32 %v6037_v58  ;;  %v6065_v55 = vadd.f32 1.0, %v9032_v31  ;;  %v5955_v39 = vmul.f32 0.5, %v10328_v18  ;;  %v5958_v5 = vmul.f32 0.5, %v10349_v1 }
0x103a   : > { %v9034_v23 = vpop.eup %9033  ;;  %6208 = vmatmul.mubr.f32.gmra.mrb[94].mxu0 %v6079_v53  ;;  %9043 = vtanh.f32 %v6040_v54  ;;  %v5957_v19 = vmul.f32 0.5, %v10343_v60  ;;  %v5960_v51 = vmul.f32 0.5, %v10361_v48  ;;  %v5959_v1 = vmul.f32 0.5, %v10355_v3 }
0x103b   : > { %v6066_v59 = vadd.f32 1.0, %v9034_v23  ;;  %9045 = vtanh.f32 %v6039_v52  ;;  %v6081_v32 = vmul.f32 %v6065_v55, %v5953_v17 }
0x103d   : > { %v6082_v46 = vmul.f32 %v6066_v59, %v5954_v61 }
0x103e   : > { %v9036_v13 = vpop.eup %9035 }
0x103f   : > { %6212 = vmatprep.mubr.f32.mxu1 %v6082_v46  ;;  %v9038_v42 = vpop.eup %9037  ;;  %v6068_v38 = vadd.f32 1.0, %v9036_v13 }
0x1040   : > { %6213 = vmatmul.mubr.f32.vlgmr.msra.gmra.mrb[96].mxu1 %v6081_v32  ;;  %v6067_v0 = vadd.f32 1.0, %v9038_v42 }
0x1041   : > { %v6084_v16 = vmul.f32 %v6068_v38, %v5956_v22 }
0x1042   : > { %v9040_v56 = vpop.eup %9039  ;;  %v6083_v21 = vmul.f32 %v6067_v0, %v5955_v39 }
0x1043   : > { %v9042_v36 = vpop.eup %9041  ;;  %v6070_v24 = vadd.f32 1.0, %v9040_v56  ;;  %6217 = vmatprep.mubr.f32.mxu1 %v6084_v16 }
0x1044   : > { %v9044_v40 = vpop.eup %9043  ;;  %v6069_v7 = vadd.f32 1.0, %v9042_v36  ;;  %6218 = vmatmul.mubr.f32.gmra.mrb[98].mxu1 %v6083_v21 }
0x1045   : > { %v9046_v12 = vpop.eup %9045  ;;  %v6086_v49 = vmul.f32 %v6070_v24, %v5958_v5  ;;  %v6072_v18 = vadd.f32 1.0, %v9044_v40 }
0x1046   : > { %v6085_v47 = vmul.f32 %v6069_v7, %v5957_v19  ;;  %v6071_v10 = vadd.f32 1.0, %v9046_v12 }
0x1047   : > { %6222 = vmatprep.mubr.f32.mxu1 %v6086_v49  ;;  %v6088_v50 = vmul.f32 %v6072_v18, %v5960_v51 }
0x1048   : > { %6223 = vmatmul.mubr.f32.gmra.mrb[100].mxu1 %v6085_v47  ;;  %v6087_v14 = vmul.f32 %v6071_v10, %v5959_v1 }
0x1049   : > { %6227 = vmatprep.mubr.f32.mxu1 %v6088_v50 }
0x104c   : > { %6228 = vmatmul.mubr.f32.gmra.mrb[102].mxu1 %v6087_v14 }
0x1101   : > { %v7328_v6 = vpop.f32.mrb[88].mxu0 }
0x1102   : > { %v7329_v60 = vpop.f32.mrb[89].mxu0 }
0x1103   : > { %v7330_v15 = vadd.f32 %v7329_v60, %v7328_v6 }
0x1105   : > { %v6195_v48 = vadd.f32 %v7330_v15, %v6842_v9  ;;  %v7331_v37 = vpop.f32.mrb[90].mxu0 }
0x1106   : > { %v7332_v27 = vpop.f32.mrb[91].mxu0 }
0x1107   : > { %v7333_v57 = vadd.f32 %v7332_v27, %v7331_v37  ;;  %v10396_v28 = vadd.f32 %v6195_v48, %v10211_v34 }
0x1109   : > { %v6200_v44 = vadd.f32 %v7333_v57, %v6842_v9  ;;  %v7334_v3 = vpop.f32.mrb[92].mxu0  ;;  %v6257_v43 = vmul.f32 %v10396_v28, %v10396_v28 }
0x110a   : > { %v7335_v2 = vpop.f32.mrb[93].mxu0 }
0x110b   : > { %v10399_v63 = vadd.f32 %v6200_v44, %v10216_v4  ;;  %v7336_v11 = vadd.f32 %v7335_v2, %v7334_v3 }
0x110d   : > { %v6243_v62 = vadd.f32 %v10399_v63, %v10396_v28  ;;  %v6258_v26 = vmul.f32 %v10399_v63, %v10399_v63  ;;  %v6205_v45 = vadd.f32 %v7336_v11, %v6842_v9  ;;  %v7337_v31 = vpop.f32.mrb[94].mxu0 }
0x110e   : > { %v7338_v34 = vpop.f32.mrb[95].mxu0 }
0x110f   : > { %v6265_v25 = vadd.f32 %v6258_v26, %v6257_v43  ;;  %v10408_v58 = vadd.f32 %v6205_v45, %v10220_v41  ;;  %v7339_v20 = vadd.f32 %v7338_v34, %v7337_v31 }
0x1111   : > { %v6244_v4 = vadd.f32 %v6243_v62, %v10408_v58  ;;  %v6259_v53 = vmul.f32 %v10408_v58, %v10408_v58  ;;  %v6210_v54 = vadd.f32 %v7339_v20, %v6842_v9 }
0x1113   : > { %v6266_v52 = vadd.f32 %v6265_v25, %v6259_v53  ;;  %v10414_v23 = vadd.f32 %v6210_v54, %v10224_v33  ;;  %v7340_v55 = vpop.f32.mrb[96].mxu1 }
0x1114   : > { %v7341_v61 = vpop.f32.mrb[97].mxu1 }
0x1115   : > { %v6245_v59 = vadd.f32 %v6244_v4, %v10414_v23  ;;  %v6260_v17 = vmul.f32 %v10414_v23, %v10414_v23  ;;  %v7342_v41 = vadd.f32 %v7341_v61, %v7340_v55 }
0x1117   : > { %v6267_v46 = vadd.f32 %v6266_v52, %v6260_v17  ;;  %v6215_v32 = vadd.f32 %v7342_v41, %v6842_v9  ;;  %v7343_v13 = vpop.f32.mrb[98].mxu1 }
0x1118   : > { %v7344_v22 = vpop.f32.mrb[99].mxu1 }
0x1119   : > { %v6237_v42 = vadd.f32 %v6215_v32, %v10228_v30  ;;  %v7345_v38 = vadd.f32 %v7344_v22, %v7343_v13 }
0x111b   : > { %v6246_v39 = vadd.f32 %v6245_v59, %v6237_v42  ;;  %v6261_v0 = vmul.f32 %v6237_v42, %v6237_v42  ;;  %v6220_v56 = vadd.f32 %v7345_v38, %v6842_v9  ;;  %v7346_v33 = vpop.f32.mrb[100].mxu1 }
0x111c   : > { %v7347_v36 = vpop.f32.mrb[101].mxu1 }
0x111d   : > { %v6268_v16 = vadd.f32 %v6267_v46, %v6261_v0  ;;  %v6238_v21 = vadd.f32 %v6220_v56, %v10232_v29  ;;  %v7348_v5 = vadd.f32 %v7347_v36, %v7346_v33 }
0x111f   : > { %v6247_v24 = vadd.f32 %v6246_v39, %v6238_v21  ;;  %v6262_v40 = vmul.f32 %v6238_v21, %v6238_v21  ;;  %v6225_v7 = vadd.f32 %v7348_v5, %v6842_v9  ;;  %v7349_v12 = vpop.f32.mrb[102].mxu1 }
0x1120   : > { %v7350_v49 = vpop.f32.mrb[103].mxu1 }
0x1121   : > { %v6269_v19 = vadd.f32 %v6268_v16, %v6262_v40  ;;  %v6239_v51 = vadd.f32 %v6225_v7, %v10236_v8  ;;  %v7351_v30 = vadd.f32 %v7350_v49, %v7349_v12 }
0x1123   : > { %v6248_v18 = vadd.f32 %v6247_v24, %v6239_v51  ;;  %v6263_v47 = vmul.f32 %v6239_v51, %v6239_v51  ;;  %v6230_v50 = vadd.f32 %v7351_v30, %v6842_v9 }
0x1125   : > { %v6270_v10 = vadd.f32 %v6269_v19, %v6263_v47  ;;  %v6240_v1 = vadd.f32 %v6230_v50, %v10240_v35 }
0x1127   : > { %v6249_v14 = vadd.f32 %v6248_v18, %v6240_v1  ;;  %v6264_v6 = vmul.f32 %v6240_v1, %v6240_v1 }
0x1129   : > { %v6250_v60 = vrot.slane %v6249_v14, 4  ;;  %v6271_v29 = vadd.f32 %v6270_v10, %v6264_v6 }
0x112b   : > { %v6251_v15 = vadd.f32 %v6250_v60, %v6249_v14  ;;  %v6272_v48 = vrot.slane %v6271_v29, 4 }
0x112d   : > { %v6252_v37 = vrot.slane %v6251_v15, 2  ;;  %v6273_v27 = vadd.f32 %v6272_v48, %v6271_v29 }
0x112f   : > { %v6253_v57 = vadd.f32 %v6252_v37, %v6251_v15  ;;  %v6274_v44 = vrot.slane %v6273_v27, 2 }
0x1131   : > { %v6254_v3 = vrot.slane %v6253_v57, 1  ;;  %v6275_v2 = vadd.f32 %v6274_v44, %v6273_v27 }
0x1133   : > { %v6255_v8 = vadd.f32 %v6254_v3, %v6253_v57  ;;  %v6276_v11 = vrot.slane %v6275_v2, 1 }
0x1135   : > { %v6256_v43 = vmul.f32 0.015625, %v6255_v8  ;;  %v6277_v9 = vadd.f32 %v6276_v11, %v6275_v2 }
0x1137   : > { %v6278_v62 = vmul.f32 0.015625, %v6277_v9  ;;  %v6279_v26 = vmul.f32 %v6256_v43, %v6256_v43  ;;  %v6281_v35 = vsub.f32 %v10396_v28, %v6256_v43  ;;  %v6282_v45 = vsub.f32 %v10399_v63, %v6256_v43  ;;  %v6843_v28 = vld [vmem:[%s783_s5] ss:$0 sm:$0xff] }
0x1138   : > { %v6283_v31 = vsub.f32 %v10408_v58, %v6256_v43  ;;  %v6284_v34 = vsub.f32 %v10414_v23, %v6256_v43  ;;  %v6285_v25 = vsub.f32 %v6237_v42, %v6256_v43  ;;  %v6286_v20 = vsub.f32 %v6238_v21, %v6256_v43  ;;  %v6844_v58 = vld [vmem:[%s786_s11] ss:$0 sm:$0xff]  ;;  %s10523_s11 = sld [smem:[#allocation7_spill]] }
0x1139   : > { %v6280_v4 = vsub.f32 %v6278_v62, %v6279_v26  ;;  %v6287_v53 = vsub.f32 %v6239_v51, %v6256_v43  ;;  %v6288_v54 = vsub.f32 %v6240_v1, %v6256_v43 }
0x113b   : > { %v6289_v52 = vadd.f32 1e-05, %v6280_v4 }
0x113d   : > { %9047 = vrsqrt.f32 %v6289_v52 }
0x113e   : > { %p6845_p5 = scmp.ne.s32.totalorder %s10523_s11, 1 }
0x1147   : > { %v9048_v55 = vpop.eup %9047 }
0x1148   : > { %v6291_v61 = vmul.f32 %v9048_v55, %v6281_v35  ;;  %v6292_v63 = vmul.f32 %v9048_v55, %v6282_v45  ;;  %v6293_v59 = vmul.f32 %v9048_v55, %v6283_v31  ;;  %v6294_v17 = vmul.f32 %v9048_v55, %v6284_v34 }
0x1149   : > { %v6295_v23 = vmul.f32 %v9048_v55, %v6285_v25  ;;  %v6296_v41 = vmul.f32 %v9048_v55, %v6286_v20  ;;  %v6297_v46 = vmul.f32 %v9048_v55, %v6287_v53  ;;  %v6298_v32 = vmul.f32 %v9048_v55, %v6288_v54 }
0x114a   : > { %v6305_v13 = vmul.f32 %v6843_v28, %v6291_v61  ;;  %v6306_v42 = vmul.f32 %v6843_v28, %v6292_v63  ;;  %v6307_v22 = vmul.f32 %v6843_v28, %v6293_v59  ;;  %v6308_v38 = vmul.f32 %v6843_v28, %v6294_v17 }
0x114b   : > { %v6309_v39 = vmul.f32 %v6843_v28, %v6295_v23  ;;  %v6310_v0 = vmul.f32 %v6843_v28, %v6296_v41  ;;  %v6311_v56 = vmul.f32 %v6843_v28, %v6297_v46  ;;  %v6312_v33 = vmul.f32 %v6843_v28, %v6298_v32  ;;  %6338 = sbr.rel (%p6845_p5) target bundleno = 4438 (0x1156), region = 96 }
0x114c   : > { %v6319_v16 = vadd.f32 %v6844_v58, %v6305_v13  ;;  %v6320_v36 = vadd.f32 %v6844_v58, %v6306_v42  ;;  %v6321_v21 = vadd.f32 %v6844_v58, %v6307_v22  ;;  %v6322_v5 = vadd.f32 %v6844_v58, %v6308_v38 }
0x114d   : > { %v6323_v24 = vadd.f32 %v6844_v58, %v6309_v39  ;;  %v6324_v40 = vadd.f32 %v6844_v58, %v6310_v0  ;;  %v6325_v7 = vadd.f32 %v6844_v58, %v6311_v56  ;;  %v6326_v12 = vadd.f32 %v6844_v58, %v6312_v33 }
0x114e   : > { %6327 = vst [vmem:[#allocation2] sm:$0xff] %v6319_v16  ;;  %6328 = vst [vmem:[#allocation2 + $0x8] sm:$0xff] %v6320_v36 }
0x114f   : > { %6329 = vst [vmem:[#allocation2 + $0x10] sm:$0xff] %v6321_v21  ;;  %6330 = vst [vmem:[#allocation2 + $0x18] sm:$0xff] %v6322_v5 }
0x1150   : > { %6331 = vst [vmem:[#allocation2 + $0x20] sm:$0xff] %v6323_v24  ;;  %6332 = vst [vmem:[#allocation2 + $0x28] sm:$0xff] %v6324_v40 }
0x1151   : > { %6333 = vst [vmem:[#allocation2 + $0x30] sm:$0xff] %v6325_v7  ;;  %6334 = vst [vmem:[#allocation2 + $0x38] sm:$0xff] %v6326_v12 }
0x1152   : > { %6339 = vst [vmem:[#allocation3] sm:$0xff] %v6319_v16  ;;  %6340 = vst [vmem:[#allocation3 + $0x8] sm:$0xff] %v6320_v36 }
0x1153   : > { %6341 = vst [vmem:[#allocation3 + $0x10] sm:$0xff] %v6321_v21  ;;  %6342 = vst [vmem:[#allocation3 + $0x18] sm:$0xff] %v6322_v5 }
0x1154   : > { %6343 = vst [vmem:[#allocation3 + $0x20] sm:$0xff] %v6323_v24  ;;  %6344 = vst [vmem:[#allocation3 + $0x28] sm:$0xff] %v6324_v40 }
0x1155   : > { %6345 = vst [vmem:[#allocation3 + $0x30] sm:$0xff] %v6325_v7  ;;  %6346 = vst [vmem:[#allocation3 + $0x38] sm:$0xff] %v6326_v12 }
0x1156 PF: > { %s10524_s26 = sld [smem:[#allocation7_spill]]  ;;  %s9107_s5 = smov [#allocation3]  }
0x1157   : > { %s6353_s27 = sshll.u32 %s9107_s5, 4  ;;  %s6354_s27 = int_to_ptr.vmem [resolvable:$true] %s6353_s27 }
0x1158   : > { %s9065_s2 = scalar_lea.vmem %s6354_s27, 1024  ;;  %p9072_p10 = scmp.lt.s32.totalorder %s6354_s27, %s6354_s27 }
0x1159   : > { %p9066_p7 = scmp.ne.s32.totalorder %s6354_s27, %s9065_s2  ;;  %p9073_p11 = scmp.lt.s32.totalorder %s9065_s2, %s9065_s2 }
0x115b   : > { %p9074_p12 = por %p9073_p11, %p9072_p10 }
0x115c   : > { %p8808_p6 = scmp.eq.s32.totalorder %s10524_s26, 1 }
0x115e   : > { %p9067_p8 = pnand %p9066_p7, %p8808_p6 }
0x1160   : > { %p9068_p9 = pneg %p9067_p8 }
0x1162   : > { %p9075_p13 = pnand %p9074_p12, %p9068_p9 }
0x1164   : > { %9078 = shalt.err (!%p9075_p13)
}
0x1165   : > { %s10525_s24 = sld [smem:[#allocation20_spill]] }
0x116b   : > { %s10526_s19 = smov %s10525_s24  ;;  %s9079_s1 = scalar_lea.hbm %s10525_s24, 1024 }
0x116c   : > { %p9080_p0 = scmp.ne.s32.totalorder %s10526_s19, %s9079_s1  ;;  %p9085_p3 = scmp.lt.u32.totalorder %s9079_s1, %s10526_s19 }
0x116e   : > { %p9081_p1 = pnand %p9080_p0, %p8808_p6 }
0x1170   : > { %p9082_p2 = pneg %p9081_p1 }
0x1172   : > { %p9087_p4 = pnand %p9085_p3, %p9082_p2 }
0x1174   : > { %9090 = shalt.err (!%p9087_p4)
}
0x1175   : > { %s9108_s28 = smov 128   ;;  %s9109_s17 = smov 8  }
0x1176   : > { %8805 = dma.vmem_to_hbm [thread:$0]  (%p8808_p6), %s6354_s27, 1024, %s10526_s19, [#allocation4], %s9108_s28, %s9108_s28, %s9109_s17  }
0x1177   : > { %9096 = dma.done.wait (%p8808_p6), [#allocation4], 1024  }
0x1178   : > { %9098 = vsyncadd (%p8808_p6), [#allocation4], 4294966272 }
0x1179 PF: > { %s10527_s0 = sld [smem:[#allocation6_spill]] }
0x117f   : > { %s28_s24 = sadd.s32 1, %s10527_s0  }
0x1180   : > { %p25_p5 = scmp.ge.s32.totalorder %s28_s24, 4  }
0x1182   :  { %27 = sbr.rel (!%p25_p5) target bundleno = 12 (0xc), region = 186 }
0x1189   :  { %6369 = vsyncpa [#allocation4], 1 }
0x118a   :  { %6371 = vsyncpa [#allocation4 + $0x1], 1 }

</bundles_post_ra>
